<compile_context>
chip_gen: v7x
topology: tpu7x:2x2x1
jax: 0.10.0
libtpu: 0.0.40
codegen_flags: <defaults>
</compile_context>

<pallas_src>
import jax
import jax.numpy as jnp
from jax import lax
from jax.experimental import pallas as pl
from jax.experimental.pallas import tpu as pltpu

# ---- Module config (defaults of FlexibleNeRFModel) -------------------------
NUM_LAYERS = 4
HIDDEN = 128
SKIP_EVERY = 4
NUM_ENC_XYZ = 6
NUM_ENC_DIR = 4
DIM_XYZ = 3 + 2 * 3 * NUM_ENC_XYZ      # 39
DIM_DIR = 3 + 2 * 3 * NUM_ENC_DIR      # 27
DIM_IN = DIM_XYZ + DIM_DIR             # 66
DIM_OUT = 4
N_XYZ_LAYERS = NUM_LAYERS - 1          # 3

# Packed-weight layout (bf16 native tile is (16,128): every segment starts at
# a multiple of 16 rows so static slices of the slab are zero-cost views).
LANES = 128
SEG_L1 = 80                            # >= DIM_IN (66), 16-aligned
SEG_DIR = 208                          # >= HIDDEN + DIM_IN (194), 16-aligned

R_L1 = 0                               # layer1 (rows 0:39 = W, 39:66 = 0)
R_X0 = R_L1 + SEG_L1                   # layers_xyz[0]              (128,128)
R_X1 = R_X0 + HIDDEN                   # layers_xyz[1]              (128,128)
R_X2 = R_X1 + HIDDEN                   # layers_xyz[2]              (128,128)
R_FEAT = R_X2 + HIDDEN                 # fc_feat                    (128,128)
R_DIR = R_FEAT + HIDDEN                # layer_dir0 fused [feat|xyz0|view]
R_RGB = R_DIR + SEG_DIR                # fc_rgb (row/col padded)    (128,128)
R_END = R_RGB + HIDDEN                 # 928 rows total

# rows of the small f32 bias/misc slab, shape (8, 128)
B_L1, B_X0, B_X1, B_X2, B_FEAT, B_DIR, B_ALPHA_W, B_OUT = range(8)


def _is_skip(i):
    # forward()'s skip condition (never triggers at the default config)
    return (i % SKIP_EVERY == 0) and (i > 0) and (i != N_XYZ_LAYERS - 1)


def _round_up(a, b):
    return (a + b - 1) // b * b


# ---- Deterministic parameter init (torch.nn.Linear-style uniform) ----------
def init_params(key):
    def linear(k, din, dout):
        k1, k2 = jax.random.split(k)
        bound = 1.0 / float(din) ** 0.5
        w = jax.random.uniform(k1, (din, dout), jnp.float32, -bound, bound)
        b = jax.random.uniform(k2, (1, dout), jnp.float32, -bound, bound)
        return w, b

    keys = iter(jax.random.split(key, 16))
    params = {}
    params["layer1"] = linear(next(keys), DIM_XYZ, HIDDEN)
    layers_xyz = []
    for i in range(N_XYZ_LAYERS):
        din = DIM_XYZ + HIDDEN if _is_skip(i) else HIDDEN
        layers_xyz.append(linear(next(keys), din, HIDDEN))
    params["layers_xyz"] = layers_xyz
    params["fc_feat"] = linear(next(keys), HIDDEN, HIDDEN)
    params["fc_alpha"] = linear(next(keys), HIDDEN, 1)
    params["layer_dir0"] = linear(next(keys), DIM_DIR + HIDDEN, HIDDEN // 2)
    params["fc_rgb"] = linear(next(keys), HIDDEN // 2, 3)
    return params


# ---- Pack all parameters into two VMEM slabs --------------------------------
def pack_params(params):
    """WP (928,128) bf16: all matmul weights (unused rows zero-padded so the
       raw 66-lane input is reused as-is).  BP (8,128) f32: all biases + the
       fc_alpha weight row + the [rgb|alpha] output bias."""
    for i in range(N_XYZ_LAYERS):
        if _is_skip(i):
            # TODO(synk): packed layout below assumes the default no-skip config.
            raise NotImplementedError("skip-connection layers not packed")

    w1, b1 = params["layer1"]                  # (39,128), (1,128)
    wf, bf_ = params["fc_feat"]                # (128,128), (1,128)
    wa, ba = params["fc_alpha"]                # (128,1), (1,1)
    wd, bd = params["layer_dir0"]              # (155,64), (1,64)
    wr, br = params["fc_rgb"]                  # (64,3), (1,3)

    def pad(a, rows, cols=LANES):
        return jnp.pad(a, ((0, rows - a.shape[0]), (0, cols - a.shape[1])))

    # layer1: rows 0:39 = W, rows 39:66 (the view lanes of x) = 0, pad to 80
    segs = [pad(w1, SEG_L1)]
    segs += [w for (w, _) in params["layers_xyz"]]            # 3x (128,128)
    segs += [wf]                                              # (128,128)
    # layer_dir0 fused for LHS = [feat(128) | xyz(39) | view(27)]:
    # rows 0:128 = feat part, 128:167 = 0 (kill xyz), 167:194 = view part
    wd_fused = jnp.concatenate(
        [wd[:HIDDEN], jnp.zeros((DIM_XYZ, HIDDEN // 2), wd.dtype), wd[HIDDEN:]],
        axis=0)                                               # (194,64)
    segs += [pad(wd_fused, SEG_DIR)]                          # (208,128)
    segs += [pad(wr, HIDDEN)]                                 # (128,128)
    wp = jnp.concatenate(segs, axis=0).astype(jnp.bfloat16)
    assert wp.shape == (R_END, LANES)

    bp = jnp.zeros((8, LANES), jnp.float32)
    bp = bp.at[B_L1].set(b1[0])
    for i, (_, b) in enumerate(params["layers_xyz"]):
        bp = bp.at[B_X0 + i].set(b[0])
    bp = bp.at[B_FEAT].set(bf_[0])
    bp = bp.at[B_DIR, :HIDDEN // 2].set(bd[0])
    bp = bp.at[B_ALPHA_W].set(wa[:, 0])                       # fc_alpha W^T
    bp = bp.at[B_OUT, :DIM_OUT].set(jnp.concatenate([br[0], ba[0]]))
    return wp, bp


# ---- Pallas kernel -----------------------------------------------------------
def nerf_kernel(x_ref, wp_ref, bp_ref, o_ref):
    relu = lambda v: jnp.maximum(v, 0.0)
    bf16 = jnp.bfloat16

    def mm(a, r0, k):
        # bf16 MXU matmul against a static, aligned slice of the weight slab
        return jnp.dot(a, wp_ref[r0:r0 + k, :], preferred_element_type=jnp.float32)

    def bias(r):
        return bp_ref[r:r + 1, :]                             # (1,128) f32

    xb = x_ref[...].astype(bf16)                              # (tm,66) [xyz|view]

    # layer1 (no relu — matches the reference); view lanes hit zero weight rows
    h = mm(xb, R_L1, DIM_IN) + bias(B_L1)                     # (tm,128) f32

    # layers_xyz (skip never triggers at the default config)
    h = relu(mm(h.astype(bf16), R_X0, HIDDEN) + bias(B_X0))
    h = relu(mm(h.astype(bf16), R_X1, HIDDEN) + bias(B_X1))
    h = relu(mm(h.astype(bf16), R_X2, HIDDEN) + bias(B_X2))

    # viewdirs head
    feat = relu(mm(h.astype(bf16), R_FEAT, HIDDEN) + bias(B_FEAT))   # (tm,128)
    # fc_alpha (128->1): VPU multiply + XLU lane reduce, off the MXU chain
    alpha = jnp.sum(h * bias(B_ALPHA_W), axis=-1, keepdims=True)     # (tm,1)

    # layers_dir[0] as a single K=194 matmul; concat boundary is at lane 128
    d_lhs = jnp.concatenate([feat.astype(bf16), xb], axis=-1)        # (tm,194)
    d = relu(mm(d_lhs, R_DIR, HIDDEN + DIM_IN) + bias(B_DIR))        # lanes 64:=0

    # fc_rgb (col-padded to 128 lanes; lanes 3:127 of the result are 0)
    rgb = mm(d.astype(bf16), R_RGB, HIDDEN)                          # (tm,128)

    # epilogue without lane concat: drop alpha into lane 3 via an iota select
    lane = lax.broadcasted_iota(jnp.int32, rgb.shape, 1)
    out = rgb + jnp.where(lane == DIM_OUT - 1, alpha, 0.0) + bias(B_OUT)
    o_ref[...] = out[:, :DIM_OUT]


# ---- Wrapper -----------------------------------------------------------------
def _choose_tile(n, tm_max=4096):
    """Row tile: large to amortize ~0.35us/step overhead; >=2 (even) grid
    steps whenever n > 512 so both v7x TensorCores get work; sized from
    cdiv(n, steps) so pad waste in the masked edge block stays < 16 rows."""
    if n <= 512:
        return n                       # single step; block == full row extent
    steps = max(2, pl.cdiv(n, tm_max))
    if steps % 2:
        steps += 1
    return _round_up(pl.cdiv(n, steps), 16)


def flexible_nerf_forward(x, packed, tm_max=4096):
    """x: (N, 66) float32  ->  (N, 4) float32  [rgb(3), alpha(1)]."""
    wp, bp = packed
    n, din = x.shape
    assert din == DIM_IN

    tm = _choose_tile(n, tm_max)
    grid = pl.cdiv(n, tm)

    flops_per_row = 2 * (DIM_IN * HIDDEN + 5 * HIDDEN * HIDDEN
                         + (HIDDEN + DIM_IN) * HIDDEN + HIDDEN)
    cost = pl.CostEstimate(
        flops=flops_per_row * grid * tm,
        transcendentals=0,
        bytes_accessed=n * DIM_IN * 4 + wp.size * 2 + bp.size * 4
                       + n * DIM_OUT * 4,
    )

    return pl.pallas_call(
        nerf_kernel,
        out_shape=jax.ShapeDtypeStruct((n, DIM_OUT), jnp.float32),
        grid_spec=pltpu.PrefetchScalarGridSpec(
            num_scalar_prefetch=0,
            grid=(grid,),
            in_specs=[
                # raw input rows, DMA'd straight from HBM (66 == full last dim)
                pl.BlockSpec((tm, DIM_IN), lambda i: (i, 0)),
                # packed weights: constant block index -> DMA'd once, VMEM-resident
                pl.BlockSpec(wp.shape, lambda i: (0, 0)),
                pl.BlockSpec(bp.shape, lambda i: (0, 0)),
            ],
            out_specs=pl.BlockSpec((tm, DIM_OUT), lambda i: (i, 0)),
        ),
        compiler_params=pltpu.CompilerParams(
            dimension_semantics=("parallel",),
            vmem_limit_bytes=48 * 1024 * 1024),
        cost_estimate=cost,
    )(x, wp, bp)


# ---- Pure-JAX reference (exact module semantics, f32) ------------------------
def reference_forward(x, params):
    relu = lambda v: jnp.maximum(v, 0.0)
    xyz, view = x[:, :DIM_XYZ], x[:, DIM_XYZ:]
    w1, b1 = params["layer1"]
    h = xyz @ w1 + b1
    for i, (w, b) in enumerate(params["layers_xyz"]):
        if _is_skip(i):
            h = jnp.concatenate([h, xyz], axis=-1)
        h = relu(h @ w + b)
    wf, bf_ = params["fc_feat"]
    feat = relu(h @ wf + bf_)
    wa, ba = params["fc_alpha"]
    alpha = h @ wa + ba
    wd, bd = params["layer_dir0"]
    d = relu(jnp.concatenate([feat, view], axis=-1) @ wd + bd)
    wr, br = params["fc_rgb"]
    rgb = d @ wr + br
    return jnp.concatenate([rgb, alpha], axis=-1)


if __name__ == "__main__":
    key = jax.random.PRNGKey(0)
    kp, kx = jax.random.split(key)
    params = init_params(kp)
    packed = pack_params(params)

    # Small N; > 512 so the grid has 2 steps, and not a tile multiple so the
    # masked edge-block (ragged N) path is exercised.
    N = 600
    x = jax.random.normal(kx, (N, DIM_IN), jnp.float32)

    out = jax.block_until_ready(flexible_nerf_forward(x, packed))

    with jax.default_matmul_precision("highest"):
        ref = reference_forward(x, params)

    assert out.shape == (N, DIM_OUT)
    err = float(jnp.max(jnp.abs(out - ref)))
    # bf16 MXU matmuls (f32 accumulation) vs an f32 reference: allow bf16 drift.
    assert jnp.allclose(out, ref, atol=2e-2, rtol=2e-2), err
    print("KERNEL_OK")
</pallas_src>

<mosaic_0001>
module attributes {stable_mosaic.version = 11 : i64} {
  func.func @nerf_kernel(%arg0: i32, %arg1: memref<304x66xf32, #tpu.memory_space<vmem>>, %arg2: memref<928x128xbf16, #tpu.memory_space<vmem>>, %arg3: memref<8x128xf32, #tpu.memory_space<vmem>>, %arg4: memref<304x4xf32, #tpu.memory_space<vmem>>) attributes {dimension_semantics = [#tpu.dimension_semantics<parallel>], iteration_bounds = array<i64: 2>, scalar_prefetch = 0 : i64, scratch_operands = 0 : i64, tpu.core_type = #tpu.core_type<tc>, window_params = [{transform_indices = @transform_0, window_bounds = array<i64: 304, 66>}, {pipeline_mode = #tpu.pipeline_mode<synchronous>, transform_indices = @transform_1, window_bounds = array<i64: 928, 128>}, {pipeline_mode = #tpu.pipeline_mode<synchronous>, transform_indices = @transform_2, window_bounds = array<i64: 8, 128>}, {transform_indices = @transform_3, window_bounds = array<i64: 304, 4>}]} {
    %c0 = arith.constant 0 : index
    %c0_0 = arith.constant 0 : index
    %0 = vector.load %arg1[%c0, %c0_0] : memref<304x66xf32, #tpu.memory_space<vmem>>, vector<304x66xf32>
    %1 = arith.truncf %0 : vector<304x66xf32> to vector<304x66xbf16>
    %c0_1 = arith.constant 0 : index
    %c0_2 = arith.constant 0 : index
    %2 = vector.load %arg2[%c0_1, %c0_2] : memref<928x128xbf16, #tpu.memory_space<vmem>>, vector<66x128xbf16>
    %cst = arith.constant dense<0.000000e+00> : vector<304x128xf32>
    %3 = tpu.matmul %1, %2, %cst {dimension_numbers = #tpu.dot_dimension_numbers<[1], [0], [0], [1], [0, 0, 1, 1], [], []>} : vector<304x66xbf16>, vector<66x128xbf16>, vector<304x128xf32> -> vector<304x128xf32>
    %c0_3 = arith.constant 0 : index
    %c0_4 = arith.constant 0 : index
    %4 = vector.load %arg3[%c0_3, %c0_4] : memref<8x128xf32, #tpu.memory_space<vmem>>, vector<1x128xf32>
    %5 = vector.broadcast %4 : vector<1x128xf32> to vector<304x128xf32>
    %6 = arith.addf %3, %5 : vector<304x128xf32>
    %7 = arith.truncf %6 : vector<304x128xf32> to vector<304x128xbf16>
    %c80 = arith.constant 80 : index
    %c0_5 = arith.constant 0 : index
    %8 = vector.load %arg2[%c80, %c0_5] : memref<928x128xbf16, #tpu.memory_space<vmem>>, vector<128x128xbf16>
    %cst_6 = arith.constant dense<0.000000e+00> : vector<304x128xf32>
    %9 = tpu.matmul %7, %8, %cst_6 {dimension_numbers = #tpu.dot_dimension_numbers<[1], [0], [0], [1], [0, 0, 1, 1], [], []>} : vector<304x128xbf16>, vector<128x128xbf16>, vector<304x128xf32> -> vector<304x128xf32>
    %c1 = arith.constant 1 : index
    %c0_7 = arith.constant 0 : index
    %10 = vector.load %arg3[%c1, %c0_7] : memref<8x128xf32, #tpu.memory_space<vmem>>, vector<1x128xf32>
    %11 = vector.broadcast %10 : vector<1x128xf32> to vector<304x128xf32>
    %12 = arith.addf %9, %11 : vector<304x128xf32>
    %cst_8 = arith.constant 0.000000e+00 : f32
    %13 = vector.broadcast %cst_8 : f32 to vector<304x128xf32>
    %14 = arith.maximumf %12, %13 : vector<304x128xf32>
    %15 = arith.truncf %14 : vector<304x128xf32> to vector<304x128xbf16>
    %c208 = arith.constant 208 : index
    %c0_9 = arith.constant 0 : index
    %16 = vector.load %arg2[%c208, %c0_9] : memref<928x128xbf16, #tpu.memory_space<vmem>>, vector<128x128xbf16>
    %cst_10 = arith.constant dense<0.000000e+00> : vector<304x128xf32>
    %17 = tpu.matmul %15, %16, %cst_10 {dimension_numbers = #tpu.dot_dimension_numbers<[1], [0], [0], [1], [0, 0, 1, 1], [], []>} : vector<304x128xbf16>, vector<128x128xbf16>, vector<304x128xf32> -> vector<304x128xf32>
    %c2 = arith.constant 2 : index
    %c0_11 = arith.constant 0 : index
    %18 = vector.load %arg3[%c2, %c0_11] : memref<8x128xf32, #tpu.memory_space<vmem>>, vector<1x128xf32>
    %19 = vector.broadcast %18 : vector<1x128xf32> to vector<304x128xf32>
    %20 = arith.addf %17, %19 : vector<304x128xf32>
    %cst_12 = arith.constant 0.000000e+00 : f32
    %21 = vector.broadcast %cst_12 : f32 to vector<304x128xf32>
    %22 = arith.maximumf %20, %21 : vector<304x128xf32>
    %23 = arith.truncf %22 : vector<304x128xf32> to vector<304x128xbf16>
    %c336 = arith.constant 336 : index
    %c0_13 = arith.constant 0 : index
    %24 = vector.load %arg2[%c336, %c0_13] : memref<928x128xbf16, #tpu.memory_space<vmem>>, vector<128x128xbf16>
    %cst_14 = arith.constant dense<0.000000e+00> : vector<304x128xf32>
    %25 = tpu.matmul %23, %24, %cst_14 {dimension_numbers = #tpu.dot_dimension_numbers<[1], [0], [0], [1], [0, 0, 1, 1], [], []>} : vector<304x128xbf16>, vector<128x128xbf16>, vector<304x128xf32> -> vector<304x128xf32>
    %c3 = arith.constant 3 : index
    %c0_15 = arith.constant 0 : index
    %26 = vector.load %arg3[%c3, %c0_15] : memref<8x128xf32, #tpu.memory_space<vmem>>, vector<1x128xf32>
    %27 = vector.broadcast %26 : vector<1x128xf32> to vector<304x128xf32>
    %28 = arith.addf %25, %27 : vector<304x128xf32>
    %cst_16 = arith.constant 0.000000e+00 : f32
    %29 = vector.broadcast %cst_16 : f32 to vector<304x128xf32>
    %30 = arith.maximumf %28, %29 : vector<304x128xf32>
    %31 = arith.truncf %30 : vector<304x128xf32> to vector<304x128xbf16>
    %c464 = arith.constant 464 : index
    %c0_17 = arith.constant 0 : index
    %32 = vector.load %arg2[%c464, %c0_17] : memref<928x128xbf16, #tpu.memory_space<vmem>>, vector<128x128xbf16>
    %cst_18 = arith.constant dense<0.000000e+00> : vector<304x128xf32>
    %33 = tpu.matmul %31, %32, %cst_18 {dimension_numbers = #tpu.dot_dimension_numbers<[1], [0], [0], [1], [0, 0, 1, 1], [], []>} : vector<304x128xbf16>, vector<128x128xbf16>, vector<304x128xf32> -> vector<304x128xf32>
    %c4 = arith.constant 4 : index
    %c0_19 = arith.constant 0 : index
    %34 = vector.load %arg3[%c4, %c0_19] : memref<8x128xf32, #tpu.memory_space<vmem>>, vector<1x128xf32>
    %35 = vector.broadcast %34 : vector<1x128xf32> to vector<304x128xf32>
    %36 = arith.addf %33, %35 : vector<304x128xf32>
    %cst_20 = arith.constant 0.000000e+00 : f32
    %37 = vector.broadcast %cst_20 : f32 to vector<304x128xf32>
    %38 = arith.maximumf %36, %37 : vector<304x128xf32>
    %c6 = arith.constant 6 : index
    %c0_21 = arith.constant 0 : index
    %39 = vector.load %arg3[%c6, %c0_21] : memref<8x128xf32, #tpu.memory_space<vmem>>, vector<1x128xf32>
    %40 = vector.broadcast %39 : vector<1x128xf32> to vector<304x128xf32>
    %41 = arith.mulf %30, %40 : vector<304x128xf32>
    %cst_22 = arith.constant dense<0.000000e+00> : vector<304xf32>
    %42 = vector.multi_reduction <add>, %41, %cst_22 [1] : vector<304x128xf32> to vector<304xf32>
    %43 = vector.shape_cast %42 : vector<304xf32> to vector<304x1xf32>
    %44 = arith.truncf %38 : vector<304x128xf32> to vector<304x128xbf16>
    %45 = tpu.concatenate %44, %1 in 1 : vector<304x128xbf16>, vector<304x66xbf16> -> vector<304x194xbf16>
    %c592 = arith.constant 592 : index
    %c0_23 = arith.constant 0 : index
    %46 = vector.load %arg2[%c592, %c0_23] : memref<928x128xbf16, #tpu.memory_space<vmem>>, vector<194x128xbf16>
    %cst_24 = arith.constant dense<0.000000e+00> : vector<304x128xf32>
    %47 = tpu.matmul %45, %46, %cst_24 {dimension_numbers = #tpu.dot_dimension_numbers<[1], [0], [0], [1], [0, 0, 1, 1], [], []>} : vector<304x194xbf16>, vector<194x128xbf16>, vector<304x128xf32> -> vector<304x128xf32>
    %c5 = arith.constant 5 : index
    %c0_25 = arith.constant 0 : index
    %48 = vector.load %arg3[%c5, %c0_25] : memref<8x128xf32, #tpu.memory_space<vmem>>, vector<1x128xf32>
    %49 = vector.broadcast %48 : vector<1x128xf32> to vector<304x128xf32>
    %50 = arith.addf %47, %49 : vector<304x128xf32>
    %cst_26 = arith.constant 0.000000e+00 : f32
    %51 = vector.broadcast %cst_26 : f32 to vector<304x128xf32>
    %52 = arith.maximumf %50, %51 : vector<304x128xf32>
    %53 = arith.truncf %52 : vector<304x128xf32> to vector<304x128xbf16>
    %c800 = arith.constant 800 : index
    %c0_27 = arith.constant 0 : index
    %54 = vector.load %arg2[%c800, %c0_27] : memref<928x128xbf16, #tpu.memory_space<vmem>>, vector<128x128xbf16>
    %cst_28 = arith.constant dense<0.000000e+00> : vector<304x128xf32>
    %55 = tpu.matmul %53, %54, %cst_28 {dimension_numbers = #tpu.dot_dimension_numbers<[1], [0], [0], [1], [0, 0, 1, 1], [], []>} : vector<304x128xbf16>, vector<128x128xbf16>, vector<304x128xf32> -> vector<304x128xf32>
    %56 = tpu.iota {dimensions = array<i32: 1>} : vector<304x128xi32>
    %c3_i32 = arith.constant 3 : i32
    %57 = vector.broadcast %c3_i32 : i32 to vector<304x128xi32>
    %58 = arith.cmpi eq, %56, %57 : vector<304x128xi32>
    %cst_29 = arith.constant 0.000000e+00 : f32
    %59 = vector.shape_cast %43 : vector<304x1xf32> to vector<304x1xf32>
    %60 = vector.broadcast %59 : vector<304x1xf32> to vector<304x128xf32>
    %61 = vector.broadcast %cst_29 : f32 to vector<304x128xf32>
    %62 = arith.select %58, %60, %61 : vector<304x128xi1>, vector<304x128xf32>
    %63 = arith.addf %55, %62 : vector<304x128xf32>
    %c7 = arith.constant 7 : index
    %c0_30 = arith.constant 0 : index
    %64 = vector.load %arg3[%c7, %c0_30] : memref<8x128xf32, #tpu.memory_space<vmem>>, vector<1x128xf32>
    %65 = vector.broadcast %64 : vector<1x128xf32> to vector<304x128xf32>
    %66 = arith.addf %63, %65 : vector<304x128xf32>
    %67 = vector.extract_strided_slice %66 {offsets = [0, 0], sizes = [304, 4], strides = [1, 1]} : vector<304x128xf32> to vector<304x4xf32>
    %c0_31 = arith.constant 0 : index
    %c0_32 = arith.constant 0 : index
    %68 = vector.load %arg4[%c0_31, %c0_32] : memref<304x4xf32, #tpu.memory_space<vmem>>, vector<304x4xf32>
    tpu.vector_store %arg4[%c0_31, %c0_32], %67 {strides = array<i32>} : memref<304x4xf32, #tpu.memory_space<vmem>>, vector<304x4xf32>,
    return
  }
  func.func @transform_0(%arg0: i32) -> (i32, i32) {
    %c0_i32 = arith.constant 0 : i32
    %c0_i32_0 = arith.constant 0 : i32
    return %arg0, %c0_i32 : i32, i32
  }
  func.func @transform_1(%arg0: i32) -> (i32, i32) {
    %c0_i32 = arith.constant 0 : i32
    %c0_i32_0 = arith.constant 0 : i32
    %c0_i32_1 = arith.constant 0 : i32
    return %c0_i32, %c0_i32_0 : i32, i32
  }
  func.func @transform_2(%arg0: i32) -> (i32, i32) {
    %c0_i32 = arith.constant 0 : i32
    %c0_i32_0 = arith.constant 0 : i32
    %c0_i32_1 = arith.constant 0 : i32
    return %c0_i32, %c0_i32_0 : i32, i32
  }
  func.func @transform_3(%arg0: i32) -> (i32, i32) {
    %c0_i32 = arith.constant 0 : i32
    %c0_i32_0 = arith.constant 0 : i32
    return %arg0, %c0_i32 : i32, i32
  }
}

</mosaic_0001>

<bundles_post_ra>
// kernel: tpu_custom_call.1
= control target key start
LH: loop header
LB: loop body
LE: loop exit
PB: predicated region body
PF: predicated region fallthrough
CT: control target
= control target key end

     0   :  { %s4110_s12 = smov 0   ;;  %s4112_s13 = smov 0   ;;  %s5476_s0 = inlined_call_operand.vmem [shape: f32[600,66], index: 0, kind: input, shape index: {}]   ;;  %s5477_s1 = inlined_call_operand.vmem [shape: bf16[928,128], index: 1, kind: input, shape index: {}]   ;;  %s5478_s2 = inlined_call_operand.vmem [shape: f32[8,128], index: 2, kind: input, shape index: {}]   ;;  %s5479_s3 = inlined_call_operand.vmem [shape: f32[600,4], index: 3, kind: output, shape index: {}]  }
   0x1   :  { %s4114_s14 = smov 0  }
   0x2 LB: > { %s4123_s15 = sadd.s32 4294967295, %s4053_s14   ;;  %s4125_s16 = sadd.s32 1, %s4053_s14   ;;  %s4053_s14 = sphi %s4114_s14, %s5488_s14   ;;  %s4049_s13 = sphi %s4112_s13, %s5487_s13   ;;  %s4045_s12 = sphi %s4110_s12, %s5486_s12  }
   0x3   : > { %s85_s17 = ssub.s32 %s4053_s14, %s4125_s16  ;;  %s88_s18 = sadd.s32 1, %s4049_s13 }
   0x4   : > { %p86_p0 = scmp.eq.s32.totalorder %s85_s17, 0  ;;  %p98_p1 = scmp.ne.s32.totalorder %s4049_s13, %s4045_s12 }
   0x5   : > { %p99_p2 = scmp.eq.s32.totalorder %s4123_s15, 1  ;;  %p3010_p3 = scmp.ge.s32.totalorder %s4053_s14, 1 }
   0x6   : > { %s4133_s19 = scalar_select %p86_p0, %s4049_s13, %s88_s18  }
   0x7   : > { %p4135_p4 = por %p99_p2, %p98_p1  ;;  %p146_p5 = scmp.lt.s32.totalorder %s4053_s14, 3 }
   0x9   : > { %p147_p6 = pnand %p3010_p3, %p146_p5 }
   0xa   : > { %v3937_v0 = vld [vmem:[%s5477_s1] sm:$0xff] (!%p147_p6)   ;;  %v4087_v1 = vmov (!%p147_p6), 0.0   ;;  %v3938_v2 = vld [vmem:[%s5477_s1 + $0x8] sm:$0xff] (!%p147_p6)   ;;  %vm4088_vm0 = vmmov (!%p147_p6), 0   ;;  %s4151_s25 = smul.u32 (!%p147_p6), 38, %s4123_s15  ;;  %v3939_v3 = vld [vmem:[%s5477_s1 + $0x10] sm:$0xff] (!%p147_p6)  }
   0xb   : > { %150 = sbr.rel (%p147_p6) target bundleno = 1783 (0x6f7), region = 32  ;;  %3288 = vmatprep.subr.bf16.mxu0 (!%p147_p6), %v4087_v1  ;;  %3834 = vmatprep.subr.bf16.mxu1 (!%p147_p6), %v4087_v1  ;;  %v3940_v4 = vld [vmem:[%s5477_s1 + $0x18] sm:$0xff] (!%p147_p6)   ;;  %v3941_v5 = vld [vmem:[%s5477_s1 + $0x20] ss:$0 sps:$4 sm:$0x11] (!%p147_p6)   ;;  %vm349_vm1 = vcmask (!%p147_p6), 1040384  }
   0xc   : > { %3289 = vmatpush3.bf16.msra.mxu0 (!%p147_p6), %v3937_v0  ;;  %3839 = vmatpush3.bf16.msra.mxu1 (!%p147_p6), %v3937_v0  ;;  %p178_p7 = scmp.lt.s32.totalorder (!%p147_p6), %s4151_s25, 74  ;;  %v351_v8 = vsel (!%p147_p6), %vm349_vm1, %v3941_v5, 0  ;;  %vm291_vm2 = vcmask (!%p147_p6), 539648   ;;  %v3942_v13 = vld [vmem:[%s5477_s1 + $0x28] sm:$0xff] (!%p147_p6)   ;;  %v3943_v18 = vld [vmem:[%s5477_s1 + $0x30] sm:$0xff] (!%p147_p6)   ;;  %v3944_v21 = vld [vmem:[%s5477_s1 + $0x38] sm:$0xff] (!%p147_p6)  }
   0xd   : > { %3290 = vmatprep.subr.bf16.mxu0 (!%p147_p6), %v4087_v1  ;;  %3298 = vmatprep.mubr.msk.bf16.mxu0 (!%p147_p6), %vm4088_vm0, %v4087_v1  ;;  %v3945_v26 = vld [vmem:[%s5477_s1 + $0x40] sm:$0xff] (!%p147_p6)   ;;  %v3946_v29 = vld [vmem:[%s5477_s1 + $0x48] sm:$0xff] (!%p147_p6)   ;;  %v3947_v34 = vld [vmem:[%s5477_s1 + $0x50] sm:$0xff] (!%p147_p6)   ;;  %s170_s10 = sand.u32 (!%p147_p6), 1, %s4045_s12   ;;  %vm2603_vm4 = vcmask (!%p147_p6), 31744  }
   0xe   : > { %3835 = vmatprep.subr.bf16.mxu1 (!%p147_p6), %v4087_v1  ;;  %3338 = vmatprep.mubr.msk.bf16.mxu1 (!%p147_p6), %vm4088_vm0, %v4087_v1  ;;  %v3948_v37 = vld [vmem:[%s5477_s1 + $0x58] sm:$0xff] (!%p147_p6)   ;;  %v3949_v42 = vld [vmem:[%s5477_s1 + $0x60] sm:$0xff] (!%p147_p6)   ;;  %s3844_s11 = smul.u32 (!%p147_p6), 304, %s170_s10 }
  0x10   : > { %3291 = vmatpush3.bf16.msra.mxu0 (!%p147_p6), %v3938_v2  ;;  %3840 = vmatpush3.bf16.msra.mxu1 (!%p147_p6), %v3938_v2  ;;  %s5140_s12 = scalar_lea.vmem (!%p147_p6), [#allocation2], %s3844_s11  }
  0x11   : > { %3292 = vmatprep.subr.bf16.mxu0 (!%p147_p6), %v4087_v1  ;;  %3836 = vmatprep.subr.bf16.mxu1 (!%p147_p6), %v4087_v1 }
  0x12   : > { %s179_s28 = scalar_select %p178_p7, %s4151_s25, 74 }
  0x13   : > { %s2650_s18 = ssub.s32 (%p4135_p4), 75, %s4151_s25  ;;  %s3128_s21 = smul.u32 (%p4135_p4), 304, %s4123_s15 }
  0x14   : > { %s3011_s29 = sshll.u32 %s179_s28, 3  ;;  %3293 = vmatpush3.bf16.msra.mxu0 %v3939_v3  ;;  %3841 = vmatpush3.bf16.msra.mxu1 %v3939_v3  ;;  %p2651_p8 = scmp.lt.s32.totalorder (%p4135_p4), %s2650_s18, 38 }
  0x15   : > { %3294 = vmatprep.subr.bf16.mxu0 %v4087_v1  ;;  %s4173_s9 = scalar_lea.vmem %s5476_s0, %s3011_s29  ;;  %3837 = vmatprep.subr.bf16.mxu1 %v4087_v1  ;;  %s5334_s24 = scalar_lea.vmem (%p4135_p4), %s5479_s3, %s3128_s21  }
  0x16   : > { %v193_v6 = vld [vmem:[%s4173_s9] sm:$0xff]  ;;  %v194_v7 = vld [vmem:[%s4173_s9 + $0x8] sm:$0xff]  ;;  %v195_v14 = vld [vmem:[%s4173_s9 + $0x10] sm:$0xff] }
  0x17   : > { %v4181_v9 = vpack.c.bf16 %v194_v7, %v193_v6  ;;  %v213_v10 = vld [vmem:[%s4173_s9 + $0xa0] sm:$0xff]  ;;  %v214_v11 = vld [vmem:[%s4173_s9 + $0xa8] sm:$0xff]  ;;  %v196_v15 = vld [vmem:[%s4173_s9 + $0x18] sm:$0xff] }
  0x18   : > { %3295 = vmatpush3.bf16.msra.mxu0 %v3940_v4  ;;  %3842 = vmatpush3.bf16.msra.mxu1 %v3940_v4  ;;  %v4185_v12 = vpack.c.bf16 %v214_v11, %v213_v10  ;;  %v215_v16 = vld [vmem:[%s4173_s9 + $0xb0] sm:$0xff]  ;;  %v216_v17 = vld [vmem:[%s4173_s9 + $0xb8] sm:$0xff]  ;;  %v4208_v19 = vpack.c.bf16 %v196_v15, %v195_v14  ;;  %v197_v22 = vld [vmem:[%s4173_s9 + $0x20] sm:$0xff] }
  0x19   : > { %3296 = vmatprep.subr.bf16.mxu0 %v4087_v1  ;;  %3838 = vmatprep.subr.bf16.mxu1 %v4087_v1  ;;  %v4210_v20 = vpack.c.bf16 %v216_v17, %v215_v16  ;;  %v198_v23 = vld [vmem:[%s4173_s9 + $0x28] sm:$0xff]  ;;  %v217_v24 = vld [vmem:[%s4173_s9 + $0xc0] sm:$0xff]  ;;  %v199_v30 = vld [vmem:[%s4173_s9 + $0x30] sm:$0xff] }
  0x1a   : > { %v218_v25 = vld [vmem:[%s4173_s9 + $0xc8] sm:$0xff]  ;;  %v4232_v27 = vpack.c.bf16 %v198_v23, %v197_v22  ;;  %v200_v31 = vld [vmem:[%s4173_s9 + $0x38] sm:$0xff]  ;;  %v219_v32 = vld [vmem:[%s4173_s9 + $0xd0] sm:$0xff] }
  0x1b   : > { %v4234_v28 = vpack.c.bf16 %v218_v25, %v217_v24  ;;  %v220_v33 = vld [vmem:[%s4173_s9 + $0xd8] sm:$0xff]  ;;  %v4256_v35 = vpack.c.bf16 %v200_v31, %v199_v30  ;;  %v201_v38 = vld [vmem:[%s4173_s9 + $0x40] sm:$0xff]  ;;  %v202_v39 = vld [vmem:[%s4173_s9 + $0x48] sm:$0xff] }
  0x1c   : > { %3297 = vmatpush3.bf16.msra.mxu0 %v351_v8  ;;  %3843 = vmatpush3.bf16.msra.mxu1 %v351_v8  ;;  %v4258_v36 = vpack.c.bf16 %v220_v33, %v219_v32  ;;  %v221_v40 = vld [vmem:[%s4173_s9 + $0xe0] sm:$0xff]  ;;  %v222_v41 = vld [vmem:[%s4173_s9 + $0xe8] sm:$0xff]  ;;  %v4280_v43 = vpack.c.bf16 %v202_v39, %v201_v38  ;;  %v203_v45 = vld [vmem:[%s4173_s9 + $0x50] sm:$0xff] }
  0x1d   : > { %3374 = vmatprep.subr.bf16.mxu1 %v4087_v1  ;;  %3466 = vmatprep.subr.bf16.mxu0 %v4087_v1  ;;  %v4282_v44 = vpack.c.bf16 %v222_v41, %v221_v40  ;;  %v204_v46 = vld [vmem:[%s4173_s9 + $0x58] sm:$0xff]  ;;  %v223_v47 = vld [vmem:[%s4173_s9 + $0xf0] sm:$0xff]  ;;  %v205_v51 = vld [vmem:[%s4173_s9 + $0x60] sm:$0xff] }
  0x1e   : > { %v224_v48 = vld [vmem:[%s4173_s9 + $0xf8] sm:$0xff]  ;;  %v4297_v49 = vpack.c.bf16 %v204_v46, %v203_v45  ;;  %v206_v52 = vld [vmem:[%s4173_s9 + $0x68] sm:$0xff]  ;;  %v225_v53 = vld [vmem:[%s4173_s9 + $0x100] sm:$0xff] }
  0x1f   : > { %3299 = vmatmul.mubr.msk.bf16.vlgmr.msra.gmra.mrb[0].mxu0 %vm291_vm2, %v4181_v9  ;;  %3339 = vmatmul.mubr.msk.bf16.vlgmr.msra.gmra.mrb[0].mxu1 %vm291_vm2, %v4185_v12  ;;  %v4299_v50 = vpack.c.bf16 %v224_v48, %v223_v47  ;;  %v226_v54 = vld [vmem:[%s4173_s9 + $0x108] sm:$0xff]  ;;  %v4313_v55 = vpack.c.bf16 %v206_v52, %v205_v51  ;;  %v207_v57 = vld [vmem:[%s4173_s9 + $0x70] sm:$0xff]  ;;  %v208_v58 = vld [vmem:[%s4173_s9 + $0x78] sm:$0xff] }
  0x20   : > { %3302 = vmatprep.mubr.msk.bf16.mxu0 %vm4088_vm0, %v4087_v1  ;;  %3342 = vmatprep.mubr.msk.bf16.mxu1 %vm4088_vm0, %v4087_v1  ;;  %v4315_v56 = vpack.c.bf16 %v226_v54, %v225_v53  ;;  %v227_v59 = vld [vmem:[%s4173_s9 + $0x110] sm:$0xff]  ;;  %v228_v60 = vld [vmem:[%s4173_s9 + $0x118] sm:$0xff]  ;;  %v4329_v61 = vpack.c.bf16 %v208_v58, %v207_v57  ;;  %v209_v63 = vld [vmem:[%s4173_s9 + $0x80] sm:$0xff] }
  0x21   : > { %3375 = vmatpush3.bf16.msra.mxu1 %v3942_v13  ;;  %v4331_v62 = vpack.c.bf16 %v228_v60, %v227_v59  ;;  %v210_v0 = vld [vmem:[%s4173_s9 + $0x88] sm:$0xff]  ;;  %v229_v2 = vld [vmem:[%s4173_s9 + $0x120] sm:$0xff]  ;;  %v211_v6 = vld [vmem:[%s4173_s9 + $0x90] sm:$0xff] }
  0x22   : > { %3376 = vmatprep.subr.bf16.mxu1 %v4087_v1  ;;  %v230_v3 = vld [vmem:[%s4173_s9 + $0x128] sm:$0xff]  ;;  %v4345_v4 = vpack.c.bf16 %v210_v0, %v209_v63  ;;  %v212_v7 = vld [vmem:[%s4173_s9 + $0x98] sm:$0xff]  ;;  %v4368_v10 = vld [vmem:[%s5478_s2] ss:$0 sm:$0xff] }
  0x23   : > { %v4347_v5 = vpack.c.bf16 %v230_v3, %v229_v2  ;;  %v4359_v8 = vpack.c.bf16 %v212_v7, %v211_v6  ;;  %v3950_v48 = vld [vmem:[%s5477_s1 + $0x68] sm:$0xff]  }
  0x24   : > { %3467 = vmatpush3.bf16.msra.mxu0 %v3950_v48  ;;  %v3954_v48 = vld [vmem:[%s5477_s1 + $0x88] sm:$0xff]  }
  0x25   : > { %3377 = vmatpush3.bf16.msra.mxu1 %v3943_v18  ;;  %3468 = vmatprep.subr.bf16.mxu0 %v4087_v1 }
  0x26   : > { %3378 = vmatprep.subr.bf16.mxu1 %v4087_v1 }
  0x27   : > { %3303 = vmatmul.mubr.msk.bf16.gmra.mrb[4].mxu0 %vm291_vm2, %v4208_v19  ;;  %3343 = vmatmul.mubr.msk.bf16.gmra.mrb[4].mxu1 %vm291_vm2, %v4210_v20 }
  0x28   : > { %3306 = vmatprep.mubr.msk.bf16.mxu0 %vm4088_vm0, %v4087_v1  ;;  %3346 = vmatprep.mubr.msk.bf16.mxu1 %vm4088_vm0, %v4087_v1 }
  0x29   : > { %3379 = vmatpush3.bf16.msra.mxu1 %v3944_v21 }
  0x2a   : > { %3380 = vmatprep.subr.bf16.mxu1 %v4087_v1 }
  0x2d   : > { %3381 = vmatpush3.bf16.msra.mxu1 %v3945_v26 }
  0x2e   : > { %3382 = vmatprep.subr.bf16.mxu1 %v4087_v1 }
  0x2f   : > { %3307 = vmatmul.mubr.msk.bf16.gmra.mrb[8].mxu0 %vm291_vm2, %v4232_v27  ;;  %3347 = vmatmul.mubr.msk.bf16.gmra.mrb[8].mxu1 %vm291_vm2, %v4234_v28 }
  0x30   : > { %3310 = vmatprep.mubr.msk.bf16.mxu0 %vm4088_vm0, %v4087_v1  ;;  %3350 = vmatprep.mubr.msk.bf16.mxu1 %vm4088_vm0, %v4087_v1 }
  0x31   : > { %3383 = vmatpush3.bf16.msra.mxu1 %v3946_v29 }
  0x32   : > { %3384 = vmatprep.subr.bf16.mxu1 %v4087_v1 }
  0x35   : > { %3385 = vmatpush3.bf16.msra.mxu1 %v3947_v34 }
  0x36   : > { %3386 = vmatprep.subr.bf16.mxu1 %v4087_v1 }
  0x37   : > { %3311 = vmatmul.mubr.msk.bf16.gmra.mrb[12].mxu0 %vm291_vm2, %v4256_v35  ;;  %3351 = vmatmul.mubr.msk.bf16.gmra.mrb[12].mxu1 %vm291_vm2, %v4258_v36 }
  0x38   : > { %3314 = vmatprep.mubr.msk.bf16.mxu0 %vm4088_vm0, %v4087_v1  ;;  %3354 = vmatprep.mubr.msk.bf16.mxu1 %vm4088_vm0, %v4087_v1 }
  0x39   : > { %3387 = vmatpush3.bf16.msra.mxu1 %v3948_v37 }
  0x3a   : > { %3388 = vmatprep.subr.bf16.mxu1 %v4087_v1 }
  0x3d   : > { %3389 = vmatpush3.bf16.msra.mxu1 %v3949_v42 }
  0x3e   : > { %3558 = vmatprep.subr.bf16.mxu1 %v4087_v1 }
  0x3f   : > { %3315 = vmatmul.mubr.msk.bf16.gmra.mrb[16].mxu0 %vm291_vm2, %v4280_v43  ;;  %3355 = vmatmul.mubr.msk.bf16.gmra.mrb[16].mxu1 %vm291_vm2, %v4282_v44 }
  0x40   : > { %3318 = vmatprep.mubr.msk.bf16.mxu0 %vm4088_vm0, %v4087_v1  ;;  %3358 = vmatprep.mubr.msk.bf16.mxu1 %vm4088_vm0, %v4087_v1 }
  0x47   : > { %3319 = vmatmul.mubr.msk.bf16.gmra.mrb[20].mxu0 %vm291_vm2, %v4297_v49  ;;  %3359 = vmatmul.mubr.msk.bf16.gmra.mrb[20].mxu1 %vm291_vm2, %v4299_v50 }
  0x48   : > { %3322 = vmatprep.mubr.msk.bf16.mxu0 %vm4088_vm0, %v4087_v1  ;;  %3362 = vmatprep.mubr.msk.bf16.mxu1 %vm4088_vm0, %v4087_v1 }
  0x4f   : > { %3323 = vmatmul.mubr.msk.bf16.gmra.mrb[24].mxu0 %vm291_vm2, %v4313_v55  ;;  %3363 = vmatmul.mubr.msk.bf16.gmra.mrb[24].mxu1 %vm291_vm2, %v4315_v56 }
  0x50   : > { %3326 = vmatprep.mubr.msk.bf16.mxu0 %vm4088_vm0, %v4087_v1  ;;  %3366 = vmatprep.mubr.msk.bf16.mxu1 %vm4088_vm0, %v4087_v1 }
  0x57   : > { %3327 = vmatmul.mubr.msk.bf16.gmra.mrb[28].mxu0 %vm291_vm2, %v4329_v61  ;;  %3367 = vmatmul.mubr.msk.bf16.gmra.mrb[28].mxu1 %vm291_vm2, %v4331_v62 }
  0x58   : > { %3330 = vmatprep.mubr.msk.bf16.mxu0 %vm4088_vm0, %v4087_v1  ;;  %3370 = vmatprep.mubr.msk.bf16.mxu1 %vm4088_vm0, %v4087_v1 }
  0x5f   : > { %3331 = vmatmul.mubr.msk.bf16.gmra.mrb[32].mxu0 %vm291_vm2, %v4345_v4  ;;  %3371 = vmatmul.mubr.msk.bf16.gmra.mrb[32].mxu1 %vm291_vm2, %v4347_v5 }
  0x60   : > { %3334 = vmatprep.mubr.msk.bf16.mxu0 %vm4088_vm0, %v4087_v1  ;;  %3390 = vmatprep.mubr.msk.bf16.mxu1 %vm4088_vm0, %v4087_v1 }
  0x67   : > { %3335 = vmatmul.mubr.msk.bf16.gmra.mrb[36].mxu0 %vm291_vm2, %v4359_v8 }
  0x68   : > { %3482 = vmatprep.mubr.msk.bf16.mxu0 %vm4088_vm0, %v4087_v1 }
  0xf2   : > { %v387_v11 = vpop.f32.mrb[0].mxu0  ;;  %v467_v13 = vpop.f32.mrb[0].mxu1 }
  0xf3   : > { %v3300_v14 = vpop.f32.mrb[1].mxu0  ;;  %v4371_v15 = vadd.f32 %v4368_v10, %v467_v13  ;;  %v3340_v16 = vpop.f32.mrb[1].mxu1  ;;  %v388_v21 = vadd.f32 %v4368_v10, %v387_v11  ;;  %v3951_v11 = vld [vmem:[%s5477_s1 + $0x70] sm:$0xff]  }
  0xf4   : > { %v390_v17 = vpop.f32.mrb[2].mxu0  ;;  %v470_v18 = vpop.f32.mrb[2].mxu1  ;;  %3469 = vmatpush3.bf16.msra.mxu0 %v3951_v11 }
  0xf5   : > { %v391_v22 = vadd.f32 %v4368_v10, %v390_v17  ;;  %v3301_v23 = vpop.f32.mrb[3].mxu0  ;;  %v4376_v24 = vadd.f32 %v4368_v10, %v470_v18  ;;  %v3341_v25 = vpop.f32.mrb[3].mxu1  ;;  %3470 = vmatprep.subr.bf16.mxu0 %v4087_v1 }
  0xf7   : > { %v538_v26 = vpack.c.bf16 %v391_v22, %v388_v21  ;;  %v548_v29 = vpack.c.bf16 %v4376_v24, %v4371_v15  ;;  %v3952_v21 = vld [vmem:[%s5477_s1 + $0x78] sm:$0xff]   ;;  %v3959_v15 = vld [vmem:[%s5477_s1 + $0xb0] sm:$0xff]  }
  0xf8   : > { %3471 = vmatpush3.bf16.msra.mxu0 %v3952_v21  ;;  %v3960_v24 = vld [vmem:[%s5477_s1 + $0xb8] sm:$0xff]  }
  0xf9   : > { %3391 = vmatmul.mubr.bf16.vlgmr.msra.gmra.mrb[36].mxu1 %v538_v26  ;;  %3472 = vmatprep.subr.bf16.mxu0 %v4087_v1 }
  0xfa   : > { %v395_v30 = vpop.f32.mrb[4].mxu0  ;;  %3394 = vmatprep.mubr.msk.bf16.mxu1 %vm4088_vm0, %v4087_v1  ;;  %v475_v31 = vpop.f32.mrb[4].mxu1 }
  0xfb   : > { %v3304_v32 = vpop.f32.mrb[5].mxu0  ;;  %v4383_v33 = vadd.f32 %v4368_v10, %v475_v31  ;;  %v3344_v34 = vpop.f32.mrb[5].mxu1  ;;  %v396_v39 = vadd.f32 %v4368_v10, %v395_v30 }
  0xfc   : > { %v398_v37 = vpop.f32.mrb[6].mxu0  ;;  %v478_v38 = vpop.f32.mrb[6].mxu1 }
  0xfd   : > { %v399_v40 = vadd.f32 %v4368_v10, %v398_v37  ;;  %v3305_v41 = vpop.f32.mrb[7].mxu0  ;;  %v4388_v42 = vadd.f32 %v4368_v10, %v478_v38  ;;  %v3345_v45 = vpop.f32.mrb[7].mxu1  ;;  %v3953_v38 = vld [vmem:[%s5477_s1 + $0x80] sm:$0xff]  }
  0xfe   : > { %3473 = vmatpush3.bf16.msra.mxu0 %v3953_v38 }
  0xff   : > { %v539_v46 = vpack.c.bf16 %v399_v40, %v396_v39  ;;  %v549_v47 = vpack.c.bf16 %v4388_v42, %v4383_v33  ;;  %3474 = vmatprep.subr.bf16.mxu0 %v4087_v1 }
 0x101   : > { %3395 = vmatmul.mubr.bf16.gmra.mrb[40].mxu1 %v539_v46 }
 0x102   : > { %v403_v51 = vpop.f32.mrb[8].mxu0  ;;  %3398 = vmatprep.mubr.msk.bf16.mxu1 %vm4088_vm0, %v4087_v1  ;;  %v483_v52 = vpop.f32.mrb[8].mxu1  ;;  %3475 = vmatpush3.bf16.msra.mxu0 %v3954_v48 }
 0x103   : > { %v3308_v53 = vpop.f32.mrb[9].mxu0  ;;  %v4398_v54 = vadd.f32 %v4368_v10, %v483_v52  ;;  %v3348_v57 = vpop.f32.mrb[9].mxu1  ;;  %v404_v60 = vadd.f32 %v4368_v10, %v403_v51  ;;  %3476 = vmatprep.subr.bf16.mxu0 %v4087_v1 }
 0x104   : > { %v406_v58 = vpop.f32.mrb[10].mxu0  ;;  %v486_v59 = vpop.f32.mrb[10].mxu1 }
 0x105   : > { %v407_v63 = vadd.f32 %v4368_v10, %v406_v58  ;;  %v3309_v0 = vpop.f32.mrb[11].mxu0  ;;  %v4404_v2 = vadd.f32 %v4368_v10, %v486_v59  ;;  %v3349_v3 = vpop.f32.mrb[11].mxu1 }
 0x106   : > { %v3955_v3 = vld [vmem:[%s5477_s1 + $0x90] sm:$0xff]  }
 0x107   : > { %v540_v6 = vpack.c.bf16 %v407_v63, %v404_v60  ;;  %v550_v7 = vpack.c.bf16 %v4404_v2, %v4398_v54  ;;  %3477 = vmatpush3.bf16.msra.mxu0 %v3955_v3 }
 0x108   : > { %3478 = vmatprep.subr.bf16.mxu0 %v4087_v1 }
 0x109   : > { %3399 = vmatmul.mubr.bf16.gmra.mrb[44].mxu1 %v540_v6 }
 0x10a   : > { %v411_v13 = vpop.f32.mrb[12].mxu0  ;;  %3402 = vmatprep.mubr.msk.bf16.mxu1 %vm4088_vm0, %v4087_v1  ;;  %v491_v14 = vpop.f32.mrb[12].mxu1 }
 0x10b   : > { %v3312_v16 = vpop.f32.mrb[13].mxu0  ;;  %v4414_v17 = vadd.f32 %v4368_v10, %v491_v14  ;;  %v3352_v18 = vpop.f32.mrb[13].mxu1  ;;  %v412_v25 = vadd.f32 %v4368_v10, %v411_v13 }
 0x10c   : > { %v414_v22 = vpop.f32.mrb[14].mxu0  ;;  %v494_v23 = vpop.f32.mrb[14].mxu1  ;;  %v3956_v18 = vld [vmem:[%s5477_s1 + $0x98] sm:$0xff]  }
 0x10d   : > { %v415_v26 = vadd.f32 %v4368_v10, %v414_v22  ;;  %v3313_v30 = vpop.f32.mrb[15].mxu0  ;;  %v4423_v31 = vadd.f32 %v4368_v10, %v494_v23  ;;  %v3353_v32 = vpop.f32.mrb[15].mxu1  ;;  %3479 = vmatpush3.bf16.msra.mxu0 %v3956_v18 }
 0x10e   : > { %3480 = vmatprep.subr.bf16.mxu0 %v4087_v1 }
 0x10f   : > { %v541_v34 = vpack.c.bf16 %v415_v26, %v412_v25  ;;  %v551_v37 = vpack.c.bf16 %v4423_v31, %v4414_v17 }
 0x111   : > { %3403 = vmatmul.mubr.bf16.gmra.mrb[48].mxu1 %v541_v34 }
 0x112   : > { %v419_v39 = vpop.f32.mrb[16].mxu0  ;;  %3406 = vmatprep.mubr.msk.bf16.mxu1 %vm4088_vm0, %v4087_v1  ;;  %v499_v40 = vpop.f32.mrb[16].mxu1 }
 0x113   : > { %v3316_v41 = vpop.f32.mrb[17].mxu0  ;;  %v4434_v45 = vadd.f32 %v4368_v10, %v499_v40  ;;  %v3356_v46 = vpop.f32.mrb[17].mxu1  ;;  %v420_v53 = vadd.f32 %v4368_v10, %v419_v39  ;;  %v3957_v39 = vld [vmem:[%s5477_s1 + $0xa0] sm:$0xff]  }
 0x114   : > { %v422_v51 = vpop.f32.mrb[18].mxu0  ;;  %v502_v52 = vpop.f32.mrb[18].mxu1  ;;  %3481 = vmatpush3.bf16.msra.mxu0 %v3957_v39 }
 0x115   : > { %v423_v57 = vadd.f32 %v4368_v10, %v422_v51  ;;  %v3317_v58 = vpop.f32.mrb[19].mxu0  ;;  %v4443_v59 = vadd.f32 %v4368_v10, %v502_v52  ;;  %v3357_v60 = vpop.f32.mrb[19].mxu1  ;;  %3650 = vmatprep.subr.bf16.mxu0 %v4087_v1 }
 0x117   : > { %v542_v63 = vpack.c.bf16 %v423_v57, %v420_v53  ;;  %v552_v0 = vpack.c.bf16 %v4443_v59, %v4434_v45  ;;  %v3961_v45 = vld [vmem:[%s5477_s1 + $0xc0] sm:$0xff]  }
 0x119   : > { %3407 = vmatmul.mubr.bf16.gmra.mrb[52].mxu1 %v542_v63 }
 0x11a   : > { %v427_v6 = vpop.f32.mrb[20].mxu0  ;;  %3410 = vmatprep.mubr.msk.bf16.mxu1 %vm4088_vm0, %v4087_v1  ;;  %v507_v11 = vpop.f32.mrb[20].mxu1 }
 0x11b   : > { %v3320_v13 = vpop.f32.mrb[21].mxu0  ;;  %v4454_v14 = vadd.f32 %v4368_v10, %v507_v11  ;;  %v3360_v16 = vpop.f32.mrb[21].mxu1  ;;  %v428_v23 = vadd.f32 %v4368_v10, %v427_v6 }
 0x11c   : > { %v430_v21 = vpop.f32.mrb[22].mxu0  ;;  %v510_v22 = vpop.f32.mrb[22].mxu1 }
 0x11d   : > { %v431_v25 = vadd.f32 %v4368_v10, %v430_v21  ;;  %v3321_v26 = vpop.f32.mrb[23].mxu0  ;;  %v4463_v30 = vadd.f32 %v4368_v10, %v510_v22  ;;  %v3361_v32 = vpop.f32.mrb[23].mxu1 }
 0x11f   : > { %v543_v34 = vpack.c.bf16 %v431_v25, %v428_v23  ;;  %v553_v38 = vpack.c.bf16 %v4463_v30, %v4454_v14 }
 0x121   : > { %3411 = vmatmul.mubr.bf16.gmra.mrb[56].mxu1 %v543_v34 }
 0x122   : > { %v435_v40 = vpop.f32.mrb[24].mxu0  ;;  %3414 = vmatprep.mubr.msk.bf16.mxu1 %vm4088_vm0, %v4087_v1  ;;  %v515_v41 = vpop.f32.mrb[24].mxu1 }
 0x123   : > { %v3324_v46 = vpop.f32.mrb[25].mxu0  ;;  %v4474_v48 = vadd.f32 %v4368_v10, %v515_v41  ;;  %v3364_v51 = vpop.f32.mrb[25].mxu1  ;;  %v436_v57 = vadd.f32 %v4368_v10, %v435_v40 }
 0x124   : > { %v438_v52 = vpop.f32.mrb[26].mxu0  ;;  %v518_v53 = vpop.f32.mrb[26].mxu1 }
 0x125   : > { %v439_v58 = vadd.f32 %v4368_v10, %v438_v52  ;;  %v3325_v60 = vpop.f32.mrb[27].mxu0  ;;  %v519_v63 = vadd.f32 %v4368_v10, %v518_v53  ;;  %v3365_v3 = vpop.f32.mrb[27].mxu1 }
 0x127   : > { %v544_v6 = vpack.c.bf16 %v439_v58, %v436_v57  ;;  %v554_v11 = vpack.c.bf16 %v519_v63, %v4474_v48 }
 0x129   : > { %3415 = vmatmul.mubr.bf16.gmra.mrb[60].mxu1 %v544_v6 }
 0x12a   : > { %v443_v13 = vpop.f32.mrb[28].mxu0  ;;  %3418 = vmatprep.mubr.msk.bf16.mxu1 %vm4088_vm0, %v4087_v1  ;;  %v523_v16 = vpop.f32.mrb[28].mxu1 }
 0x12b   : > { %v3328_v18 = vpop.f32.mrb[29].mxu0  ;;  %v524_v21 = vadd.f32 %v4368_v10, %v523_v16  ;;  %v3368_v22 = vpop.f32.mrb[29].mxu1  ;;  %v444_v26 = vadd.f32 %v4368_v10, %v443_v13 }
 0x12c   : > { %v446_v23 = vpop.f32.mrb[30].mxu0  ;;  %v526_v25 = vpop.f32.mrb[30].mxu1 }
 0x12d   : > { %v447_v32 = vadd.f32 %v4368_v10, %v446_v23  ;;  %v3329_v34 = vpop.f32.mrb[31].mxu0  ;;  %v527_v39 = vadd.f32 %v4368_v10, %v526_v25  ;;  %v3369_v40 = vpop.f32.mrb[31].mxu1 }
 0x12f   : > { %v545_v41 = vpack.c.bf16 %v447_v32, %v444_v26  ;;  %v555_v46 = vpack.c.bf16 %v527_v39, %v524_v21 }
 0x131   : > { %3419 = vmatmul.mubr.bf16.gmra.mrb[64].mxu1 %v545_v41 }
 0x132   : > { %v451_v48 = vpop.f32.mrb[32].mxu0  ;;  %3422 = vmatprep.mubr.msk.bf16.mxu1 %vm4088_vm0, %v4087_v1  ;;  %v531_v51 = vpop.f32.mrb[32].mxu1 }
 0x133   : > { %v3332_v52 = vpop.f32.mrb[33].mxu0  ;;  %v532_v53 = vadd.f32 %v4368_v10, %v531_v51  ;;  %v3372_v57 = vpop.f32.mrb[33].mxu1  ;;  %v452_v63 = vadd.f32 %v4368_v10, %v451_v48 }
 0x134   : > { %v454_v58 = vpop.f32.mrb[34].mxu0  ;;  %v534_v60 = vpop.f32.mrb[34].mxu1 }
 0x135   : > { %v455_v3 = vadd.f32 %v4368_v10, %v454_v58  ;;  %v3333_v6 = vpop.f32.mrb[35].mxu0  ;;  %v535_v13 = vadd.f32 %v4368_v10, %v534_v60  ;;  %v3373_v16 = vpop.f32.mrb[35].mxu1 }
 0x137   : > { %v546_v18 = vpack.c.bf16 %v455_v3, %v452_v63  ;;  %v556_v21 = vpack.c.bf16 %v535_v13, %v532_v53 }
 0x139   : > { %3423 = vmatmul.mubr.bf16.gmra.mrb[68].mxu1 %v546_v18  ;;  %v3962_v18 = vld [vmem:[%s5477_s1 + $0xc8] sm:$0xff]  }
 0x13a   : > { %v459_v22 = vpop.f32.mrb[36].mxu0  ;;  %3426 = vmatprep.mubr.msk.bf16.mxu1 %vm4088_vm0, %v4087_v1 }
 0x13b   : > { %v3336_v23 = vpop.f32.mrb[37].mxu0  ;;  %v460_v26 = vadd.f32 %v4368_v10, %v459_v22 }
 0x13c   : > { %v462_v25 = vpop.f32.mrb[38].mxu0 }
 0x13d   : > { %v463_v32 = vadd.f32 %v4368_v10, %v462_v25  ;;  %v3337_v34 = vpop.f32.mrb[39].mxu0  ;;  %v3958_v10 = vld [vmem:[%s5477_s1 + $0xa8] sm:$0xff]   ;;  %v3963_v25 = vld [vmem:[%s5477_s1 + $0xd0] sm:$0xff]  }
 0x13e   : > { %3559 = vmatpush3.bf16.msra.mxu1 %v3958_v10 }
 0x13f   : > { %v547_v39 = vpack.c.bf16 %v463_v32, %v460_v26  ;;  %3560 = vmatprep.subr.bf16.mxu1 %v4087_v1 }
 0x141   : > { %3427 = vmatmul.mubr.bf16.gmra.mrb[72].mxu1 %v547_v39  ;;  %v3964_v39 = vld [vmem:[%s5477_s1 + $0xd8] sm:$0xff]  }
 0x142   : > { %3430 = vmatprep.mubr.msk.bf16.mxu1 %vm4088_vm0, %v4087_v1  ;;  %3561 = vmatpush3.bf16.msra.mxu1 %v3959_v15 }
 0x143   : > { %3562 = vmatprep.subr.bf16.mxu1 %v4087_v1 }
 0x146   : > { %3563 = vmatpush3.bf16.msra.mxu1 %v3960_v24 }
 0x147   : > { %3564 = vmatprep.subr.bf16.mxu1 %v4087_v1 }
 0x149   : > { %3431 = vmatmul.mubr.bf16.gmra.mrb[76].mxu1 %v548_v29  ;;  %v4550_v29 = vld [vmem:[%s5478_s2 + $0x1] ss:$0 sm:$0xff] }
 0x14a   : > { %3434 = vmatprep.mubr.msk.bf16.mxu1 %vm4088_vm0, %v4087_v1  ;;  %3565 = vmatpush3.bf16.msra.mxu1 %v3961_v45 }
 0x14b   : > { %3566 = vmatprep.subr.bf16.mxu1 %v4087_v1 }
 0x14e   : > { %3567 = vmatpush3.bf16.msra.mxu1 %v3962_v18 }
 0x14f   : > { %3568 = vmatprep.subr.bf16.mxu1 %v4087_v1 }
 0x151   : > { %3435 = vmatmul.mubr.bf16.gmra.mrb[80].mxu1 %v549_v47 }
 0x152   : > { %3438 = vmatprep.mubr.msk.bf16.mxu1 %vm4088_vm0, %v4087_v1  ;;  %3569 = vmatpush3.bf16.msra.mxu1 %v3963_v25 }
 0x153   : > { %3570 = vmatprep.subr.bf16.mxu1 %v4087_v1 }
 0x156   : > { %3571 = vmatpush3.bf16.msra.mxu1 %v3964_v39 }
 0x157   : > { %3572 = vmatprep.subr.bf16.mxu1 %v4087_v1 }
 0x159   : > { %3439 = vmatmul.mubr.bf16.gmra.mrb[84].mxu1 %v550_v7 }
 0x15a   : > { %3442 = vmatprep.mubr.msk.bf16.mxu1 %vm4088_vm0, %v4087_v1 }
 0x161   : > { %3443 = vmatmul.mubr.bf16.gmra.mrb[88].mxu1 %v551_v37 }
 0x162   : > { %3446 = vmatprep.mubr.msk.bf16.mxu1 %vm4088_vm0, %v4087_v1 }
 0x169   : > { %3447 = vmatmul.mubr.bf16.gmra.mrb[92].mxu1 %v552_v0 }
 0x16a   : > { %3450 = vmatprep.mubr.msk.bf16.mxu1 %vm4088_vm0, %v4087_v1 }
 0x171   : > { %3451 = vmatmul.mubr.bf16.gmra.mrb[96].mxu1 %v553_v38 }
 0x172   : > { %3454 = vmatprep.mubr.msk.bf16.mxu1 %vm4088_vm0, %v4087_v1 }
 0x179   : > { %3455 = vmatmul.mubr.bf16.gmra.mrb[100].mxu1 %v554_v11 }
 0x17a   : > { %3458 = vmatprep.mubr.msk.bf16.mxu1 %vm4088_vm0, %v4087_v1 }
 0x181   : > { %3459 = vmatmul.mubr.bf16.gmra.mrb[104].mxu1 %v555_v46 }
 0x182   : > { %3462 = vmatprep.mubr.msk.bf16.mxu1 %vm4088_vm0, %v4087_v1 }
 0x189   : > { %3463 = vmatmul.mubr.bf16.gmra.mrb[108].mxu1 %v556_v21 }
 0x18a   : > { %3574 = vmatprep.mubr.msk.bf16.mxu1 %vm4088_vm0, %v4087_v1 }
 0x1cc   : > { %v660_v33 = vpop.f32.mrb[36].mxu1 }
 0x1cd   : > { %v661_v42 = vadd.f32 %v4550_v29, %v660_v33  ;;  %v3392_v47 = vpop.f32.mrb[37].mxu1 }
 0x1ce   : > { %v663_v54 = vpop.f32.mrb[38].mxu1 }
 0x1cf   : > { %v664_v2 = vadd.f32 %v4550_v29, %v663_v54  ;;  %v3393_v7 = vpop.f32.mrb[39].mxu1  ;;  %v811_v17 = vmax.f32 %v661_v42, 0.0  ;;  %v3965_v54 = vld [vmem:[%s5477_s1 + $0xe0] sm:$0xff]  }
 0x1d0   : > { %3573 = vmatpush3.bf16.msra.mxu1 %v3965_v54 }
 0x1d1   : > { %v812_v31 = vmax.f32 %v664_v2, 0.0 }
 0x1d3   : > { %v849_v37 = vpack.c.bf16 %v812_v31, %v811_v17 }
 0x1d4   : > { %v668_v59 = vpop.f32.mrb[40].mxu1 }
 0x1d5   : > { %v669_v0 = vadd.f32 %v4550_v29, %v668_v59  ;;  %v3396_v14 = vpop.f32.mrb[41].mxu1  ;;  %3483 = vmatmul.mubr.bf16.vlgmr.msra.gmra.mrb[40].mxu0 %v849_v37 }
 0x1d6   : > { %v671_v30 = vpop.f32.mrb[42].mxu1  ;;  %3486 = vmatprep.mubr.msk.bf16.mxu0 %vm4088_vm0, %v4087_v1 }
 0x1d7   : > { %v672_v38 = vadd.f32 %v4550_v29, %v671_v30  ;;  %v3397_v11 = vpop.f32.mrb[43].mxu1  ;;  %v813_v40 = vmax.f32 %v669_v0, 0.0 }
 0x1d9   : > { %v814_v41 = vmax.f32 %v672_v38, 0.0 }
 0x1db   : > { %v850_v46 = vpack.c.bf16 %v814_v41, %v813_v40 }
 0x1dc   : > { %v676_v48 = vpop.f32.mrb[44].mxu1 }
 0x1dd   : > { %v677_v51 = vadd.f32 %v4550_v29, %v676_v48  ;;  %v3400_v52 = vpop.f32.mrb[45].mxu1  ;;  %3487 = vmatmul.mubr.bf16.gmra.mrb[44].mxu0 %v850_v46 }
 0x1de   : > { %v679_v53 = vpop.f32.mrb[46].mxu1  ;;  %3490 = vmatprep.mubr.msk.bf16.mxu0 %vm4088_vm0, %v4087_v1 }
 0x1df   : > { %v680_v57 = vadd.f32 %v4550_v29, %v679_v53  ;;  %v3401_v58 = vpop.f32.mrb[47].mxu1  ;;  %v815_v60 = vmax.f32 %v677_v51, 0.0 }
 0x1e1   : > { %v816_v63 = vmax.f32 %v680_v57, 0.0 }
 0x1e3   : > { %v851_v3 = vpack.c.bf16 %v816_v63, %v815_v60 }
 0x1e4   : > { %v684_v6 = vpop.f32.mrb[48].mxu1 }
 0x1e5   : > { %v685_v13 = vadd.f32 %v4550_v29, %v684_v6  ;;  %v3404_v16 = vpop.f32.mrb[49].mxu1  ;;  %3491 = vmatmul.mubr.bf16.gmra.mrb[48].mxu0 %v851_v3 }
 0x1e6   : > { %v687_v21 = vpop.f32.mrb[50].mxu1  ;;  %3494 = vmatprep.mubr.msk.bf16.mxu0 %vm4088_vm0, %v4087_v1 }
 0x1e7   : > { %v688_v22 = vadd.f32 %v4550_v29, %v687_v21  ;;  %v3405_v23 = vpop.f32.mrb[51].mxu1  ;;  %v817_v26 = vmax.f32 %v685_v13, 0.0 }
 0x1e9   : > { %v818_v32 = vmax.f32 %v688_v22, 0.0 }
 0x1eb   : > { %v852_v34 = vpack.c.bf16 %v818_v32, %v817_v26 }
 0x1ec   : > { %v692_v10 = vpop.f32.mrb[52].mxu1 }
 0x1ed   : > { %v693_v15 = vadd.f32 %v4550_v29, %v692_v10  ;;  %v3408_v24 = vpop.f32.mrb[53].mxu1  ;;  %3495 = vmatmul.mubr.bf16.gmra.mrb[52].mxu0 %v852_v34 }
 0x1ee   : > { %v695_v33 = vpop.f32.mrb[54].mxu1  ;;  %3498 = vmatprep.mubr.msk.bf16.mxu0 %vm4088_vm0, %v4087_v1 }
 0x1ef   : > { %v696_v42 = vadd.f32 %v4550_v29, %v695_v33  ;;  %v3409_v47 = vpop.f32.mrb[55].mxu1  ;;  %v819_v2 = vmax.f32 %v693_v15, 0.0 }
 0x1f1   : > { %v820_v7 = vmax.f32 %v696_v42, 0.0 }
 0x1f3   : > { %v853_v17 = vpack.c.bf16 %v820_v7, %v819_v2 }
 0x1f4   : > { %v700_v31 = vpop.f32.mrb[56].mxu1 }
 0x1f5   : > { %v701_v37 = vadd.f32 %v4550_v29, %v700_v31  ;;  %v3412_v45 = vpop.f32.mrb[57].mxu1  ;;  %3499 = vmatmul.mubr.bf16.gmra.mrb[56].mxu0 %v853_v17 }
 0x1f6   : > { %v703_v59 = vpop.f32.mrb[58].mxu1  ;;  %3502 = vmatprep.mubr.msk.bf16.mxu0 %vm4088_vm0, %v4087_v1 }
 0x1f7   : > { %v704_v0 = vadd.f32 %v4550_v29, %v703_v59  ;;  %v3413_v14 = vpop.f32.mrb[59].mxu1  ;;  %v821_v30 = vmax.f32 %v701_v37, 0.0 }
 0x1f9   : > { %v822_v38 = vmax.f32 %v704_v0, 0.0 }
 0x1fb   : > { %v854_v11 = vpack.c.bf16 %v822_v38, %v821_v30 }
 0x1fc   : > { %v708_v40 = vpop.f32.mrb[60].mxu1 }
 0x1fd   : > { %v709_v41 = vadd.f32 %v4550_v29, %v708_v40  ;;  %v3416_v46 = vpop.f32.mrb[61].mxu1  ;;  %3503 = vmatmul.mubr.bf16.gmra.mrb[60].mxu0 %v854_v11 }
 0x1fe   : > { %v711_v48 = vpop.f32.mrb[62].mxu1  ;;  %3506 = vmatprep.mubr.msk.bf16.mxu0 %vm4088_vm0, %v4087_v1 }
 0x1ff   : > { %v712_v51 = vadd.f32 %v4550_v29, %v711_v48  ;;  %v3417_v52 = vpop.f32.mrb[63].mxu1  ;;  %v823_v53 = vmax.f32 %v709_v41, 0.0 }
 0x201   : > { %v824_v57 = vmax.f32 %v712_v51, 0.0 }
 0x203   : > { %v855_v58 = vpack.c.bf16 %v824_v57, %v823_v53 }
 0x204   : > { %v716_v60 = vpop.f32.mrb[64].mxu1 }
 0x205   : > { %v717_v63 = vadd.f32 %v4550_v29, %v716_v60  ;;  %v3420_v3 = vpop.f32.mrb[65].mxu1  ;;  %3507 = vmatmul.mubr.bf16.gmra.mrb[64].mxu0 %v855_v58 }
 0x206   : > { %v719_v6 = vpop.f32.mrb[66].mxu1  ;;  %3510 = vmatprep.mubr.msk.bf16.mxu0 %vm4088_vm0, %v4087_v1 }
 0x207   : > { %v720_v13 = vadd.f32 %v4550_v29, %v719_v6  ;;  %v3421_v16 = vpop.f32.mrb[67].mxu1  ;;  %v825_v18 = vmax.f32 %v717_v63, 0.0 }
 0x209   : > { %v826_v21 = vmax.f32 %v720_v13, 0.0 }
 0x20b   : > { %v856_v22 = vpack.c.bf16 %v826_v21, %v825_v18 }
 0x20c   : > { %v724_v23 = vpop.f32.mrb[68].mxu1 }
 0x20d   : > { %v725_v25 = vadd.f32 %v4550_v29, %v724_v23  ;;  %v3424_v26 = vpop.f32.mrb[69].mxu1  ;;  %3511 = vmatmul.mubr.bf16.gmra.mrb[68].mxu0 %v856_v22 }
 0x20e   : > { %v727_v32 = vpop.f32.mrb[70].mxu1  ;;  %3514 = vmatprep.mubr.msk.bf16.mxu0 %vm4088_vm0, %v4087_v1 }
 0x20f   : > { %v728_v34 = vadd.f32 %v4550_v29, %v727_v32  ;;  %v3425_v39 = vpop.f32.mrb[71].mxu1  ;;  %v827_v10 = vmax.f32 %v725_v25, 0.0 }
 0x211   : > { %v828_v15 = vmax.f32 %v728_v34, 0.0 }
 0x213   : > { %v857_v24 = vpack.c.bf16 %v828_v15, %v827_v10 }
 0x214   : > { %v732_v33 = vpop.f32.mrb[72].mxu1 }
 0x215   : > { %v733_v42 = vadd.f32 %v4550_v29, %v732_v33  ;;  %v3428_v47 = vpop.f32.mrb[73].mxu1  ;;  %3515 = vmatmul.mubr.bf16.gmra.mrb[72].mxu0 %v857_v24 }
 0x216   : > { %v735_v54 = vpop.f32.mrb[74].mxu1  ;;  %3518 = vmatprep.mubr.msk.bf16.mxu0 %vm4088_vm0, %v4087_v1 }
 0x217   : > { %v736_v2 = vadd.f32 %v4550_v29, %v735_v54  ;;  %v3429_v7 = vpop.f32.mrb[75].mxu1  ;;  %v829_v17 = vmax.f32 %v733_v42, 0.0 }
 0x219   : > { %v830_v31 = vmax.f32 %v736_v2, 0.0 }
 0x21b   : > { %v858_v37 = vpack.c.bf16 %v830_v31, %v829_v17 }
 0x21c   : > { %v740_v45 = vpop.f32.mrb[76].mxu1 }
 0x21d   : > { %v741_v59 = vadd.f32 %v4550_v29, %v740_v45  ;;  %v3432_v0 = vpop.f32.mrb[77].mxu1  ;;  %3519 = vmatmul.mubr.bf16.gmra.mrb[76].mxu0 %v858_v37 }
 0x21e   : > { %v743_v14 = vpop.f32.mrb[78].mxu1  ;;  %3522 = vmatprep.mubr.msk.bf16.mxu0 %vm4088_vm0, %v4087_v1 }
 0x21f   : > { %v744_v30 = vadd.f32 %v4550_v29, %v743_v14  ;;  %v3433_v38 = vpop.f32.mrb[79].mxu1  ;;  %v831_v11 = vmax.f32 %v741_v59, 0.0 }
 0x221   : > { %v832_v40 = vmax.f32 %v744_v30, 0.0 }
 0x223   : > { %v859_v41 = vpack.c.bf16 %v832_v40, %v831_v11 }
 0x224   : > { %v748_v46 = vpop.f32.mrb[80].mxu1 }
 0x225   : > { %v749_v48 = vadd.f32 %v4550_v29, %v748_v46  ;;  %v3436_v51 = vpop.f32.mrb[81].mxu1  ;;  %3523 = vmatmul.mubr.bf16.gmra.mrb[80].mxu0 %v859_v41 }
 0x226   : > { %v751_v52 = vpop.f32.mrb[82].mxu1  ;;  %3526 = vmatprep.mubr.msk.bf16.mxu0 %vm4088_vm0, %v4087_v1 }
 0x227   : > { %v752_v53 = vadd.f32 %v4550_v29, %v751_v52  ;;  %v3437_v57 = vpop.f32.mrb[83].mxu1  ;;  %v833_v58 = vmax.f32 %v749_v48, 0.0 }
 0x229   : > { %v834_v60 = vmax.f32 %v752_v53, 0.0 }
 0x22b   : > { %v860_v63 = vpack.c.bf16 %v834_v60, %v833_v58 }
 0x22c   : > { %v756_v3 = vpop.f32.mrb[84].mxu1 }
 0x22d   : > { %v757_v6 = vadd.f32 %v4550_v29, %v756_v3  ;;  %v3440_v13 = vpop.f32.mrb[85].mxu1  ;;  %3527 = vmatmul.mubr.bf16.gmra.mrb[84].mxu0 %v860_v63 }
 0x22e   : > { %v759_v16 = vpop.f32.mrb[86].mxu1  ;;  %3530 = vmatprep.mubr.msk.bf16.mxu0 %vm4088_vm0, %v4087_v1 }
 0x22f   : > { %v760_v18 = vadd.f32 %v4550_v29, %v759_v16  ;;  %v3441_v21 = vpop.f32.mrb[87].mxu1  ;;  %v835_v22 = vmax.f32 %v757_v6, 0.0 }
 0x231   : > { %v836_v23 = vmax.f32 %v760_v18, 0.0 }
 0x233   : > { %v861_v25 = vpack.c.bf16 %v836_v23, %v835_v22 }
 0x234   : > { %v764_v26 = vpop.f32.mrb[88].mxu1 }
 0x235   : > { %v765_v32 = vadd.f32 %v4550_v29, %v764_v26  ;;  %v3444_v34 = vpop.f32.mrb[89].mxu1  ;;  %3531 = vmatmul.mubr.bf16.gmra.mrb[88].mxu0 %v861_v25 }
 0x236   : > { %v767_v39 = vpop.f32.mrb[90].mxu1  ;;  %3534 = vmatprep.mubr.msk.bf16.mxu0 %vm4088_vm0, %v4087_v1 }
 0x237   : > { %v768_v10 = vadd.f32 %v4550_v29, %v767_v39  ;;  %v3445_v15 = vpop.f32.mrb[91].mxu1  ;;  %v837_v24 = vmax.f32 %v765_v32, 0.0 }
 0x239   : > { %v838_v33 = vmax.f32 %v768_v10, 0.0 }
 0x23b   : > { %v862_v42 = vpack.c.bf16 %v838_v33, %v837_v24 }
 0x23c   : > { %v772_v47 = vpop.f32.mrb[92].mxu1 }
 0x23d   : > { %v773_v54 = vadd.f32 %v4550_v29, %v772_v47  ;;  %v3448_v2 = vpop.f32.mrb[93].mxu1  ;;  %3535 = vmatmul.mubr.bf16.gmra.mrb[92].mxu0 %v862_v42 }
 0x23e   : > { %v775_v7 = vpop.f32.mrb[94].mxu1  ;;  %3538 = vmatprep.mubr.msk.bf16.mxu0 %vm4088_vm0, %v4087_v1  ;;  %v3966_v2 = vld [vmem:[%s5477_s1 + $0xe8] sm:$0xff]  }
 0x23f   : > { %v776_v17 = vadd.f32 %v4550_v29, %v775_v7  ;;  %v3449_v31 = vpop.f32.mrb[95].mxu1  ;;  %v839_v37 = vmax.f32 %v773_v54, 0.0  ;;  %3651 = vmatpush3.bf16.msra.mxu0 %v3966_v2  ;;  %v3967_v7 = vld [vmem:[%s5477_s1 + $0xf0] sm:$0xff]  }
 0x240   : > { %3652 = vmatprep.subr.bf16.mxu0 %v4087_v1 }
 0x241   : > { %v840_v45 = vmax.f32 %v776_v17, 0.0  ;;  %v4662_v17 = vld [vmem:[%s5478_s2 + $0x2] ss:$0 sm:$0xff] }
 0x243   : > { %v863_v59 = vpack.c.bf16 %v840_v45, %v839_v37  ;;  %3653 = vmatpush3.bf16.msra.mxu0 %v3967_v7 }
 0x244   : > { %v780_v0 = vpop.f32.mrb[96].mxu1  ;;  %3654 = vmatprep.subr.bf16.mxu0 %v4087_v1 }
 0x245   : > { %v781_v14 = vadd.f32 %v4550_v29, %v780_v0  ;;  %v3452_v30 = vpop.f32.mrb[97].mxu1  ;;  %3539 = vmatmul.mubr.bf16.gmra.mrb[96].mxu0 %v863_v59 }
 0x246   : > { %v783_v38 = vpop.f32.mrb[98].mxu1  ;;  %3542 = vmatprep.mubr.msk.bf16.mxu0 %vm4088_vm0, %v4087_v1 }
 0x247   : > { %v784_v11 = vadd.f32 %v4550_v29, %v783_v38  ;;  %v3453_v40 = vpop.f32.mrb[99].mxu1  ;;  %v841_v41 = vmax.f32 %v781_v14, 0.0 }
 0x248   : > { %v3969_v40 = vld [vmem:[%s5477_s1 + $0x100] sm:$0xff]  }
 0x249   : > { %v842_v46 = vmax.f32 %v784_v11, 0.0 }
 0x24b   : > { %v864_v48 = vpack.c.bf16 %v842_v46, %v841_v41 }
 0x24c   : > { %v788_v51 = vpop.f32.mrb[100].mxu1 }
 0x24d   : > { %v789_v52 = vadd.f32 %v4550_v29, %v788_v51  ;;  %v3456_v53 = vpop.f32.mrb[101].mxu1  ;;  %3543 = vmatmul.mubr.bf16.gmra.mrb[100].mxu0 %v864_v48 }
 0x24e   : > { %v791_v57 = vpop.f32.mrb[102].mxu1  ;;  %3546 = vmatprep.mubr.msk.bf16.mxu0 %vm4088_vm0, %v4087_v1 }
 0x24f   : > { %v792_v58 = vadd.f32 %v4550_v29, %v791_v57  ;;  %v3457_v60 = vpop.f32.mrb[103].mxu1  ;;  %v843_v63 = vmax.f32 %v789_v52, 0.0 }
 0x251   : > { %v844_v3 = vmax.f32 %v792_v58, 0.0 }
 0x253   : > { %v865_v6 = vpack.c.bf16 %v844_v3, %v843_v63 }
 0x254   : > { %v796_v13 = vpop.f32.mrb[104].mxu1 }
 0x255   : > { %v797_v16 = vadd.f32 %v4550_v29, %v796_v13  ;;  %v3460_v18 = vpop.f32.mrb[105].mxu1  ;;  %3547 = vmatmul.mubr.bf16.gmra.mrb[104].mxu0 %v865_v6 }
 0x256   : > { %v799_v21 = vpop.f32.mrb[106].mxu1  ;;  %3550 = vmatprep.mubr.msk.bf16.mxu0 %vm4088_vm0, %v4087_v1 }
 0x257   : > { %v800_v22 = vadd.f32 %v4550_v29, %v799_v21  ;;  %v3461_v23 = vpop.f32.mrb[107].mxu1  ;;  %v845_v25 = vmax.f32 %v797_v16, 0.0 }
 0x259   : > { %v846_v26 = vmax.f32 %v800_v22, 0.0 }
 0x25b   : > { %v866_v32 = vpack.c.bf16 %v846_v26, %v845_v25 }
 0x25c   : > { %v804_v34 = vpop.f32.mrb[108].mxu1 }
 0x25d   : > { %v805_v39 = vadd.f32 %v4550_v29, %v804_v34  ;;  %v3464_v10 = vpop.f32.mrb[109].mxu1  ;;  %3551 = vmatmul.mubr.bf16.gmra.mrb[108].mxu0 %v866_v32  ;;  %v3970_v34 = vld [vmem:[%s5477_s1 + $0x108] sm:$0xff]  }
 0x25e   : > { %v807_v15 = vpop.f32.mrb[110].mxu1  ;;  %3554 = vmatprep.mubr.msk.bf16.mxu0 %vm4088_vm0, %v4087_v1 }
 0x25f   : > { %v808_v24 = vadd.f32 %v4550_v29, %v807_v15  ;;  %v3465_v33 = vpop.f32.mrb[111].mxu1  ;;  %v847_v42 = vmax.f32 %v805_v39, 0.0  ;;  %v3968_v29 = vld [vmem:[%s5477_s1 + $0xf8] sm:$0xff]  }
 0x260   : > { %3655 = vmatpush3.bf16.msra.mxu0 %v3968_v29 }
 0x261   : > { %v848_v47 = vmax.f32 %v808_v24, 0.0  ;;  %3656 = vmatprep.subr.bf16.mxu0 %v4087_v1  ;;  %v3971_v24 = vld [vmem:[%s5477_s1 + $0x110] sm:$0xff]  }
 0x263   : > { %v867_v54 = vpack.c.bf16 %v848_v47, %v847_v42 }
 0x264   : > { %3657 = vmatpush3.bf16.msra.mxu0 %v3969_v40 }
 0x265   : > { %3555 = vmatmul.mubr.bf16.gmra.mrb[112].mxu0 %v867_v54  ;;  %3658 = vmatprep.subr.bf16.mxu0 %v4087_v1  ;;  %v3972_v54 = vld [vmem:[%s5477_s1 + $0x118] sm:$0xff]  }
 0x266   : > { %3666 = vmatprep.mubr.msk.bf16.mxu0 %vm4088_vm0, %v4087_v1 }
 0x268   : > { %3659 = vmatpush3.bf16.msra.mxu0 %v3970_v34 }
 0x269   : > { %3660 = vmatprep.subr.bf16.mxu0 %v4087_v1 }
 0x26c   : > { %3661 = vmatpush3.bf16.msra.mxu0 %v3971_v24 }
 0x26d   : > { %3662 = vmatprep.subr.bf16.mxu0 %v4087_v1 }
 0x270   : > { %3663 = vmatpush3.bf16.msra.mxu0 %v3972_v54 }
 0x271   : > { %3664 = vmatprep.subr.bf16.mxu0 %v4087_v1 }
 0x2a8   : > { %v971_v31 = vpop.f32.mrb[40].mxu0 }
 0x2a9   : > { %v972_v37 = vadd.f32 %v4662_v17, %v971_v31  ;;  %v3484_v45 = vpop.f32.mrb[41].mxu0 }
 0x2aa   : > { %v974_v59 = vpop.f32.mrb[42].mxu0 }
 0x2ab   : > { %v975_v0 = vadd.f32 %v4662_v17, %v974_v59  ;;  %v3485_v14 = vpop.f32.mrb[43].mxu0  ;;  %v1122_v30 = vmax.f32 %v972_v37, 0.0  ;;  %v3973_v59 = vld [vmem:[%s5477_s1 + $0x120] sm:$0xff]  }
 0x2ac   : > { %3665 = vmatpush3.bf16.msra.mxu0 %v3973_v59 }
 0x2ad   : > { %v1123_v38 = vmax.f32 %v975_v0, 0.0  ;;  %3742 = vmatprep.subr.bf16.mxu0 %v4087_v1 }
 0x2af   : > { %v1160_v11 = vpack.c.bf16 %v1123_v38, %v1122_v30 }
 0x2b0   : > { %v979_v41 = vpop.f32.mrb[44].mxu0 }
 0x2b1   : > { %v980_v46 = vadd.f32 %v4662_v17, %v979_v41  ;;  %v3488_v48 = vpop.f32.mrb[45].mxu0  ;;  %3575 = vmatmul.mubr.bf16.vlgmr.msra.gmra.mrb[112].mxu1 %v1160_v11 }
 0x2b2   : > { %v982_v51 = vpop.f32.mrb[46].mxu0  ;;  %3578 = vmatprep.mubr.msk.bf16.mxu1 %vm4088_vm0, %v4087_v1 }
 0x2b3   : > { %v983_v52 = vadd.f32 %v4662_v17, %v982_v51  ;;  %v3489_v53 = vpop.f32.mrb[47].mxu0  ;;  %v1124_v57 = vmax.f32 %v980_v46, 0.0 }
 0x2b5   : > { %v1125_v58 = vmax.f32 %v983_v52, 0.0 }
 0x2b7   : > { %v1161_v60 = vpack.c.bf16 %v1125_v58, %v1124_v57 }
 0x2b8   : > { %v987_v63 = vpop.f32.mrb[48].mxu0 }
 0x2b9   : > { %v988_v3 = vadd.f32 %v4662_v17, %v987_v63  ;;  %v3492_v6 = vpop.f32.mrb[49].mxu0  ;;  %3579 = vmatmul.mubr.bf16.gmra.mrb[116].mxu1 %v1161_v60 }
 0x2ba   : > { %v990_v13 = vpop.f32.mrb[50].mxu0  ;;  %3582 = vmatprep.mubr.msk.bf16.mxu1 %vm4088_vm0, %v4087_v1 }
 0x2bb   : > { %v991_v16 = vadd.f32 %v4662_v17, %v990_v13  ;;  %v3493_v18 = vpop.f32.mrb[51].mxu0  ;;  %v1126_v21 = vmax.f32 %v988_v3, 0.0 }
 0x2bd   : > { %v1127_v22 = vmax.f32 %v991_v16, 0.0 }
 0x2bf   : > { %v1162_v23 = vpack.c.bf16 %v1127_v22, %v1126_v21 }
 0x2c0   : > { %v995_v25 = vpop.f32.mrb[52].mxu0 }
 0x2c1   : > { %v996_v26 = vadd.f32 %v4662_v17, %v995_v25  ;;  %v3496_v32 = vpop.f32.mrb[53].mxu0  ;;  %3583 = vmatmul.mubr.bf16.gmra.mrb[120].mxu1 %v1162_v23 }
 0x2c2   : > { %v998_v39 = vpop.f32.mrb[54].mxu0  ;;  %3586 = vmatprep.mubr.msk.bf16.mxu1 %vm4088_vm0, %v4087_v1 }
 0x2c3   : > { %v999_v10 = vadd.f32 %v4662_v17, %v998_v39  ;;  %v3497_v15 = vpop.f32.mrb[55].mxu0  ;;  %v1128_v33 = vmax.f32 %v996_v26, 0.0 }
 0x2c5   : > { %v1129_v42 = vmax.f32 %v999_v10, 0.0 }
 0x2c7   : > { %v1163_v47 = vpack.c.bf16 %v1129_v42, %v1128_v33 }
 0x2c8   : > { %v1003_v2 = vpop.f32.mrb[56].mxu0 }
 0x2c9   : > { %v1004_v7 = vadd.f32 %v4662_v17, %v1003_v2  ;;  %v3500_v29 = vpop.f32.mrb[57].mxu0  ;;  %3587 = vmatmul.mubr.bf16.gmra.mrb[124].mxu1 %v1163_v47 }
 0x2ca   : > { %v1006_v31 = vpop.f32.mrb[58].mxu0  ;;  %3590 = vmatprep.mubr.msk.bf16.mxu1 %vm4088_vm0, %v4087_v1 }
 0x2cb   : > { %v1007_v37 = vadd.f32 %v4662_v17, %v1006_v31  ;;  %v3501_v45 = vpop.f32.mrb[59].mxu0  ;;  %v1130_v0 = vmax.f32 %v1004_v7, 0.0 }
 0x2cd   : > { %v1131_v14 = vmax.f32 %v1007_v37, 0.0 }
 0x2cf   : > { %v1164_v30 = vpack.c.bf16 %v1131_v14, %v1130_v0 }
 0x2d0   : > { %v1011_v38 = vpop.f32.mrb[60].mxu0 }
 0x2d1   : > { %v1012_v11 = vadd.f32 %v4662_v17, %v1011_v38  ;;  %v3504_v40 = vpop.f32.mrb[61].mxu0  ;;  %3591 = vmatmul.mubr.bf16.gmra.mrb[128].mxu1 %v1164_v30 }
 0x2d2   : > { %v1014_v41 = vpop.f32.mrb[62].mxu0  ;;  %3594 = vmatprep.mubr.msk.bf16.mxu1 %vm4088_vm0, %v4087_v1 }
 0x2d3   : > { %v1015_v46 = vadd.f32 %v4662_v17, %v1014_v41  ;;  %v3505_v48 = vpop.f32.mrb[63].mxu0  ;;  %v1132_v51 = vmax.f32 %v1012_v11, 0.0 }
 0x2d5   : > { %v1133_v52 = vmax.f32 %v1015_v46, 0.0 }
 0x2d7   : > { %v1165_v53 = vpack.c.bf16 %v1133_v52, %v1132_v51 }
 0x2d8   : > { %v1019_v57 = vpop.f32.mrb[64].mxu0 }
 0x2d9   : > { %v1020_v58 = vadd.f32 %v4662_v17, %v1019_v57  ;;  %v3508_v60 = vpop.f32.mrb[65].mxu0  ;;  %3595 = vmatmul.mubr.bf16.gmra.mrb[132].mxu1 %v1165_v53 }
 0x2da   : > { %v1022_v63 = vpop.f32.mrb[66].mxu0  ;;  %3598 = vmatprep.mubr.msk.bf16.mxu1 %vm4088_vm0, %v4087_v1 }
 0x2db   : > { %v1023_v3 = vadd.f32 %v4662_v17, %v1022_v63  ;;  %v3509_v6 = vpop.f32.mrb[67].mxu0  ;;  %v1134_v13 = vmax.f32 %v1020_v58, 0.0 }
 0x2dd   : > { %v1135_v16 = vmax.f32 %v1023_v3, 0.0 }
 0x2df   : > { %v1166_v18 = vpack.c.bf16 %v1135_v16, %v1134_v13 }
 0x2e0   : > { %v1027_v21 = vpop.f32.mrb[68].mxu0 }
 0x2e1   : > { %v1028_v22 = vadd.f32 %v4662_v17, %v1027_v21  ;;  %v3512_v23 = vpop.f32.mrb[69].mxu0  ;;  %3599 = vmatmul.mubr.bf16.gmra.mrb[136].mxu1 %v1166_v18 }
 0x2e2   : > { %v1030_v25 = vpop.f32.mrb[70].mxu0  ;;  %3602 = vmatprep.mubr.msk.bf16.mxu1 %vm4088_vm0, %v4087_v1 }
 0x2e3   : > { %v1031_v26 = vadd.f32 %v4662_v17, %v1030_v25  ;;  %v3513_v32 = vpop.f32.mrb[71].mxu0  ;;  %v1136_v34 = vmax.f32 %v1028_v22, 0.0 }
 0x2e5   : > { %v1137_v39 = vmax.f32 %v1031_v26, 0.0 }
 0x2e7   : > { %v1167_v10 = vpack.c.bf16 %v1137_v39, %v1136_v34 }
 0x2e8   : > { %v1035_v15 = vpop.f32.mrb[72].mxu0 }
 0x2e9   : > { %v1036_v24 = vadd.f32 %v4662_v17, %v1035_v15  ;;  %v3516_v33 = vpop.f32.mrb[73].mxu0  ;;  %3603 = vmatmul.mubr.bf16.gmra.mrb[140].mxu1 %v1167_v10 }
 0x2ea   : > { %v1038_v42 = vpop.f32.mrb[74].mxu0  ;;  %3606 = vmatprep.mubr.msk.bf16.mxu1 %vm4088_vm0, %v4087_v1 }
 0x2eb   : > { %v1039_v47 = vadd.f32 %v4662_v17, %v1038_v42  ;;  %v3517_v54 = vpop.f32.mrb[75].mxu0  ;;  %v1138_v2 = vmax.f32 %v1036_v24, 0.0 }
 0x2ed   : > { %v1139_v7 = vmax.f32 %v1039_v47, 0.0 }
 0x2ef   : > { %v1168_v29 = vpack.c.bf16 %v1139_v7, %v1138_v2 }
 0x2f0   : > { %v1043_v31 = vpop.f32.mrb[76].mxu0 }
 0x2f1   : > { %v1044_v37 = vadd.f32 %v4662_v17, %v1043_v31  ;;  %v3520_v45 = vpop.f32.mrb[77].mxu0  ;;  %3607 = vmatmul.mubr.bf16.gmra.mrb[144].mxu1 %v1168_v29 }
 0x2f2   : > { %v1046_v59 = vpop.f32.mrb[78].mxu0  ;;  %3610 = vmatprep.mubr.msk.bf16.mxu1 %vm4088_vm0, %v4087_v1 }
 0x2f3   : > { %v1047_v0 = vadd.f32 %v4662_v17, %v1046_v59  ;;  %v3521_v14 = vpop.f32.mrb[79].mxu0  ;;  %v1140_v30 = vmax.f32 %v1044_v37, 0.0 }
 0x2f5   : > { %v1141_v38 = vmax.f32 %v1047_v0, 0.0 }
 0x2f7   : > { %v1169_v11 = vpack.c.bf16 %v1141_v38, %v1140_v30 }
 0x2f8   : > { %v1051_v40 = vpop.f32.mrb[80].mxu0 }
 0x2f9   : > { %v1052_v41 = vadd.f32 %v4662_v17, %v1051_v40  ;;  %v3524_v46 = vpop.f32.mrb[81].mxu0  ;;  %3611 = vmatmul.mubr.bf16.gmra.mrb[148].mxu1 %v1169_v11 }
 0x2fa   : > { %v1054_v48 = vpop.f32.mrb[82].mxu0  ;;  %3614 = vmatprep.mubr.msk.bf16.mxu1 %vm4088_vm0, %v4087_v1 }
 0x2fb   : > { %v1055_v51 = vadd.f32 %v4662_v17, %v1054_v48  ;;  %v3525_v52 = vpop.f32.mrb[83].mxu0  ;;  %v1142_v53 = vmax.f32 %v1052_v41, 0.0 }
 0x2fd   : > { %v1143_v57 = vmax.f32 %v1055_v51, 0.0 }
 0x2ff   : > { %v1170_v58 = vpack.c.bf16 %v1143_v57, %v1142_v53 }
 0x300   : > { %v1059_v60 = vpop.f32.mrb[84].mxu0 }
 0x301   : > { %v1060_v63 = vadd.f32 %v4662_v17, %v1059_v60  ;;  %v3528_v3 = vpop.f32.mrb[85].mxu0  ;;  %3615 = vmatmul.mubr.bf16.gmra.mrb[152].mxu1 %v1170_v58 }
 0x302   : > { %v1062_v6 = vpop.f32.mrb[86].mxu0  ;;  %3618 = vmatprep.mubr.msk.bf16.mxu1 %vm4088_vm0, %v4087_v1 }
 0x303   : > { %v1063_v13 = vadd.f32 %v4662_v17, %v1062_v6  ;;  %v3529_v16 = vpop.f32.mrb[87].mxu0  ;;  %v1144_v18 = vmax.f32 %v1060_v63, 0.0 }
 0x305   : > { %v1145_v21 = vmax.f32 %v1063_v13, 0.0 }
 0x307   : > { %v1171_v22 = vpack.c.bf16 %v1145_v21, %v1144_v18 }
 0x308   : > { %v1067_v23 = vpop.f32.mrb[88].mxu0 }
 0x309   : > { %v1068_v25 = vadd.f32 %v4662_v17, %v1067_v23  ;;  %v3532_v26 = vpop.f32.mrb[89].mxu0  ;;  %3619 = vmatmul.mubr.bf16.gmra.mrb[156].mxu1 %v1171_v22 }
 0x30a   : > { %v1070_v32 = vpop.f32.mrb[90].mxu0  ;;  %3622 = vmatprep.mubr.msk.bf16.mxu1 %vm4088_vm0, %v4087_v1 }
 0x30b   : > { %v1071_v34 = vadd.f32 %v4662_v17, %v1070_v32  ;;  %v3533_v39 = vpop.f32.mrb[91].mxu0  ;;  %v1146_v10 = vmax.f32 %v1068_v25, 0.0 }
 0x30d   : > { %v1147_v15 = vmax.f32 %v1071_v34, 0.0 }
 0x30f   : > { %v1172_v24 = vpack.c.bf16 %v1147_v15, %v1146_v10 }
 0x310   : > { %v1075_v33 = vpop.f32.mrb[92].mxu0 }
 0x311   : > { %v1076_v42 = vadd.f32 %v4662_v17, %v1075_v33  ;;  %v3536_v47 = vpop.f32.mrb[93].mxu0  ;;  %3623 = vmatmul.mubr.bf16.gmra.mrb[160].mxu1 %v1172_v24 }
 0x312   : > { %v1078_v54 = vpop.f32.mrb[94].mxu0  ;;  %3626 = vmatprep.mubr.msk.bf16.mxu1 %vm4088_vm0, %v4087_v1 }
 0x313   : > { %v1079_v2 = vadd.f32 %v4662_v17, %v1078_v54  ;;  %v3537_v7 = vpop.f32.mrb[95].mxu0  ;;  %v1148_v29 = vmax.f32 %v1076_v42, 0.0 }
 0x315   : > { %v1149_v31 = vmax.f32 %v1079_v2, 0.0 }
 0x317   : > { %v1173_v37 = vpack.c.bf16 %v1149_v31, %v1148_v29 }
 0x318   : > { %v1083_v45 = vpop.f32.mrb[96].mxu0 }
 0x319   : > { %v1084_v59 = vadd.f32 %v4662_v17, %v1083_v45  ;;  %v3540_v0 = vpop.f32.mrb[97].mxu0  ;;  %3627 = vmatmul.mubr.bf16.gmra.mrb[164].mxu1 %v1173_v37 }
 0x31a   : > { %v1086_v14 = vpop.f32.mrb[98].mxu0  ;;  %3630 = vmatprep.mubr.msk.bf16.mxu1 %vm4088_vm0, %v4087_v1  ;;  %v3974_v0 = vld [vmem:[%s5477_s1 + $0x128] sm:$0xff]  }
 0x31b   : > { %v1087_v30 = vadd.f32 %v4662_v17, %v1086_v14  ;;  %v3541_v38 = vpop.f32.mrb[99].mxu0  ;;  %v1150_v11 = vmax.f32 %v1084_v59, 0.0  ;;  %v4089_v14 = vmov 0  }
 0x31c   : > { %2028 = vmatprep.subr.bf16.mxu1 %v4089_v14  ;;  %v4780_v38 = vld [vmem:[%s5478_s2 + $0x3] ss:$0 sm:$0xff] }
 0x31d   : > { %v1151_v40 = vmax.f32 %v1087_v30, 0.0  ;;  %2029 = vmatpush1.bf16.msra.mxu1 %v3974_v0  ;;  %v3977_v30 = vld [vmem:[%s5477_s1 + $0x140] sm:$0xff]  }
 0x31e   : > { %2030 = vmatprep.subr.bf16.mxu1 %v4089_v14 }
 0x31f   : > { %v1174_v41 = vpack.c.bf16 %v1151_v40, %v1150_v11  ;;  %v3978_v11 = vld [vmem:[%s5477_s1 + $0x148] sm:$0xff]  }
 0x320   : > { %v1091_v46 = vpop.f32.mrb[100].mxu0 }
 0x321   : > { %v1092_v48 = vadd.f32 %v4662_v17, %v1091_v46  ;;  %v3544_v51 = vpop.f32.mrb[101].mxu0  ;;  %3631 = vmatmul.mubr.bf16.gmra.mrb[168].mxu1 %v1174_v41 }
 0x322   : > { %v1094_v52 = vpop.f32.mrb[102].mxu0  ;;  %3634 = vmatprep.mubr.msk.bf16.mxu1 %vm4088_vm0, %v4087_v1  ;;  %v4789_v51 = vld [vmem:[%s5478_s2 + $0x6] ss:$0 sm:$0xff] }
 0x323   : > { %v1095_v53 = vadd.f32 %v4662_v17, %v1094_v52  ;;  %v3545_v57 = vpop.f32.mrb[103].mxu0  ;;  %v1152_v58 = vmax.f32 %v1092_v48, 0.0 }
 0x325   : > { %v1153_v60 = vmax.f32 %v1095_v53, 0.0 }
 0x327   : > { %v1175_v63 = vpack.c.bf16 %v1153_v60, %v1152_v58 }
 0x328   : > { %v1099_v3 = vpop.f32.mrb[104].mxu0 }
 0x329   : > { %v1100_v6 = vadd.f32 %v4662_v17, %v1099_v3  ;;  %v3548_v13 = vpop.f32.mrb[105].mxu0  ;;  %3635 = vmatmul.mubr.bf16.gmra.mrb[172].mxu1 %v1175_v63 }
 0x32a   : > { %v1102_v16 = vpop.f32.mrb[106].mxu0  ;;  %3638 = vmatprep.mubr.msk.bf16.mxu1 %vm4088_vm0, %v4087_v1 }
 0x32b   : > { %v1103_v18 = vadd.f32 %v4662_v17, %v1102_v16  ;;  %v3549_v21 = vpop.f32.mrb[107].mxu0  ;;  %v1154_v22 = vmax.f32 %v1100_v6, 0.0 }
 0x32d   : > { %v1155_v23 = vmax.f32 %v1103_v18, 0.0 }
 0x32f   : > { %v1176_v25 = vpack.c.bf16 %v1155_v23, %v1154_v22 }
 0x330   : > { %v1107_v26 = vpop.f32.mrb[108].mxu0 }
 0x331   : > { %v1108_v32 = vadd.f32 %v4662_v17, %v1107_v26  ;;  %v3552_v34 = vpop.f32.mrb[109].mxu0  ;;  %3639 = vmatmul.mubr.bf16.gmra.mrb[176].mxu1 %v1176_v25  ;;  %v3979_v25 = vld [vmem:[%s5477_s1 + $0x150] sm:$0xff]  }
 0x332   : > { %v1110_v39 = vpop.f32.mrb[110].mxu0  ;;  %3642 = vmatprep.mubr.msk.bf16.mxu1 %vm4088_vm0, %v4087_v1 }
 0x333   : > { %v1111_v10 = vadd.f32 %v4662_v17, %v1110_v39  ;;  %v3553_v15 = vpop.f32.mrb[111].mxu0  ;;  %v1156_v24 = vmax.f32 %v1108_v32, 0.0 }
 0x335   : > { %v1157_v33 = vmax.f32 %v1111_v10, 0.0 }
 0x337   : > { %v1177_v42 = vpack.c.bf16 %v1157_v33, %v1156_v24 }
 0x338   : > { %v1115_v47 = vpop.f32.mrb[112].mxu0 }
 0x339   : > { %v1116_v54 = vadd.f32 %v4662_v17, %v1115_v47  ;;  %v3556_v2 = vpop.f32.mrb[113].mxu0  ;;  %3643 = vmatmul.mubr.bf16.gmra.mrb[180].mxu1 %v1177_v42 }
 0x33a   : > { %v1118_v7 = vpop.f32.mrb[114].mxu0  ;;  %3646 = vmatprep.mubr.msk.bf16.mxu1 %vm4088_vm0, %v4087_v1 }
 0x33b   : > { %v1119_v29 = vadd.f32 %v4662_v17, %v1118_v7  ;;  %v3557_v31 = vpop.f32.mrb[115].mxu0  ;;  %v1158_v37 = vmax.f32 %v1116_v54, 0.0  ;;  %v3975_v17 = vld [vmem:[%s5477_s1 + $0x130] sm:$0xff]  }
 0x33c   : > { %2031 = vmatpush1.bf16.msra.mxu1 %v3975_v17 }
 0x33d   : > { %v1159_v45 = vmax.f32 %v1119_v29, 0.0  ;;  %2032 = vmatprep.subr.bf16.mxu1 %v4089_v14 }
 0x33f   : > { %v1178_v59 = vpack.c.bf16 %v1159_v45, %v1158_v37  ;;  %v3980_v37 = vld [vmem:[%s5477_s1 + $0x158] sm:$0xff]  }
 0x341   : > { %3647 = vmatmul.mubr.bf16.gmra.mrb[184].mxu1 %v1178_v59 }
 0x342   : > { %3088 = vmatprep.mubr.msk.bf16.mxu1 %vm291_vm2, %v4181_v9  ;;  %v3976_v9 = vld [vmem:[%s5477_s1 + $0x138] sm:$0xff]  }
 0x343   : > { %2033 = vmatpush1.bf16.msra.mxu1 %v3976_v9 }
 0x344   : > { %2034 = vmatprep.subr.bf16.mxu1 %v4089_v14 }
 0x347   : > { %2035 = vmatpush1.bf16.msra.mxu1 %v3977_v30 }
 0x348   : > { %2036 = vmatprep.subr.bf16.mxu1 %v4089_v14 }
 0x34b   : > { %2037 = vmatpush1.bf16.msra.mxu1 %v3978_v11 }
 0x34c   : > { %2038 = vmatprep.subr.bf16.mxu1 %v4089_v14 }
 0x34f   : > { %2039 = vmatpush1.bf16.msra.mxu1 %v3979_v25 }
 0x350   : > { %2040 = vmatprep.subr.bf16.mxu1 %v4089_v14 }
 0x353   : > { %2041 = vmatpush1.bf16.msra.mxu1 %v3980_v37 }
 0x354   : > { %2042 = vmatprep.subr.bf16.mxu1 %v4089_v14 }
 0x384   : > { %v1282_v40 = vpop.f32.mrb[112].mxu1 }
 0x385   : > { %v1283_v41 = vadd.f32 %v4780_v38, %v1282_v40  ;;  %v3576_v46 = vpop.f32.mrb[113].mxu1 }
 0x386   : > { %v1285_v48 = vpop.f32.mrb[114].mxu1  ;;  %v3981_v46 = vld [vmem:[%s5477_s1 + $0x160] sm:$0xff]  }
 0x387   : > { %v1433_v52 = vmax.f32 %v1283_v41, 0.0  ;;  %v1286_v53 = vadd.f32 %v4780_v38, %v1285_v48  ;;  %v3577_v57 = vpop.f32.mrb[115].mxu1  ;;  %2043 = vmatpush1.bf16.msra.mxu1 %v3981_v46 }
 0x388   : > { %2044 = vmatprep.subr.bf16.mxu1 %v4089_v14 }
 0x389   : > { %v1434_v58 = vmax.f32 %v1286_v53, 0.0  ;;  %v1787_v60 = vmul.f32 %v4789_v51, %v1433_v52 }
 0x38b   : > { %v1471_v63 = vpack.c.bf16 %v1434_v58, %v1433_v52  ;;  %1825 = vadd.xlane.f32.xlu0 %v1787_v60  ;;  %v1788_v16 = vmul.f32 %v4789_v51, %v1434_v58 }
 0x38c   : > { %v1290_v3 = vpop.f32.mrb[116].mxu1 }
 0x38d   : > { %v1291_v6 = vadd.f32 %v4780_v38, %v1290_v3  ;;  %v3580_v13 = vpop.f32.mrb[117].mxu1  ;;  %3667 = vmatmul.mubr.bf16.vlgmr.msra.gmra.mrb[116].mxu0 %v1471_v63 }
 0x38e   : > { %v1293_v18 = vpop.f32.mrb[118].mxu1  ;;  %3670 = vmatprep.mubr.msk.bf16.mxu0 %vm4088_vm0, %v4087_v1 }
 0x38f   : > { %v1435_v21 = vmax.f32 %v1291_v6, 0.0  ;;  %v1294_v22 = vadd.f32 %v4780_v38, %v1293_v18  ;;  %1827 = vadd.xlane.f32.xlu0 %v1788_v16  ;;  %v3581_v23 = vpop.f32.mrb[119].mxu1 }
 0x391   : > { %v1436_v26 = vmax.f32 %v1294_v22, 0.0  ;;  %v1789_v32 = vmul.f32 %v4789_v51, %v1435_v21  ;;  %v3982_v22 = vld [vmem:[%s5477_s1 + $0x168] sm:$0xff]  }
 0x392   : > { %2045 = vmatpush1.bf16.msra.mxu1 %v3982_v22 }
 0x393   : > { %v1472_v34 = vpack.c.bf16 %v1436_v26, %v1435_v21  ;;  %1829 = vadd.xlane.f32.xlu1 %v1789_v32  ;;  %v1790_v24 = vmul.f32 %v4789_v51, %v1436_v26  ;;  %2046 = vmatprep.subr.bf16.mxu1 %v4089_v14 }
 0x394   : > { %v1298_v39 = vpop.f32.mrb[120].mxu1 }
 0x395   : > { %v1299_v10 = vadd.f32 %v4780_v38, %v1298_v39  ;;  %v3584_v15 = vpop.f32.mrb[121].mxu1  ;;  %3671 = vmatmul.mubr.bf16.gmra.mrb[120].mxu0 %v1472_v34 }
 0x396   : > { %v1301_v33 = vpop.f32.mrb[122].mxu1  ;;  %3674 = vmatprep.mubr.msk.bf16.mxu0 %vm4088_vm0, %v4087_v1 }
 0x397   : > { %v1437_v42 = vmax.f32 %v1299_v10, 0.0  ;;  %v1302_v47 = vadd.f32 %v4780_v38, %v1301_v33  ;;  %1831 = vadd.xlane.f32.xlu1 %v1790_v24  ;;  %v3585_v54 = vpop.f32.mrb[123].mxu1 }
 0x399   : > { %v1438_v2 = vmax.f32 %v1302_v47, 0.0  ;;  %v1791_v7 = vmul.f32 %v4789_v51, %v1437_v42 }
 0x39b   : > { %v1473_v29 = vpack.c.bf16 %v1438_v2, %v1437_v42  ;;  %1833 = vadd.xlane.f32.xlu0 %v1791_v7  ;;  %v1792_v31 = vmul.f32 %v4789_v51, %v1438_v2 }
 0x39c   : > { %v1306_v45 = vpop.f32.mrb[124].mxu1 }
 0x39d   : > { %v1307_v59 = vadd.f32 %v4780_v38, %v1306_v45  ;;  %1835 = vadd.xlane.f32.xlu1 %v1792_v31  ;;  %v3588_v0 = vpop.f32.mrb[125].mxu1  ;;  %3675 = vmatmul.mubr.bf16.gmra.mrb[124].mxu0 %v1473_v29 }
 0x39e   : > { %v1309_v17 = vpop.f32.mrb[126].mxu1  ;;  %3678 = vmatprep.mubr.msk.bf16.mxu0 %vm4088_vm0, %v4087_v1 }
 0x39f   : > { %v1439_v9 = vmax.f32 %v1307_v59, 0.0  ;;  %v1310_v30 = vadd.f32 %v4780_v38, %v1309_v17  ;;  %v3589_v11 = vpop.f32.mrb[127].mxu1 }
 0x3a1   : > { %v1440_v40 = vmax.f32 %v1310_v30, 0.0  ;;  %v1793_v41 = vmul.f32 %v4789_v51, %v1439_v9 }
 0x3a3   : > { %v1474_v48 = vpack.c.bf16 %v1440_v40, %v1439_v9  ;;  %1837 = vadd.xlane.f32.xlu0 %v1793_v41  ;;  %v1794_v52 = vmul.f32 %v4789_v51, %v1440_v40  ;;  %v3983_v9 = vld [vmem:[%s5477_s1 + $0x170] sm:$0xff]  }
 0x3a4   : > { %v1314_v53 = vpop.f32.mrb[128].mxu1  ;;  %2047 = vmatpush1.bf16.msra.mxu1 %v3983_v9 }
 0x3a5   : > { %v1315_v57 = vadd.f32 %v4780_v38, %v1314_v53  ;;  %1839 = vadd.xlane.f32.xlu1 %v1794_v52  ;;  %v3592_v58 = vpop.f32.mrb[129].mxu1  ;;  %3679 = vmatmul.mubr.bf16.gmra.mrb[128].mxu0 %v1474_v48 }
 0x3a6   : > { %v1317_v60 = vpop.f32.mrb[130].mxu1  ;;  %3682 = vmatprep.mubr.msk.bf16.mxu0 %vm4088_vm0, %v4087_v1  ;;  %2048 = vmatprep.subr.bf16.mxu1 %v4089_v14 }
 0x3a7   : > { %v1441_v63 = vmax.f32 %v1315_v57, 0.0  ;;  %v1318_v3 = vadd.f32 %v4780_v38, %v1317_v60  ;;  %v3593_v6 = vpop.f32.mrb[131].mxu1 }
 0x3a9   : > { %v1442_v13 = vmax.f32 %v1318_v3, 0.0  ;;  %v1795_v16 = vmul.f32 %v4789_v51, %v1441_v63 }
 0x3ab   : > { %v1475_v18 = vpack.c.bf16 %v1442_v13, %v1441_v63  ;;  %1841 = vadd.xlane.f32.xlu0 %v1795_v16  ;;  %v1796_v21 = vmul.f32 %v4789_v51, %v1442_v13  ;;  %v3984_v63 = vld [vmem:[%s5477_s1 + $0x178] sm:$0xff]  }
 0x3ac   : > { %v1322_v23 = vpop.f32.mrb[132].mxu1  ;;  %2049 = vmatpush1.bf16.msra.mxu1 %v3984_v63 }
 0x3ad   : > { %v1323_v25 = vadd.f32 %v4780_v38, %v1322_v23  ;;  %1843 = vadd.xlane.f32.xlu1 %v1796_v21  ;;  %v3596_v26 = vpop.f32.mrb[133].mxu1  ;;  %3683 = vmatmul.mubr.bf16.gmra.mrb[132].mxu0 %v1475_v18 }
 0x3ae   : > { %v1325_v32 = vpop.f32.mrb[134].mxu1  ;;  %3686 = vmatprep.mubr.msk.bf16.mxu0 %vm4088_vm0, %v4087_v1  ;;  %2050 = vmatprep.subr.bf16.mxu1 %v4089_v14 }
 0x3af   : > { %v1443_v34 = vmax.f32 %v1323_v25, 0.0  ;;  %v1326_v39 = vadd.f32 %v4780_v38, %v1325_v32  ;;  %v3597_v10 = vpop.f32.mrb[135].mxu1 }
 0x3b1   : > { %v1444_v15 = vmax.f32 %v1326_v39, 0.0  ;;  %v1797_v24 = vmul.f32 %v4789_v51, %v1443_v34 }
 0x3b3   : > { %v1476_v33 = vpack.c.bf16 %v1444_v15, %v1443_v34  ;;  %1845 = vadd.xlane.f32.xlu0 %v1797_v24  ;;  %v1798_v42 = vmul.f32 %v4789_v51, %v1444_v15 }
 0x3b4   : > { %v1330_v47 = vpop.f32.mrb[136].mxu1 }
 0x3b5   : > { %v1331_v54 = vadd.f32 %v4780_v38, %v1330_v47  ;;  %1847 = vadd.xlane.f32.xlu1 %v1798_v42  ;;  %v3600_v2 = vpop.f32.mrb[137].mxu1  ;;  %3687 = vmatmul.mubr.bf16.gmra.mrb[136].mxu0 %v1476_v33 }
 0x3b6   : > { %v1333_v7 = vpop.f32.mrb[138].mxu1  ;;  %3690 = vmatprep.mubr.msk.bf16.mxu0 %vm4088_vm0, %v4087_v1  ;;  %v3985_v2 = vld [vmem:[%s5477_s1 + $0x180] sm:$0xff]  }
 0x3b7   : > { %v1445_v29 = vmax.f32 %v1331_v54, 0.0  ;;  %v1334_v31 = vadd.f32 %v4780_v38, %v1333_v7  ;;  %v3601_v37 = vpop.f32.mrb[139].mxu1  ;;  %2051 = vmatpush1.bf16.msra.mxu1 %v3985_v2 }
 0x3b8   : > { %2052 = vmatprep.subr.bf16.mxu1 %v4089_v14 }
 0x3b9   : > { %v1446_v45 = vmax.f32 %v1334_v31, 0.0  ;;  %v1799_v59 = vmul.f32 %v4789_v51, %v1445_v29 }
 0x3bb   : > { %v1477_v0 = vpack.c.bf16 %v1446_v45, %v1445_v29  ;;  %1849 = vadd.xlane.f32.xlu0 %v1799_v59  ;;  %v1800_v17 = vmul.f32 %v4789_v51, %v1446_v45 }
 0x3bc   : > { %v1338_v30 = vpop.f32.mrb[140].mxu1 }
 0x3bd   : > { %v1339_v11 = vadd.f32 %v4780_v38, %v1338_v30  ;;  %1851 = vadd.xlane.f32.xlu1 %v1800_v17  ;;  %v3604_v40 = vpop.f32.mrb[141].mxu1  ;;  %3691 = vmatmul.mubr.bf16.gmra.mrb[140].mxu0 %v1477_v0 }
 0x3be   : > { %v1341_v41 = vpop.f32.mrb[142].mxu1  ;;  %3694 = vmatprep.mubr.msk.bf16.mxu0 %vm4088_vm0, %v4087_v1 }
 0x3bf   : > { %v1447_v46 = vmax.f32 %v1339_v11, 0.0  ;;  %v1342_v48 = vadd.f32 %v4780_v38, %v1341_v41  ;;  %v3605_v52 = vpop.f32.mrb[143].mxu1  ;;  %v3986_v41 = vld [vmem:[%s5477_s1 + $0x188] ss:$0 sps:$4 sm:$0x11]  }
 0x3c1   : > { %v1448_v53 = vmax.f32 %v1342_v48, 0.0  ;;  %v1801_v57 = vmul.f32 %v4789_v51, %v1447_v46 }
 0x3c3   : > { %v1478_v58 = vpack.c.bf16 %v1448_v53, %v1447_v46  ;;  %1853 = vadd.xlane.f32.xlu0 %v1801_v57  ;;  %v1802_v60 = vmul.f32 %v4789_v51, %v1448_v53  ;;  %v2026_v53 = vsel %vm349_vm1, %v3986_v41, 0 }
 0x3c4   : > { %v1346_v3 = vpop.f32.mrb[144].mxu1  ;;  %2053 = vmatpush1.bf16.msra.mxu1 %v2026_v53 }
 0x3c5   : > { %v1347_v6 = vadd.f32 %v4780_v38, %v1346_v3  ;;  %1855 = vadd.xlane.f32.xlu1 %v1802_v60  ;;  %v3608_v13 = vpop.f32.mrb[145].mxu1  ;;  %3695 = vmatmul.mubr.bf16.gmra.mrb[144].mxu0 %v1478_v58 }
 0x3c6   : > { %v1349_v16 = vpop.f32.mrb[146].mxu1  ;;  %3698 = vmatprep.mubr.msk.bf16.mxu0 %vm4088_vm0, %v4087_v1 }
 0x3c7   : > { %v1449_v18 = vmax.f32 %v1347_v6, 0.0  ;;  %v1350_v21 = vadd.f32 %v4780_v38, %v1349_v16  ;;  %v3609_v22 = vpop.f32.mrb[147].mxu1 }
 0x3c9   : > { %v1450_v23 = vmax.f32 %v1350_v21, 0.0  ;;  %v1803_v25 = vmul.f32 %v4789_v51, %v1449_v18 }
 0x3cb   : > { %v1479_v26 = vpack.c.bf16 %v1450_v23, %v1449_v18  ;;  %1857 = vadd.xlane.f32.xlu0 %v1803_v25  ;;  %v1804_v32 = vmul.f32 %v4789_v51, %v1450_v23 }
 0x3cc   : > { %v1354_v34 = vpop.f32.mrb[148].mxu1 }
 0x3cd   : > { %v1355_v39 = vadd.f32 %v4780_v38, %v1354_v34  ;;  %1859 = vadd.xlane.f32.xlu1 %v1804_v32  ;;  %v3612_v10 = vpop.f32.mrb[149].mxu1  ;;  %3699 = vmatmul.mubr.bf16.gmra.mrb[148].mxu0 %v1479_v26 }
 0x3ce   : > { %v1357_v15 = vpop.f32.mrb[150].mxu1  ;;  %3702 = vmatprep.mubr.msk.bf16.mxu0 %vm4088_vm0, %v4087_v1 }
 0x3cf   : > { %v1451_v24 = vmax.f32 %v1355_v39, 0.0  ;;  %v1358_v33 = vadd.f32 %v4780_v38, %v1357_v15  ;;  %v3613_v42 = vpop.f32.mrb[151].mxu1 }
 0x3d1   : > { %v1452_v47 = vmax.f32 %v1358_v33, 0.0  ;;  %v1805_v54 = vmul.f32 %v4789_v51, %v1451_v24 }
 0x3d3   : > { %v1480_v7 = vpack.c.bf16 %v1452_v47, %v1451_v24  ;;  %1861 = vadd.xlane.f32.xlu0 %v1805_v54  ;;  %v1806_v29 = vmul.f32 %v4789_v51, %v1452_v47 }
 0x3d4   : > { %v1362_v31 = vpop.f32.mrb[152].mxu1 }
 0x3d5   : > { %v1363_v37 = vadd.f32 %v4780_v38, %v1362_v31  ;;  %1863 = vadd.xlane.f32.xlu1 %v1806_v29  ;;  %v3616_v45 = vpop.f32.mrb[153].mxu1  ;;  %3703 = vmatmul.mubr.bf16.gmra.mrb[152].mxu0 %v1480_v7 }
 0x3d6   : > { %v1365_v59 = vpop.f32.mrb[154].mxu1  ;;  %3706 = vmatprep.mubr.msk.bf16.mxu0 %vm4088_vm0, %v4087_v1 }
 0x3d7   : > { %v1453_v0 = vmax.f32 %v1363_v37, 0.0  ;;  %v1366_v17 = vadd.f32 %v4780_v38, %v1365_v59  ;;  %v3617_v9 = vpop.f32.mrb[155].mxu1 }
 0x3d9   : > { %v1454_v30 = vmax.f32 %v1366_v17, 0.0  ;;  %v1807_v11 = vmul.f32 %v4789_v51, %v1453_v0 }
 0x3db   : > { %v1481_v40 = vpack.c.bf16 %v1454_v30, %v1453_v0  ;;  %1865 = vadd.xlane.f32.xlu0 %v1807_v11  ;;  %v1808_v14 = vmul.f32 %v4789_v51, %v1454_v30 }
 0x3dc   : > { %v1370_v46 = vpop.f32.mrb[156].mxu1 }
 0x3dd   : > { %v1371_v48 = vadd.f32 %v4780_v38, %v1370_v46  ;;  %1867 = vadd.xlane.f32.xlu1 %v1808_v14  ;;  %v3620_v52 = vpop.f32.mrb[157].mxu1  ;;  %3707 = vmatmul.mubr.bf16.gmra.mrb[156].mxu0 %v1481_v40 }
 0x3de   : > { %v1373_v57 = vpop.f32.mrb[158].mxu1  ;;  %3710 = vmatprep.mubr.msk.bf16.mxu0 %vm4088_vm0, %v4087_v1 }
 0x3df   : > { %v1455_v58 = vmax.f32 %v1371_v48, 0.0  ;;  %v1374_v60 = vadd.f32 %v4780_v38, %v1373_v57  ;;  %v3621_v63 = vpop.f32.mrb[159].mxu1 }
 0x3e1   : > { %v1456_v3 = vmax.f32 %v1374_v60, 0.0  ;;  %v1809_v6 = vmul.f32 %v4789_v51, %v1455_v58 }
 0x3e3   : > { %v1482_v13 = vpack.c.bf16 %v1456_v3, %v1455_v58  ;;  %1869 = vadd.xlane.f32.xlu0 %v1809_v6  ;;  %v1810_v16 = vmul.f32 %v4789_v51, %v1456_v3 }
 0x3e4   : > { %v1378_v18 = vpop.f32.mrb[160].mxu1 }
 0x3e5   : > { %v1379_v21 = vadd.f32 %v4780_v38, %v1378_v18  ;;  %1871 = vadd.xlane.f32.xlu1 %v1810_v16  ;;  %v3624_v22 = vpop.f32.mrb[161].mxu1  ;;  %3711 = vmatmul.mubr.bf16.gmra.mrb[160].mxu0 %v1482_v13 }
 0x3e6   : > { %v1381_v23 = vpop.f32.mrb[162].mxu1  ;;  %3714 = vmatprep.mubr.msk.bf16.mxu0 %vm4088_vm0, %v4087_v1 }
 0x3e7   : > { %v1457_v25 = vmax.f32 %v1379_v21, 0.0  ;;  %v1382_v26 = vadd.f32 %v4780_v38, %v1381_v23  ;;  %v3625_v32 = vpop.f32.mrb[163].mxu1 }
 0x3e9   : > { %v1458_v34 = vmax.f32 %v1382_v26, 0.0  ;;  %v1811_v39 = vmul.f32 %v4789_v51, %v1457_v25 }
 0x3eb   : > { %v1483_v10 = vpack.c.bf16 %v1458_v34, %v1457_v25  ;;  %1873 = vadd.xlane.f32.xlu0 %v1811_v39  ;;  %v1812_v15 = vmul.f32 %v4789_v51, %v1458_v34 }
 0x3ec   : > { %v1386_v24 = vpop.f32.mrb[164].mxu1 }
 0x3ed   : > { %v1387_v33 = vadd.f32 %v4780_v38, %v1386_v24  ;;  %1875 = vadd.xlane.f32.xlu1 %v1812_v15  ;;  %v3628_v42 = vpop.f32.mrb[165].mxu1  ;;  %3715 = vmatmul.mubr.bf16.gmra.mrb[164].mxu0 %v1483_v10 }
 0x3ee   : > { %v1389_v47 = vpop.f32.mrb[166].mxu1  ;;  %3718 = vmatprep.mubr.msk.bf16.mxu0 %vm4088_vm0, %v4087_v1 }
 0x3ef   : > { %v1459_v54 = vmax.f32 %v1387_v33, 0.0  ;;  %v1390_v2 = vadd.f32 %v4780_v38, %v1389_v47  ;;  %v3629_v7 = vpop.f32.mrb[167].mxu1 }
 0x3f1   : > { %v1460_v29 = vmax.f32 %v1390_v2, 0.0  ;;  %v1813_v31 = vmul.f32 %v4789_v51, %v1459_v54 }
 0x3f3   : > { %v1484_v37 = vpack.c.bf16 %v1460_v29, %v1459_v54  ;;  %1877 = vadd.xlane.f32.xlu0 %v1813_v31  ;;  %v1814_v45 = vmul.f32 %v4789_v51, %v1460_v29 }
 0x3f4   : > { %v1394_v59 = vpop.f32.mrb[168].mxu1 }
 0x3f5   : > { %v1395_v0 = vadd.f32 %v4780_v38, %v1394_v59  ;;  %1879 = vadd.xlane.f32.xlu1 %v1814_v45  ;;  %v3632_v17 = vpop.f32.mrb[169].mxu1  ;;  %3719 = vmatmul.mubr.bf16.gmra.mrb[168].mxu0 %v1484_v37 }
 0x3f6   : > { %v1397_v9 = vpop.f32.mrb[170].mxu1  ;;  %3722 = vmatprep.mubr.msk.bf16.mxu0 %vm4088_vm0, %v4087_v1 }
 0x3f7   : > { %v1461_v30 = vmax.f32 %v1395_v0, 0.0  ;;  %v1398_v11 = vadd.f32 %v4780_v38, %v1397_v9  ;;  %v3633_v40 = vpop.f32.mrb[171].mxu1 }
 0x3f9   : > { %v1462_v14 = vmax.f32 %v1398_v11, 0.0  ;;  %v1815_v41 = vmul.f32 %v4789_v51, %v1461_v30 }
 0x3fb   : > { %v1485_v46 = vpack.c.bf16 %v1462_v14, %v1461_v30  ;;  %1881 = vadd.xlane.f32.xlu0 %v1815_v41  ;;  %v1816_v48 = vmul.f32 %v4789_v51, %v1462_v14 }
 0x3fc   : > { %v1402_v52 = vpop.f32.mrb[172].mxu1 }
 0x3fd   : > { %v1403_v53 = vadd.f32 %v4780_v38, %v1402_v52  ;;  %1883 = vadd.xlane.f32.xlu1 %v1816_v48  ;;  %v3636_v57 = vpop.f32.mrb[173].mxu1  ;;  %3723 = vmatmul.mubr.bf16.gmra.mrb[172].mxu0 %v1485_v46 }
 0x3fe   : > { %v1405_v58 = vpop.f32.mrb[174].mxu1  ;;  %3726 = vmatprep.mubr.msk.bf16.mxu0 %vm4088_vm0, %v4087_v1  ;;  %v4952_v57 = vld [vmem:[%s5478_s2 + $0x4] ss:$0 sm:$0xff] }
 0x3ff   : > { %v1463_v60 = vmax.f32 %v1403_v53, 0.0  ;;  %v1406_v63 = vadd.f32 %v4780_v38, %v1405_v58  ;;  %v3637_v3 = vpop.f32.mrb[175].mxu1  ;;  %v3987_v53 = vld [vmem:[%s5477_s1 + $0x190] sm:$0xff]  }
 0x400   : > { %3743 = vmatpush3.bf16.msra.mxu0 %v3987_v53 }
 0x401   : > { %v1464_v6 = vmax.f32 %v1406_v63, 0.0  ;;  %v1817_v13 = vmul.f32 %v4789_v51, %v1463_v60  ;;  %3744 = vmatprep.subr.bf16.mxu0 %v4087_v1 }
 0x403   : > { %v1486_v16 = vpack.c.bf16 %v1464_v6, %v1463_v60  ;;  %1885 = vadd.xlane.f32.xlu0 %v1817_v13  ;;  %v1818_v18 = vmul.f32 %v4789_v51, %v1464_v6 }
 0x404   : > { %v1410_v21 = vpop.f32.mrb[176].mxu1 }
 0x405   : > { %v1411_v22 = vadd.f32 %v4780_v38, %v1410_v21  ;;  %1887 = vadd.xlane.f32.xlu1 %v1818_v18  ;;  %v3640_v23 = vpop.f32.mrb[177].mxu1  ;;  %3727 = vmatmul.mubr.bf16.gmra.mrb[176].mxu0 %v1486_v16 }
 0x406   : > { %v1413_v25 = vpop.f32.mrb[178].mxu1  ;;  %3730 = vmatprep.mubr.msk.bf16.mxu0 %vm4088_vm0, %v4087_v1 }
 0x407   : > { %v1465_v26 = vmax.f32 %v1411_v22, 0.0  ;;  %v1414_v32 = vadd.f32 %v4780_v38, %v1413_v25  ;;  %v3641_v34 = vpop.f32.mrb[179].mxu1  ;;  %v3990_v22 = vld [vmem:[%s5477_s1 + $0x1a8] sm:$0xff]  }
 0x409   : > { %v1466_v39 = vmax.f32 %v1414_v32, 0.0  ;;  %v1819_v10 = vmul.f32 %v4789_v51, %v1465_v26 }
 0x40b   : > { %v1487_v15 = vpack.c.bf16 %v1466_v39, %v1465_v26  ;;  %1889 = vadd.xlane.f32.xlu0 %v1819_v10  ;;  %v1820_v24 = vmul.f32 %v4789_v51, %v1466_v39 }
 0x40c   : > { %v1418_v33 = vpop.f32.mrb[180].mxu1 }
 0x40d   : > { %v1419_v42 = vadd.f32 %v4780_v38, %v1418_v33  ;;  %1891 = vadd.xlane.f32.xlu1 %v1820_v24  ;;  %v3644_v47 = vpop.f32.mrb[181].mxu1  ;;  %3731 = vmatmul.mubr.bf16.gmra.mrb[180].mxu0 %v1487_v15 }
 0x40e   : > { %v1421_v54 = vpop.f32.mrb[182].mxu1  ;;  %3734 = vmatprep.mubr.msk.bf16.mxu0 %vm4088_vm0, %v4087_v1 }
 0x40f   : > { %v1467_v2 = vmax.f32 %v1419_v42, 0.0  ;;  %v1422_v7 = vadd.f32 %v4780_v38, %v1421_v54  ;;  %v3645_v29 = vpop.f32.mrb[183].mxu1 }
 0x411   : > { %v1468_v31 = vmax.f32 %v1422_v7, 0.0  ;;  %v1821_v37 = vmul.f32 %v4789_v51, %v1467_v2 }
 0x413   : > { %v1488_v45 = vpack.c.bf16 %v1468_v31, %v1467_v2  ;;  %1893 = vadd.xlane.f32.xlu0 %v1821_v37  ;;  %v1822_v59 = vmul.f32 %v4789_v51, %v1468_v31 }
 0x414   : > { %v1426_v0 = vpop.f32.mrb[184].mxu1 }
 0x415   : > { %v1427_v17 = vadd.f32 %v4780_v38, %v1426_v0  ;;  %1895 = vadd.xlane.f32.xlu1 %v1822_v59  ;;  %v3648_v9 = vpop.f32.mrb[185].mxu1  ;;  %3735 = vmatmul.mubr.bf16.gmra.mrb[184].mxu0 %v1488_v45  ;;  %v3991_v0 = vld [vmem:[%s5477_s1 + $0x1b0] sm:$0xff]  }
 0x416   : > { %v1429_v30 = vpop.f32.mrb[186].mxu1  ;;  %3738 = vmatprep.mubr.msk.bf16.mxu0 %vm4088_vm0, %v4087_v1 }
 0x417   : > { %v1469_v11 = vmax.f32 %v1427_v17, 0.0  ;;  %v1430_v40 = vadd.f32 %v4780_v38, %v1429_v30  ;;  %v3649_v14 = vpop.f32.mrb[187].mxu1  ;;  %v3988_v38 = vld [vmem:[%s5477_s1 + $0x198] sm:$0xff]  }
 0x418   : > { %3745 = vmatpush3.bf16.msra.mxu0 %v3988_v38  ;;  %v3992_v30 = vld [vmem:[%s5477_s1 + $0x1b8] sm:$0xff]  }
 0x419   : > { %v1470_v41 = vmax.f32 %v1430_v40, 0.0  ;;  %v1823_v46 = vmul.f32 %v4789_v51, %v1469_v11  ;;  %3746 = vmatprep.subr.bf16.mxu0 %v4087_v1 }
 0x41b   : > { %v1489_v48 = vpack.c.bf16 %v1470_v41, %v1469_v11  ;;  %1897 = vadd.xlane.f32.xlu0 %v1823_v46  ;;  %v1824_v52 = vmul.f32 %v4789_v51, %v1470_v41  ;;  %v3989_v51 = vld [vmem:[%s5477_s1 + $0x1a0] sm:$0xff]  }
 0x41c   : > { %3747 = vmatpush3.bf16.msra.mxu0 %v3989_v51  ;;  %v3993_v41 = vld [vmem:[%s5477_s1 + $0x1c0] sm:$0xff]   ;;  %v3994_v51 = vld [vmem:[%s5477_s1 + $0x1c8] sm:$0xff]  }
 0x41d   : > { %1899 = vadd.xlane.f32.xlu1 %v1824_v52  ;;  %3739 = vmatmul.mubr.bf16.gmra.mrb[188].mxu0 %v1489_v48 }
 0x41e   : > { %3758 = vmatprep.mubr.msk.bf16.mxu0 %vm4088_vm0, %v4087_v1  ;;  %3748 = vmatprep.subr.bf16.mxu0 %v4087_v1 }
 0x420   : > { %3749 = vmatpush3.bf16.msra.mxu0 %v3990_v22 }
 0x421   : > { %3750 = vmatprep.subr.bf16.mxu0 %v4087_v1 }
 0x424   : > { %3751 = vmatpush3.bf16.msra.mxu0 %v3991_v0 }
 0x425   : > { %3752 = vmatprep.subr.bf16.mxu0 %v4087_v1 }
 0x428   : > { %3753 = vmatpush3.bf16.msra.mxu0 %v3992_v30 }
 0x429   : > { %3754 = vmatprep.subr.bf16.mxu0 %v4087_v1 }
 0x42c   : > { %3755 = vmatpush3.bf16.msra.mxu0 %v3993_v41 }
 0x42d   : > { %3756 = vmatprep.subr.bf16.mxu0 %v4087_v1 }
 0x430   : > { %3757 = vmatpush3.bf16.msra.mxu0 %v3994_v51 }
 0x460   : > { %v1593_v58 = vpop.f32.mrb[116].mxu0 }
 0x461   : > { %v1594_v60 = vadd.f32 %v4952_v57, %v1593_v58  ;;  %v3668_v63 = vpop.f32.mrb[117].mxu0 }
 0x462   : > { %v1596_v3 = vpop.f32.mrb[118].mxu0 }
 0x463   : > { %v1597_v6 = vadd.f32 %v4952_v57, %v1596_v3  ;;  %v3669_v13 = vpop.f32.mrb[119].mxu0  ;;  %v1744_v16 = vmax.f32 %v1594_v60, 0.0 }
 0x465   : > { %v1745_v18 = vmax.f32 %v1597_v6, 0.0 }
 0x467   : > { %v1901_v21 = vpack.c.bf16 %v1745_v18, %v1744_v16 }
 0x468   : > { %v1601_v23 = vpop.f32.mrb[120].mxu0 }
 0x469   : > { %v1602_v25 = vadd.f32 %v4952_v57, %v1601_v23  ;;  %v3672_v26 = vpop.f32.mrb[121].mxu0  ;;  %2061 = vmatmul.mubr.bf16.vlgmr.msra.gmra.mrb[188].mxu1 %v1901_v21 }
 0x46a   : > { %v1604_v32 = vpop.f32.mrb[122].mxu0  ;;  %3089 = vmatprep.mubr.msk.bf16.mxu1 %vm291_vm2, %v4208_v19 }
 0x46b   : > { %v1605_v34 = vadd.f32 %v4952_v57, %v1604_v32  ;;  %v3673_v39 = vpop.f32.mrb[123].mxu0  ;;  %v1746_v10 = vmax.f32 %v1602_v25, 0.0 }
 0x46d   : > { %v1747_v15 = vmax.f32 %v1605_v34, 0.0 }
 0x46f   : > { %v1902_v24 = vpack.c.bf16 %v1747_v15, %v1746_v10 }
 0x470   : > { %v1609_v33 = vpop.f32.mrb[124].mxu0 }
 0x471   : > { %v1610_v42 = vadd.f32 %v4952_v57, %v1609_v33  ;;  %v3676_v47 = vpop.f32.mrb[125].mxu0  ;;  %2069 = vmatmul.mubr.bf16.gmra.mrb[192].mxu1 %v1902_v24 }
 0x472   : > { %v1612_v54 = vpop.f32.mrb[126].mxu0  ;;  %3090 = vmatprep.mubr.msk.bf16.mxu1 %vm291_vm2, %v4232_v27 }
 0x473   : > { %v1613_v2 = vadd.f32 %v4952_v57, %v1612_v54  ;;  %v3677_v19 = vpop.f32.mrb[127].mxu0  ;;  %v1748_v7 = vmax.f32 %v1610_v42, 0.0 }
 0x475   : > { %v1749_v29 = vmax.f32 %v1613_v2, 0.0 }
 0x477   : > { %v1903_v31 = vpack.c.bf16 %v1749_v29, %v1748_v7 }
 0x478   : > { %v1617_v37 = vpop.f32.mrb[128].mxu0 }
 0x479   : > { %v1618_v45 = vadd.f32 %v4952_v57, %v1617_v37  ;;  %v3680_v59 = vpop.f32.mrb[129].mxu0  ;;  %2077 = vmatmul.mubr.bf16.gmra.mrb[196].mxu1 %v1903_v31 }
 0x47a   : > { %v1620_v17 = vpop.f32.mrb[130].mxu0  ;;  %3091 = vmatprep.mubr.msk.bf16.mxu1 %vm291_vm2, %v4256_v35 }
 0x47b   : > { %v1621_v27 = vadd.f32 %v4952_v57, %v1620_v17  ;;  %v3681_v9 = vpop.f32.mrb[131].mxu0  ;;  %v1750_v11 = vmax.f32 %v1618_v45, 0.0 }
 0x47d   : > { %v1751_v40 = vmax.f32 %v1621_v27, 0.0 }
 0x47f   : > { %v1904_v14 = vpack.c.bf16 %v1751_v40, %v1750_v11 }
 0x480   : > { %v1625_v46 = vpop.f32.mrb[132].mxu0 }
 0x481   : > { %v1626_v35 = vadd.f32 %v4952_v57, %v1625_v46  ;;  %v3684_v48 = vpop.f32.mrb[133].mxu0  ;;  %2085 = vmatmul.mubr.bf16.gmra.mrb[200].mxu1 %v1904_v14 }
 0x482   : > { %v1628_v52 = vpop.f32.mrb[134].mxu0  ;;  %3092 = vmatprep.mubr.msk.bf16.mxu1 %vm291_vm2, %v4280_v43 }
 0x483   : > { %v1629_v53 = vadd.f32 %v4952_v57, %v1628_v52  ;;  %v3685_v38 = vpop.f32.mrb[135].mxu0  ;;  %v1752_v58 = vmax.f32 %v1626_v35, 0.0 }
 0x485   : > { %v1753_v60 = vmax.f32 %v1629_v53, 0.0 }
 0x487   : > { %v1905_v63 = vpack.c.bf16 %v1753_v60, %v1752_v58 }
 0x488   : > { %v1633_v3 = vpop.f32.mrb[136].mxu0 }
 0x489   : > { %v1634_v6 = vadd.f32 %v4952_v57, %v1633_v3  ;;  %v3688_v13 = vpop.f32.mrb[137].mxu0  ;;  %2093 = vmatmul.mubr.bf16.gmra.mrb[204].mxu1 %v1905_v63 }
 0x48a   : > { %v1636_v43 = vpop.f32.mrb[138].mxu0  ;;  %3093 = vmatprep.mubr.msk.bf16.mxu1 %vm291_vm2, %v4297_v49 }
 0x48b   : > { %v1637_v16 = vadd.f32 %v4952_v57, %v1636_v43  ;;  %v3689_v18 = vpop.f32.mrb[139].mxu0  ;;  %v1754_v21 = vmax.f32 %v1634_v6, 0.0 }
 0x48d   : > { %v1755_v22 = vmax.f32 %v1637_v16, 0.0 }
 0x48f   : > { %v1906_v23 = vpack.c.bf16 %v1755_v22, %v1754_v21 }
 0x490   : > { %v1641_v25 = vpop.f32.mrb[140].mxu0 }
 0x491   : > { %v1642_v26 = vadd.f32 %v4952_v57, %v1641_v25  ;;  %v3692_v32 = vpop.f32.mrb[141].mxu0  ;;  %2101 = vmatmul.mubr.bf16.gmra.mrb[208].mxu1 %v1906_v23 }
 0x492   : > { %v1644_v34 = vpop.f32.mrb[142].mxu0  ;;  %3094 = vmatprep.mubr.msk.bf16.mxu1 %vm291_vm2, %v4313_v55 }
 0x493   : > { %v1645_v39 = vadd.f32 %v4952_v57, %v1644_v34  ;;  %v3693_v10 = vpop.f32.mrb[143].mxu0  ;;  %v1756_v15 = vmax.f32 %v1642_v26, 0.0 }
 0x495   : > { %v1757_v49 = vmax.f32 %v1645_v39, 0.0 }
 0x497   : > { %v1907_v24 = vpack.c.bf16 %v1757_v49, %v1756_v15 }
 0x498   : > { %v1649_v33 = vpop.f32.mrb[144].mxu0 }
 0x499   : > { %v1650_v42 = vadd.f32 %v4952_v57, %v1649_v33  ;;  %v3696_v47 = vpop.f32.mrb[145].mxu0  ;;  %2109 = vmatmul.mubr.bf16.gmra.mrb[212].mxu1 %v1907_v24 }
 0x49a   : > { %v1652_v54 = vpop.f32.mrb[146].mxu0  ;;  %3095 = vmatprep.mubr.msk.bf16.mxu1 %vm291_vm2, %v4329_v61 }
 0x49b   : > { %v1653_v2 = vadd.f32 %v4952_v57, %v1652_v54  ;;  %v3697_v19 = vpop.f32.mrb[147].mxu0  ;;  %v1758_v7 = vmax.f32 %v1650_v42, 0.0 }
 0x49d   : > { %v1759_v55 = vmax.f32 %v1653_v2, 0.0 }
 0x49f   : > { %v1908_v29 = vpack.c.bf16 %v1759_v55, %v1758_v7 }
 0x4a0   : > { %v1657_v31 = vpop.f32.mrb[148].mxu0 }
 0x4a1   : > { %v1658_v37 = vadd.f32 %v4952_v57, %v1657_v31  ;;  %v3700_v45 = vpop.f32.mrb[149].mxu0  ;;  %2117 = vmatmul.mubr.bf16.gmra.mrb[216].mxu1 %v1908_v29 }
 0x4a2   : > { %v1660_v59 = vpop.f32.mrb[150].mxu0  ;;  %3096 = vmatprep.mubr.msk.bf16.mxu1 %vm291_vm2, %v4345_v4 }
 0x4a3   : > { %v1661_v0 = vadd.f32 %v4952_v57, %v1660_v59  ;;  %v3701_v17 = vpop.f32.mrb[151].mxu0  ;;  %v1760_v27 = vmax.f32 %v1658_v37, 0.0 }
 0x4a5   : > { %v1761_v61 = vmax.f32 %v1661_v0, 0.0 }
 0x4a7   : > { %v1909_v9 = vpack.c.bf16 %v1761_v61, %v1760_v27 }
 0x4a8   : > { %v1665_v30 = vpop.f32.mrb[152].mxu0 }
 0x4a9   : > { %v1666_v11 = vadd.f32 %v4952_v57, %v1665_v30  ;;  %v3704_v40 = vpop.f32.mrb[153].mxu0  ;;  %2125 = vmatmul.mubr.bf16.gmra.mrb[220].mxu1 %v1909_v9 }
 0x4aa   : > { %v1668_v14 = vpop.f32.mrb[154].mxu0  ;;  %3097 = vmatprep.mubr.msk.bf16.mxu1 %vm291_vm2, %v4359_v8 }
 0x4ab   : > { %v1669_v41 = vadd.f32 %v4952_v57, %v1668_v14  ;;  %v3705_v46 = vpop.f32.mrb[155].mxu0  ;;  %v1762_v35 = vmax.f32 %v1666_v11, 0.0 }
 0x4ad   : > { %v1763_v4 = vmax.f32 %v1669_v41, 0.0 }
 0x4af   : > { %v1910_v48 = vpack.c.bf16 %v1763_v4, %v1762_v35 }
 0x4b0   : > { %v1673_v52 = vpop.f32.mrb[156].mxu0 }
 0x4b1   : > { %v1674_v53 = vadd.f32 %v4952_v57, %v1673_v52  ;;  %v3708_v38 = vpop.f32.mrb[157].mxu0  ;;  %2133 = vmatmul.mubr.bf16.gmra.mrb[224].mxu1 %v1910_v48 }
 0x4b2   : > { %v1676_v51 = vpop.f32.mrb[158].mxu0  ;;  %3098 = vmatprep.mubr.msk.bf16.mxu1 %vm291_vm2, %v4185_v12 }
 0x4b3   : > { %v1677_v58 = vadd.f32 %v4952_v57, %v1676_v51  ;;  %v3709_v60 = vpop.f32.mrb[159].mxu0  ;;  %v1764_v63 = vmax.f32 %v1674_v53, 0.0 }
 0x4b5   : > { %v1765_v8 = vmax.f32 %v1677_v58, 0.0 }
 0x4b7   : > { %v1911_v3 = vpack.c.bf16 %v1765_v8, %v1764_v63 }
 0x4b8   : > { %v1681_v6 = vpop.f32.mrb[160].mxu0 }
 0x4b9   : > { %v1682_v13 = vadd.f32 %v4952_v57, %v1681_v6  ;;  %v3712_v43 = vpop.f32.mrb[161].mxu0  ;;  %2141 = vmatmul.mubr.bf16.gmra.mrb[228].mxu1 %v1911_v3 }
 0x4ba   : > { %v1684_v16 = vpop.f32.mrb[162].mxu0  ;;  %3099 = vmatprep.mubr.msk.bf16.mxu1 %vm291_vm2, %v4210_v20 }
 0x4bb   : > { %v1685_v18 = vadd.f32 %v4952_v57, %v1684_v16  ;;  %v3713_v21 = vpop.f32.mrb[163].mxu0  ;;  %v1766_v22 = vmax.f32 %v1682_v13, 0.0 }
 0x4bd   : > { %v1767_v12 = vmax.f32 %v1685_v18, 0.0 }
 0x4bf   : > { %v1912_v23 = vpack.c.bf16 %v1767_v12, %v1766_v22 }
 0x4c0   : > { %v1689_v25 = vpop.f32.mrb[164].mxu0 }
 0x4c1   : > { %v1690_v26 = vadd.f32 %v4952_v57, %v1689_v25  ;;  %v3716_v32 = vpop.f32.mrb[165].mxu0  ;;  %2149 = vmatmul.mubr.bf16.gmra.mrb[232].mxu1 %v1912_v23 }
 0x4c2   : > { %v1692_v34 = vpop.f32.mrb[166].mxu0  ;;  %3100 = vmatprep.mubr.msk.bf16.mxu1 %vm291_vm2, %v4234_v28  ;;  %v5050_v32 = vld [vmem:[%s5478_s2 + $0x5] ss:$0 sm:$0xff] }
 0x4c3   : > { %v1693_v39 = vadd.f32 %v4952_v57, %v1692_v34  ;;  %v3717_v10 = vpop.f32.mrb[167].mxu0  ;;  %v1768_v15 = vmax.f32 %v1690_v26, 0.0 }
 0x4c5   : > { %v1769_v20 = vmax.f32 %v1693_v39, 0.0 }
 0x4c7   : > { %v1913_v49 = vpack.c.bf16 %v1769_v20, %v1768_v15 }
 0x4c8   : > { %v1697_v24 = vpop.f32.mrb[168].mxu0 }
 0x4c9   : > { %v1698_v33 = vadd.f32 %v4952_v57, %v1697_v24  ;;  %v3720_v42 = vpop.f32.mrb[169].mxu0  ;;  %2157 = vmatmul.mubr.bf16.gmra.mrb[236].mxu1 %v1913_v49 }
 0x4ca   : > { %v1700_v47 = vpop.f32.mrb[170].mxu0  ;;  %3101 = vmatprep.mubr.msk.bf16.mxu1 %vm291_vm2, %v4258_v36 }
 0x4cb   : > { %v1701_v54 = vadd.f32 %v4952_v57, %v1700_v47  ;;  %v3721_v2 = vpop.f32.mrb[171].mxu0  ;;  %v1770_v19 = vmax.f32 %v1698_v33, 0.0 }
 0x4cd   : > { %v1771_v28 = vmax.f32 %v1701_v54, 0.0 }
 0x4cf   : > { %v1914_v7 = vpack.c.bf16 %v1771_v28, %v1770_v19 }
 0x4d0   : > { %v1705_v55 = vpop.f32.mrb[172].mxu0 }
 0x4d1   : > { %v1706_v29 = vadd.f32 %v4952_v57, %v1705_v55  ;;  %v3724_v31 = vpop.f32.mrb[173].mxu0  ;;  %2165 = vmatmul.mubr.bf16.gmra.mrb[240].mxu1 %v1914_v7 }
 0x4d2   : > { %v1708_v37 = vpop.f32.mrb[174].mxu0  ;;  %3102 = vmatprep.mubr.msk.bf16.mxu1 %vm291_vm2, %v4282_v44 }
 0x4d3   : > { %v1709_v45 = vadd.f32 %v4952_v57, %v1708_v37  ;;  %v3725_v59 = vpop.f32.mrb[175].mxu0  ;;  %v1772_v0 = vmax.f32 %v1706_v29, 0.0 }
 0x4d5   : > { %v1773_v36 = vmax.f32 %v1709_v45, 0.0 }
 0x4d7   : > { %v1915_v17 = vpack.c.bf16 %v1773_v36, %v1772_v0 }
 0x4d8   : > { %v1713_v27 = vpop.f32.mrb[176].mxu0 }
 0x4d9   : > { %v1714_v61 = vadd.f32 %v4952_v57, %v1713_v27  ;;  %v3728_v9 = vpop.f32.mrb[177].mxu0  ;;  %2173 = vmatmul.mubr.bf16.gmra.mrb[244].mxu1 %v1915_v17 }
 0x4da   : > { %v1716_v30 = vpop.f32.mrb[178].mxu0  ;;  %3103 = vmatprep.mubr.msk.bf16.mxu1 %vm291_vm2, %v4299_v50 }
 0x4db   : > { %v1717_v11 = vadd.f32 %v4952_v57, %v1716_v30  ;;  %v3729_v40 = vpop.f32.mrb[179].mxu0  ;;  %v1774_v14 = vmax.f32 %v1714_v61, 0.0 }
 0x4dd   : > { %v1775_v44 = vmax.f32 %v1717_v11, 0.0 }
 0x4df   : > { %v1916_v41 = vpack.c.bf16 %v1775_v44, %v1774_v14 }
 0x4e0   : > { %v1721_v46 = vpop.f32.mrb[180].mxu0 }
 0x4e1   : > { %v1722_v35 = vadd.f32 %v4952_v57, %v1721_v46  ;;  %v3732_v4 = vpop.f32.mrb[181].mxu0  ;;  %2181 = vmatmul.mubr.bf16.gmra.mrb[248].mxu1 %v1916_v41 }
 0x4e2   : > { %v1724_v48 = vpop.f32.mrb[182].mxu0  ;;  %3104 = vmatprep.mubr.msk.bf16.mxu1 %vm291_vm2, %v4315_v56 }
 0x4e3   : > { %v1725_v52 = vadd.f32 %v4952_v57, %v1724_v48  ;;  %v3733_v53 = vpop.f32.mrb[183].mxu0  ;;  %v1776_v38 = vmax.f32 %v1722_v35, 0.0 }
 0x4e5   : > { %v1777_v50 = vmax.f32 %v1725_v52, 0.0 }
 0x4e7   : > { %v1917_v51 = vpack.c.bf16 %v1777_v50, %v1776_v38 }
 0x4e8   : > { %v1729_v58 = vpop.f32.mrb[184].mxu0 }
 0x4e9   : > { %v1730_v60 = vadd.f32 %v4952_v57, %v1729_v58  ;;  %v3736_v63 = vpop.f32.mrb[185].mxu0  ;;  %2189 = vmatmul.mubr.bf16.gmra.mrb[252].mxu1 %v1917_v51 }
 0x4ea   : > { %v1732_v8 = vpop.f32.mrb[186].mxu0  ;;  %3105 = vmatprep.mubr.msk.bf16.mxu1 %vm291_vm2, %v4331_v62 }
 0x4eb   : > { %v1733_v3 = vadd.f32 %v4952_v57, %v1732_v8  ;;  %v3737_v6 = vpop.f32.mrb[187].mxu0  ;;  %v1778_v13 = vmax.f32 %v1730_v60, 0.0 }
 0x4ed   : > { %v1779_v56 = vmax.f32 %v1733_v3, 0.0 }
 0x4ef   : > { %v1918_v43 = vpack.c.bf16 %v1779_v56, %v1778_v13 }
 0x4f0   : > { %v1737_v16 = vpop.f32.mrb[188].mxu0 }
 0x4f1   : > { %v1738_v18 = vadd.f32 %v4952_v57, %v1737_v16  ;;  %v3740_v21 = vpop.f32.mrb[189].mxu0  ;;  %2197 = vmatmul.mubr.bf16.gmra.mrb[0].mxu1 %v1918_v43 }
 0x4f2   : > { %v1740_v22 = vpop.f32.mrb[190].mxu0  ;;  %3106 = vmatprep.mubr.msk.bf16.mxu1 %vm291_vm2, %v4347_v5 }
 0x4f3   : > { %v1741_v12 = vadd.f32 %v4952_v57, %v1740_v22  ;;  %v3741_v23 = vpop.f32.mrb[191].mxu0  ;;  %v1780_v25 = vmax.f32 %v1738_v18, 0.0 }
 0x4f5   : > { %v1781_v62 = vmax.f32 %v1741_v12, 0.0 }
 0x4f7   : > { %v1919_v26 = vpack.c.bf16 %v1781_v62, %v1780_v25 }
 0x4f9   : > { %2205 = vmatmul.mubr.bf16.gmra.mrb[4].mxu1 %v1919_v26 }
 0x53c   : > { %v2062_v34 = vpop.f32.mrb[188].mxu1 }
 0x53d   : > { %v2063_v39 = vadd.f32 %v5050_v32, %v2062_v34  ;;  %v2064_v10 = vpop.f32.mrb[189].mxu1 }
 0x53e   : > { %v2065_v15 = vpop.f32.mrb[190].mxu1 }
 0x53f   : > { %v2066_v20 = vadd.f32 %v5050_v32, %v2065_v15  ;;  %v2067_v5 = vpop.f32.mrb[191].mxu1  ;;  %v2213_v49 = vmax.f32 %v2063_v39, 0.0 }
 0x541   : > { %v2214_v57 = vmax.f32 %v2066_v20, 0.0 }
 0x543   : > { %v2251_v24 = vpack.c.bf16 %v2214_v57, %v2213_v49 }
 0x544   : > { %v2070_v33 = vpop.f32.mrb[192].mxu1 }
 0x545   : > { %v2071_v42 = vadd.f32 %v5050_v32, %v2070_v33  ;;  %v2072_v47 = vpop.f32.mrb[193].mxu1  ;;  %3759 = vmatmul.mubr.bf16.vlgmr.msra.gmra.mrb[192].mxu0 %v2251_v24 }
 0x546   : > { %v2073_v54 = vpop.f32.mrb[194].mxu1  ;;  %3762 = vmatprep.mubr.msk.bf16.mxu0 %vm4088_vm0, %v4087_v1 }
 0x547   : > { %v2074_v2 = vadd.f32 %v5050_v32, %v2073_v54  ;;  %v2075_v19 = vpop.f32.mrb[195].mxu1  ;;  %v2215_v28 = vmax.f32 %v2071_v42, 0.0 }
 0x549   : > { %v2216_v7 = vmax.f32 %v2074_v2, 0.0 }
 0x54b   : > { %v2252_v55 = vpack.c.bf16 %v2216_v7, %v2215_v28 }
 0x54c   : > { %v2078_v29 = vpop.f32.mrb[196].mxu1 }
 0x54d   : > { %v2079_v31 = vadd.f32 %v5050_v32, %v2078_v29  ;;  %v2080_v37 = vpop.f32.mrb[197].mxu1  ;;  %3763 = vmatmul.mubr.bf16.gmra.mrb[196].mxu0 %v2252_v55 }
 0x54e   : > { %v2081_v45 = vpop.f32.mrb[198].mxu1  ;;  %3766 = vmatprep.mubr.msk.bf16.mxu0 %vm4088_vm0, %v4087_v1 }
 0x54f   : > { %v2082_v59 = vadd.f32 %v5050_v32, %v2081_v45  ;;  %v2083_v0 = vpop.f32.mrb[199].mxu1  ;;  %v2217_v36 = vmax.f32 %v2079_v31, 0.0 }
 0x551   : > { %v2218_v17 = vmax.f32 %v2082_v59, 0.0 }
 0x553   : > { %v2253_v27 = vpack.c.bf16 %v2218_v17, %v2217_v36 }
 0x554   : > { %v2086_v61 = vpop.f32.mrb[200].mxu1 }
 0x555   : > { %v2087_v9 = vadd.f32 %v5050_v32, %v2086_v61  ;;  %v2088_v30 = vpop.f32.mrb[201].mxu1  ;;  %3767 = vmatmul.mubr.bf16.gmra.mrb[200].mxu0 %v2253_v27 }
 0x556   : > { %v2089_v11 = vpop.f32.mrb[202].mxu1  ;;  %3770 = vmatprep.mubr.msk.bf16.mxu0 %vm4088_vm0, %v4087_v1 }
 0x557   : > { %v2090_v40 = vadd.f32 %v5050_v32, %v2089_v11  ;;  %v2091_v14 = vpop.f32.mrb[203].mxu1  ;;  %v2219_v44 = vmax.f32 %v2087_v9, 0.0 }
 0x559   : > { %v2220_v41 = vmax.f32 %v2090_v40, 0.0 }
 0x55b   : > { %v2254_v46 = vpack.c.bf16 %v2220_v41, %v2219_v44 }
 0x55c   : > { %v2094_v35 = vpop.f32.mrb[204].mxu1 }
 0x55d   : > { %v2095_v4 = vadd.f32 %v5050_v32, %v2094_v35  ;;  %v2096_v48 = vpop.f32.mrb[205].mxu1  ;;  %3771 = vmatmul.mubr.bf16.gmra.mrb[204].mxu0 %v2254_v46 }
 0x55e   : > { %v2097_v52 = vpop.f32.mrb[206].mxu1  ;;  %3774 = vmatprep.mubr.msk.bf16.mxu0 %vm4088_vm0, %v4087_v1 }
 0x55f   : > { %v2098_v53 = vadd.f32 %v5050_v32, %v2097_v52  ;;  %v2099_v38 = vpop.f32.mrb[207].mxu1  ;;  %v2221_v50 = vmax.f32 %v2095_v4, 0.0 }
 0x561   : > { %v2222_v51 = vmax.f32 %v2098_v53, 0.0 }
 0x563   : > { %v2255_v58 = vpack.c.bf16 %v2222_v51, %v2221_v50 }
 0x564   : > { %v2102_v60 = vpop.f32.mrb[208].mxu1 }
 0x565   : > { %v2103_v63 = vadd.f32 %v5050_v32, %v2102_v60  ;;  %v2104_v8 = vpop.f32.mrb[209].mxu1  ;;  %3775 = vmatmul.mubr.bf16.gmra.mrb[208].mxu0 %v2255_v58 }
 0x566   : > { %v2105_v3 = vpop.f32.mrb[210].mxu1  ;;  %3778 = vmatprep.mubr.msk.bf16.mxu0 %vm4088_vm0, %v4087_v1 }
 0x567   : > { %v2106_v6 = vadd.f32 %v5050_v32, %v2105_v3  ;;  %v2107_v13 = vpop.f32.mrb[211].mxu1  ;;  %v2223_v56 = vmax.f32 %v2103_v63, 0.0 }
 0x569   : > { %v2224_v43 = vmax.f32 %v2106_v6, 0.0 }
 0x56b   : > { %v2256_v16 = vpack.c.bf16 %v2224_v43, %v2223_v56 }
 0x56c   : > { %v2110_v18 = vpop.f32.mrb[212].mxu1 }
 0x56d   : > { %v2111_v21 = vadd.f32 %v5050_v32, %v2110_v18  ;;  %v2112_v22 = vpop.f32.mrb[213].mxu1  ;;  %3779 = vmatmul.mubr.bf16.gmra.mrb[212].mxu0 %v2256_v16 }
 0x56e   : > { %v2113_v12 = vpop.f32.mrb[214].mxu1  ;;  %3782 = vmatprep.mubr.msk.bf16.mxu0 %vm4088_vm0, %v4087_v1 }
 0x56f   : > { %v2114_v23 = vadd.f32 %v5050_v32, %v2113_v12  ;;  %v2115_v25 = vpop.f32.mrb[215].mxu1  ;;  %v2225_v62 = vmax.f32 %v2111_v21, 0.0 }
 0x571   : > { %v2226_v26 = vmax.f32 %v2114_v23, 0.0 }
 0x573   : > { %v2257_v34 = vpack.c.bf16 %v2226_v26, %v2225_v62 }
 0x574   : > { %v2118_v39 = vpop.f32.mrb[216].mxu1 }
 0x575   : > { %v2119_v10 = vadd.f32 %v5050_v32, %v2118_v39  ;;  %v2120_v15 = vpop.f32.mrb[217].mxu1  ;;  %3783 = vmatmul.mubr.bf16.gmra.mrb[216].mxu0 %v2257_v34 }
 0x576   : > { %v2121_v20 = vpop.f32.mrb[218].mxu1  ;;  %3786 = vmatprep.mubr.msk.bf16.mxu0 %vm4088_vm0, %v4087_v1 }
 0x577   : > { %v2122_v5 = vadd.f32 %v5050_v32, %v2121_v20  ;;  %v2123_v49 = vpop.f32.mrb[219].mxu1  ;;  %v2227_v57 = vmax.f32 %v2119_v10, 0.0 }
 0x579   : > { %v2228_v24 = vmax.f32 %v2122_v5, 0.0 }
 0x57b   : > { %v2258_v33 = vpack.c.bf16 %v2228_v24, %v2227_v57 }
 0x57c   : > { %v2126_v42 = vpop.f32.mrb[220].mxu1 }
 0x57d   : > { %v2127_v47 = vadd.f32 %v5050_v32, %v2126_v42  ;;  %v2128_v54 = vpop.f32.mrb[221].mxu1  ;;  %3787 = vmatmul.mubr.bf16.gmra.mrb[220].mxu0 %v2258_v33 }
 0x57e   : > { %v2129_v2 = vpop.f32.mrb[222].mxu1  ;;  %3790 = vmatprep.mubr.msk.bf16.mxu0 %vm4088_vm0, %v4087_v1 }
 0x57f   : > { %v2130_v19 = vadd.f32 %v5050_v32, %v2129_v2  ;;  %v2131_v28 = vpop.f32.mrb[223].mxu1  ;;  %v2229_v7 = vmax.f32 %v2127_v47, 0.0 }
 0x581   : > { %v2230_v55 = vmax.f32 %v2130_v19, 0.0 }
 0x583   : > { %v2259_v29 = vpack.c.bf16 %v2230_v55, %v2229_v7 }
 0x584   : > { %v2134_v31 = vpop.f32.mrb[224].mxu1 }
 0x585   : > { %v2135_v37 = vadd.f32 %v5050_v32, %v2134_v31  ;;  %v2136_v45 = vpop.f32.mrb[225].mxu1  ;;  %3791 = vmatmul.mubr.bf16.gmra.mrb[224].mxu0 %v2259_v29 }
 0x586   : > { %v2137_v59 = vpop.f32.mrb[226].mxu1  ;;  %3794 = vmatprep.mubr.msk.bf16.mxu0 %vm4088_vm0, %v4087_v1 }
 0x587   : > { %v2138_v0 = vadd.f32 %v5050_v32, %v2137_v59  ;;  %v2139_v36 = vpop.f32.mrb[227].mxu1  ;;  %v2231_v17 = vmax.f32 %v2135_v37, 0.0 }
 0x589   : > { %v2232_v27 = vmax.f32 %v2138_v0, 0.0 }
 0x58b   : > { %v2260_v61 = vpack.c.bf16 %v2232_v27, %v2231_v17 }
 0x58c   : > { %v2142_v9 = vpop.f32.mrb[228].mxu1 }
 0x58d   : > { %v2143_v30 = vadd.f32 %v5050_v32, %v2142_v9  ;;  %v2144_v11 = vpop.f32.mrb[229].mxu1  ;;  %3795 = vmatmul.mubr.bf16.gmra.mrb[228].mxu0 %v2260_v61 }
 0x58e   : > { %v2145_v40 = vpop.f32.mrb[230].mxu1  ;;  %3798 = vmatprep.mubr.msk.bf16.mxu0 %vm4088_vm0, %v4087_v1 }
 0x58f   : > { %v2146_v14 = vadd.f32 %v5050_v32, %v2145_v40  ;;  %v2147_v44 = vpop.f32.mrb[231].mxu1  ;;  %v2233_v41 = vmax.f32 %v2143_v30, 0.0 }
 0x591   : > { %v2234_v46 = vmax.f32 %v2146_v14, 0.0 }
 0x593   : > { %v2261_v35 = vpack.c.bf16 %v2234_v46, %v2233_v41 }
 0x594   : > { %v2150_v4 = vpop.f32.mrb[232].mxu1 }
 0x595   : > { %v2151_v48 = vadd.f32 %v5050_v32, %v2150_v4  ;;  %v2152_v52 = vpop.f32.mrb[233].mxu1  ;;  %3799 = vmatmul.mubr.bf16.gmra.mrb[232].mxu0 %v2261_v35 }
 0x596   : > { %v2153_v53 = vpop.f32.mrb[234].mxu1  ;;  %3802 = vmatprep.mubr.msk.bf16.mxu0 %vm4088_vm0, %v4087_v1 }
 0x597   : > { %v2154_v38 = vadd.f32 %v5050_v32, %v2153_v53  ;;  %v2155_v50 = vpop.f32.mrb[235].mxu1  ;;  %v2235_v51 = vmax.f32 %v2151_v48, 0.0 }
 0x599   : > { %v2236_v58 = vmax.f32 %v2154_v38, 0.0 }
 0x59b   : > { %v2262_v60 = vpack.c.bf16 %v2236_v58, %v2235_v51 }
 0x59c   : > { %v2158_v63 = vpop.f32.mrb[236].mxu1 }
 0x59d   : > { %v2159_v8 = vadd.f32 %v5050_v32, %v2158_v63  ;;  %v2160_v3 = vpop.f32.mrb[237].mxu1  ;;  %3803 = vmatmul.mubr.bf16.gmra.mrb[236].mxu0 %v2262_v60 }
 0x59e   : > { %v2161_v6 = vpop.f32.mrb[238].mxu1  ;;  %3806 = vmatprep.mubr.msk.bf16.mxu0 %vm4088_vm0, %v4087_v1 }
 0x59f   : > { %v2162_v13 = vadd.f32 %v5050_v32, %v2161_v6  ;;  %v2163_v56 = vpop.f32.mrb[239].mxu1  ;;  %v2237_v43 = vmax.f32 %v2159_v8, 0.0  ;;  %v2286_v8 = vlaneseq  ;;  %v1826_v6 = vpop.xlane.xlu0 %1825 }
 0x5a1   : > { %v2238_v16 = vmax.f32 %v2162_v13, 0.0  ;;  %v5126_v3 = vand.u32 127, %v2286_v8 }
 0x5a3   : > { %v2263_v18 = vpack.c.bf16 %v2238_v16, %v2237_v43  ;;  %vm2288_vm3 = vcmp.eq.s32.totalorder %v5126_v3, 3  ;;  %v1828_v13 = vpop.xlane.xlu0 %1827  ;;  %v1830_v43 = vpop.xlane.xlu1 %1829 }
 0x5a4   : > { %v2166_v21 = vpop.f32.mrb[240].mxu1  ;;  %v2289_v56 = vsel %vm2288_vm3, %v1826_v6, 0.0 }
 0x5a5   : > { %v2167_v22 = vadd.f32 %v5050_v32, %v2166_v21  ;;  %v2168_v12 = vpop.f32.mrb[241].mxu1  ;;  %3807 = vmatmul.mubr.bf16.gmra.mrb[240].mxu0 %v2263_v18  ;;  %v2290_v21 = vsel %vm2288_vm3, %v1828_v13, 0.0 }
 0x5a6   : > { %v2169_v23 = vpop.f32.mrb[242].mxu1  ;;  %3810 = vmatprep.mubr.msk.bf16.mxu0 %vm4088_vm0, %v4087_v1 }
 0x5a7   : > { %v2170_v25 = vadd.f32 %v5050_v32, %v2169_v23  ;;  %v2171_v62 = vpop.f32.mrb[243].mxu1  ;;  %v2239_v26 = vmax.f32 %v2167_v22, 0.0 }
 0x5a9   : > { %v2240_v34 = vmax.f32 %v2170_v25, 0.0 }
 0x5ab   : > { %v2264_v39 = vpack.c.bf16 %v2240_v34, %v2239_v26  ;;  %v1832_v26 = vpop.xlane.xlu1 %1831  ;;  %v2291_v34 = vsel %vm2288_vm3, %v1830_v43, 0.0 }
 0x5ac   : > { %v2174_v10 = vpop.f32.mrb[244].mxu1 }
 0x5ad   : > { %v2175_v15 = vadd.f32 %v5050_v32, %v2174_v10  ;;  %v2176_v20 = vpop.f32.mrb[245].mxu1  ;;  %3811 = vmatmul.mubr.bf16.gmra.mrb[244].mxu0 %v2264_v39 }
 0x5ae   : > { %v2177_v5 = vpop.f32.mrb[246].mxu1  ;;  %3814 = vmatprep.mubr.msk.bf16.mxu0 %vm4088_vm0, %v4087_v1  ;;  %v2292_v20 = vsel %vm2288_vm3, %v1832_v26, 0.0 }
 0x5af   : > { %v2178_v49 = vadd.f32 %v5050_v32, %v2177_v5  ;;  %v2179_v57 = vpop.f32.mrb[247].mxu1  ;;  %v2241_v24 = vmax.f32 %v2175_v15, 0.0 }
 0x5b1   : > { %v2242_v33 = vmax.f32 %v2178_v49, 0.0 }
 0x5b3   : > { %v2265_v42 = vpack.c.bf16 %v2242_v33, %v2241_v24  ;;  %v1834_v33 = vpop.xlane.xlu0 %1833 }
 0x5b4   : > { %v2182_v47 = vpop.f32.mrb[248].mxu1 }
 0x5b5   : > { %v2183_v54 = vadd.f32 %v5050_v32, %v2182_v47  ;;  %v2184_v2 = vpop.f32.mrb[249].mxu1  ;;  %3815 = vmatmul.mubr.bf16.gmra.mrb[248].mxu0 %v2265_v42  ;;  %v1836_v47 = vpop.xlane.xlu1 %1835 }
 0x5b6   : > { %v2185_v19 = vpop.f32.mrb[250].mxu1  ;;  %3818 = vmatprep.mubr.msk.bf16.mxu0 %vm4088_vm0, %v4087_v1 }
 0x5b7   : > { %v2186_v28 = vadd.f32 %v5050_v32, %v2185_v19  ;;  %v2187_v7 = vpop.f32.mrb[251].mxu1  ;;  %v2243_v55 = vmax.f32 %v2183_v54, 0.0  ;;  %v2293_v54 = vsel %vm2288_vm3, %v1834_v33, 0.0 }
 0x5b8   : > { %v2294_v7 = vsel %vm2288_vm3, %v1836_v47, 0.0 }
 0x5b9   : > { %v2244_v29 = vmax.f32 %v2186_v28, 0.0 }
 0x5bb   : > { %v2266_v31 = vpack.c.bf16 %v2244_v29, %v2243_v55 }
 0x5bc   : > { %v2190_v37 = vpop.f32.mrb[252].mxu1 }
 0x5bd   : > { %v2191_v45 = vadd.f32 %v5050_v32, %v2190_v37  ;;  %v2192_v59 = vpop.f32.mrb[253].mxu1  ;;  %3819 = vmatmul.mubr.bf16.gmra.mrb[252].mxu0 %v2266_v31 }
 0x5be   : > { %v2193_v0 = vpop.f32.mrb[254].mxu1  ;;  %3822 = vmatprep.mubr.msk.bf16.mxu0 %vm4088_vm0, %v4087_v1 }
 0x5bf   : > { %v2194_v36 = vadd.f32 %v5050_v32, %v2193_v0  ;;  %v2195_v17 = vpop.f32.mrb[255].mxu1  ;;  %v2245_v27 = vmax.f32 %v2191_v45, 0.0  ;;  %v1838_v45 = vpop.xlane.xlu0 %1837 }
 0x5c0   : > { %v1840_v0 = vpop.xlane.xlu1 %1839 }
 0x5c1   : > { %v2246_v61 = vmax.f32 %v2194_v36, 0.0  ;;  %v2295_v36 = vsel %vm2288_vm3, %v1838_v45, 0.0 }
 0x5c3   : > { %v2267_v9 = vpack.c.bf16 %v2246_v61, %v2245_v27 }
 0x5c4   : > { %v2198_v30 = vpop.f32.mrb[0].mxu1 }
 0x5c5   : > { %v2199_v11 = vadd.f32 %v5050_v32, %v2198_v30  ;;  %v2200_v40 = vpop.f32.mrb[1].mxu1  ;;  %3823 = vmatmul.mubr.bf16.gmra.mrb[0].mxu0 %v2267_v9  ;;  %v2296_v9 = vsel %vm2288_vm3, %v1840_v0, 0.0 }
 0x5c6   : > { %v2201_v14 = vpop.f32.mrb[2].mxu1  ;;  %3826 = vmatprep.mubr.msk.bf16.mxu0 %vm4088_vm0, %v4087_v1 }
 0x5c7   : > { %v2202_v44 = vadd.f32 %v5050_v32, %v2201_v14  ;;  %v2203_v41 = vpop.f32.mrb[3].mxu1  ;;  %v2247_v46 = vmax.f32 %v2199_v11, 0.0 }
 0x5c9   : > { %v2248_v35 = vmax.f32 %v2202_v44, 0.0  ;;  %v1842_v44 = vpop.xlane.xlu0 %1841 }
 0x5cb   : > { %v2268_v4 = vpack.c.bf16 %v2248_v35, %v2247_v46  ;;  %v1844_v46 = vpop.xlane.xlu1 %1843  ;;  %v2297_v35 = vsel %vm2288_vm3, %v1842_v44, 0.0 }
 0x5cc   : > { %v2206_v48 = vpop.f32.mrb[4].mxu1 }
 0x5cd   : > { %v2207_v52 = vadd.f32 %v5050_v32, %v2206_v48  ;;  %v2208_v53 = vpop.f32.mrb[5].mxu1  ;;  %3827 = vmatmul.mubr.bf16.gmra.mrb[4].mxu0 %v2268_v4 }
 0x5ce   : > { %v2209_v38 = vpop.f32.mrb[6].mxu1  ;;  %3830 = vmatprep.mubr.msk.bf16.mxu0 %vm4088_vm0, %v4087_v1  ;;  %v2298_v53 = vsel %vm2288_vm3, %v1844_v46, 0.0 }
 0x5cf   : > { %v2210_v50 = vadd.f32 %v5050_v32, %v2209_v38  ;;  %v2211_v51 = vpop.f32.mrb[7].mxu1  ;;  %v2249_v58 = vmax.f32 %v2207_v52, 0.0  ;;  %v5135_v32 = vld [vmem:[%s5478_s2 + $0x7] ss:$0 sm:$0xff]  ;;  %v1848_v8 = vpop.xlane.xlu1 %1847 }
 0x5d0   : > { %v2300_v43 = vsel %vm2288_vm3, %v1848_v8, 0.0 }
 0x5d1   : > { %v2250_v60 = vmax.f32 %v2210_v50, 0.0 }
 0x5d3   : > { %v2269_v63 = vpack.c.bf16 %v2250_v60, %v2249_v58  ;;  %v1846_v60 = vpop.xlane.xlu0 %1845 }
 0x5d4   : > { %v2299_v6 = vsel %vm2288_vm3, %v1846_v60, 0.0 }
 0x5d5   : > { %3831 = vmatmul.mubr.bf16.gmra.mrb[8].mxu0 %v2269_v63 }
 0x618   : > { %v2409_v1 = vpop.f32.mrb[192].mxu0 }
 0x619   : > { %v2410_v16 = vadd.f32 %v2409_v1, %v2289_v56  ;;  %v3760_v18 = vpop.f32.mrb[193].mxu0 }
 0x61a   : > { %v2412_v22 = vpop.f32.mrb[194].mxu0 }
 0x61b   : > { %v2565_v12 = vadd.f32 %v5135_v32, %v2410_v16  ;;  %v2413_v23 = vadd.f32 %v2412_v22, %v2290_v21  ;;  %v3761_v25 = vpop.f32.mrb[195].mxu0 }
 0x61c   : > { %v1852_v25 = vpop.xlane.xlu1 %1851 }
 0x61d   : > { %2604 = vst.msk [vmem:[%s5140_s12] sm:$0xff] %vm2603_vm4, %v2565_v12  ;;  %v2566_v62 = vadd.f32 %v5135_v32, %v2413_v23  ;;  %v1850_v12 = vpop.xlane.xlu0 %1849 }
 0x61f   : > { %2605 = vst.msk [vmem:[%s5140_s12 + $0x8] sm:$0xff] %vm2603_vm4, %v2566_v62  ;;  %v2301_v62 = vsel %vm2288_vm3, %v1850_v12, 0.0 }
 0x620   : > { %v2417_v39 = vpop.f32.mrb[196].mxu0  ;;  %v1856_v33 = vpop.xlane.xlu1 %1855 }
 0x621   : > { %v2418_v10 = vadd.f32 %v2417_v39, %v2291_v34  ;;  %v3764_v15 = vpop.f32.mrb[197].mxu0 }
 0x622   : > { %v2420_v5 = vpop.f32.mrb[198].mxu0 }
 0x623   : > { %v2567_v49 = vadd.f32 %v5135_v32, %v2418_v10  ;;  %v2421_v57 = vadd.f32 %v2420_v5, %v2292_v20  ;;  %v3765_v24 = vpop.f32.mrb[199].mxu0  ;;  %v2302_v10 = vsel %vm2288_vm3, %v1852_v25, 0.0 }
 0x624   : > { %v1860_v45 = vpop.xlane.xlu1 %1859 }
 0x625   : > { %2606 = vst.msk [vmem:[%s5140_s12 + $0x10] sm:$0xff] %vm2603_vm4, %v2567_v49  ;;  %v2568_v42 = vadd.f32 %v5135_v32, %v2421_v57  ;;  %v1854_v57 = vpop.xlane.xlu0 %1853 }
 0x627   : > { %2607 = vst.msk [vmem:[%s5140_s12 + $0x18] sm:$0xff] %vm2603_vm4, %v2568_v42  ;;  %v2303_v42 = vsel %vm2288_vm3, %v1854_v57, 0.0 }
 0x628   : > { %v2425_v2 = vpop.f32.mrb[200].mxu0  ;;  %v1864_v44 = vpop.xlane.xlu1 %1863 }
 0x629   : > { %v2426_v19 = vadd.f32 %v2425_v2, %v2293_v54  ;;  %v3768_v28 = vpop.f32.mrb[201].mxu0 }
 0x62a   : > { %v2428_v55 = vpop.f32.mrb[202].mxu0 }
 0x62b   : > { %v2569_v29 = vadd.f32 %v5135_v32, %v2426_v19  ;;  %v2429_v31 = vadd.f32 %v2428_v55, %v2294_v7  ;;  %v3769_v37 = vpop.f32.mrb[203].mxu0  ;;  %v2304_v19 = vsel %vm2288_vm3, %v1856_v33, 0.0 }
 0x62c   : > { %v1868_v60 = vpop.xlane.xlu1 %1867 }
 0x62d   : > { %2608 = vst.msk [vmem:[%s5140_s12 + $0x20] sm:$0xff] %vm2603_vm4, %v2569_v29  ;;  %v2570_v59 = vadd.f32 %v5135_v32, %v2429_v31  ;;  %v1858_v31 = vpop.xlane.xlu0 %1857 }
 0x62f   : > { %2609 = vst.msk [vmem:[%s5140_s12 + $0x28] sm:$0xff] %vm2603_vm4, %v2570_v59  ;;  %v2305_v59 = vsel %vm2288_vm3, %v1858_v31, 0.0 }
 0x630   : > { %v2433_v17 = vpop.f32.mrb[204].mxu0  ;;  %v1872_v12 = vpop.xlane.xlu1 %1871 }
 0x631   : > { %v2434_v27 = vadd.f32 %v2433_v17, %v2295_v36  ;;  %v3772_v61 = vpop.f32.mrb[205].mxu0 }
 0x632   : > { %v2436_v30 = vpop.f32.mrb[206].mxu0 }
 0x633   : > { %v2571_v11 = vadd.f32 %v5135_v32, %v2434_v27  ;;  %v2437_v40 = vadd.f32 %v2436_v30, %v2296_v9  ;;  %v3773_v14 = vpop.f32.mrb[207].mxu0  ;;  %v2306_v27 = vsel %vm2288_vm3, %v1860_v45, 0.0 }
 0x634   : > { %v1876_v57 = vpop.xlane.xlu1 %1875 }
 0x635   : > { %2610 = vst.msk [vmem:[%s5140_s12 + $0x30] sm:$0xff] %vm2603_vm4, %v2571_v11  ;;  %v2572_v41 = vadd.f32 %v5135_v32, %v2437_v40  ;;  %v1862_v40 = vpop.xlane.xlu0 %1861 }
 0x637   : > { %2611 = vst.msk [vmem:[%s5140_s12 + $0x38] sm:$0xff] %vm2603_vm4, %v2572_v41  ;;  %v2307_v41 = vsel %vm2288_vm3, %v1862_v40, 0.0 }
 0x638   : > { %v2441_v4 = vpop.f32.mrb[208].mxu0  ;;  %v1880_v31 = vpop.xlane.xlu1 %1879 }
 0x639   : > { %v2442_v48 = vadd.f32 %v2441_v4, %v2297_v35  ;;  %v3776_v52 = vpop.f32.mrb[209].mxu0 }
 0x63a   : > { %v2444_v38 = vpop.f32.mrb[210].mxu0 }
 0x63b   : > { %v2573_v50 = vadd.f32 %v5135_v32, %v2442_v48  ;;  %v2445_v51 = vadd.f32 %v2444_v38, %v2298_v53  ;;  %v3777_v58 = vpop.f32.mrb[211].mxu0  ;;  %v2308_v48 = vsel %vm2288_vm3, %v1864_v44, 0.0 }
 0x63c   : > { %v1884_v40 = vpop.xlane.xlu1 %1883 }
 0x63d   : > { %2612 = vst.msk [vmem:[%s5140_s12 + $0x40] sm:$0xff] %vm2603_vm4, %v2573_v50  ;;  %v2574_v63 = vadd.f32 %v5135_v32, %v2445_v51  ;;  %v1866_v51 = vpop.xlane.xlu0 %1865 }
 0x63f   : > { %2613 = vst.msk [vmem:[%s5140_s12 + $0x48] sm:$0xff] %vm2603_vm4, %v2574_v63  ;;  %v2309_v63 = vsel %vm2288_vm3, %v1866_v51, 0.0 }
 0x640   : > { %v2449_v13 = vpop.f32.mrb[212].mxu0  ;;  %v1888_v51 = vpop.xlane.xlu1 %1887 }
 0x641   : > { %v2450_v56 = vadd.f32 %v2449_v13, %v2299_v6  ;;  %v3780_v1 = vpop.f32.mrb[213].mxu0 }
 0x642   : > { %v2452_v16 = vpop.f32.mrb[214].mxu0 }
 0x643   : > { %v2575_v18 = vadd.f32 %v5135_v32, %v2450_v56  ;;  %v2453_v21 = vadd.f32 %v2452_v16, %v2300_v43  ;;  %v3781_v22 = vpop.f32.mrb[215].mxu0  ;;  %v2310_v56 = vsel %vm2288_vm3, %v1868_v60, 0.0 }
 0x645   : > { %2614 = vst.msk [vmem:[%s5140_s12 + $0x50] sm:$0xff] %vm2603_vm4, %v2575_v18  ;;  %v2576_v23 = vadd.f32 %v5135_v32, %v2453_v21  ;;  %v1870_v21 = vpop.xlane.xlu0 %1869 }
 0x647   : > { %2615 = vst.msk [vmem:[%s5140_s12 + $0x58] sm:$0xff] %vm2603_vm4, %v2576_v23  ;;  %v2311_v23 = vsel %vm2288_vm3, %v1870_v21, 0.0  ;;  %v1892_v21 = vpop.xlane.xlu1 %1891 }
 0x648   : > { %v2457_v26 = vpop.f32.mrb[216].mxu0 }
 0x649   : > { %v2458_v34 = vadd.f32 %v2457_v26, %v2301_v62  ;;  %v3784_v39 = vpop.f32.mrb[217].mxu0 }
 0x64a   : > { %v2460_v15 = vpop.f32.mrb[218].mxu0 }
 0x64b   : > { %v2577_v20 = vadd.f32 %v5135_v32, %v2458_v34  ;;  %v2461_v5 = vadd.f32 %v2460_v15, %v2302_v10  ;;  %v3785_v49 = vpop.f32.mrb[219].mxu0  ;;  %v2312_v34 = vsel %vm2288_vm3, %v1872_v12, 0.0 }
 0x64d   : > { %2616 = vst.msk [vmem:[%s5140_s12 + $0x60] sm:$0xff] %vm2603_vm4, %v2577_v20  ;;  %v2578_v24 = vadd.f32 %v5135_v32, %v2461_v5  ;;  %v1874_v5 = vpop.xlane.xlu0 %1873 }
 0x64f   : > { %2617 = vst.msk [vmem:[%s5140_s12 + $0x68] sm:$0xff] %vm2603_vm4, %v2578_v24  ;;  %v2313_v24 = vsel %vm2288_vm3, %v1874_v5, 0.0  ;;  %v1896_v5 = vpop.xlane.xlu1 %1895 }
 0x650   : > { %v2465_v47 = vpop.f32.mrb[220].mxu0 }
 0x651   : > { %v2466_v54 = vadd.f32 %v2465_v47, %v2303_v42  ;;  %v3788_v2 = vpop.f32.mrb[221].mxu0 }
 0x652   : > { %v2468_v28 = vpop.f32.mrb[222].mxu0 }
 0x653   : > { %v2579_v7 = vadd.f32 %v5135_v32, %v2466_v54  ;;  %v2469_v55 = vadd.f32 %v2468_v28, %v2304_v19  ;;  %v3789_v29 = vpop.f32.mrb[223].mxu0  ;;  %v2314_v54 = vsel %vm2288_vm3, %v1876_v57, 0.0 }
 0x655   : > { %2618 = vst.msk [vmem:[%s5140_s12 + $0x70] sm:$0xff] %vm2603_vm4, %v2579_v7  ;;  %v2580_v37 = vadd.f32 %v5135_v32, %v2469_v55  ;;  %v1878_v55 = vpop.xlane.xlu0 %1877 }
 0x657   : > { %2619 = vst.msk [vmem:[%s5140_s12 + $0x78] sm:$0xff] %vm2603_vm4, %v2580_v37  ;;  %v2315_v37 = vsel %vm2288_vm3, %v1878_v55, 0.0  ;;  %v1900_v55 = vpop.xlane.xlu1 %1899 }
 0x658   : > { %v2473_v0 = vpop.f32.mrb[224].mxu0 }
 0x659   : > { %v2474_v36 = vadd.f32 %v2473_v0, %v2305_v59  ;;  %v3792_v17 = vpop.f32.mrb[225].mxu0 }
 0x65a   : > { %v2476_v61 = vpop.f32.mrb[226].mxu0 }
 0x65b   : > { %v2581_v9 = vadd.f32 %v5135_v32, %v2474_v36  ;;  %v2477_v30 = vadd.f32 %v2476_v61, %v2306_v27  ;;  %v3793_v11 = vpop.f32.mrb[227].mxu0  ;;  %v2316_v36 = vsel %vm2288_vm3, %v1880_v31, 0.0 }
 0x65d   : > { %2620 = vst.msk [vmem:[%s5140_s12 + $0x80] sm:$0xff] %vm2603_vm4, %v2581_v9  ;;  %v2582_v14 = vadd.f32 %v5135_v32, %v2477_v30  ;;  %v1882_v30 = vpop.xlane.xlu0 %1881 }
 0x65f   : > { %2621 = vst.msk [vmem:[%s5140_s12 + $0x88] sm:$0xff] %vm2603_vm4, %v2582_v14  ;;  %v2317_v14 = vsel %vm2288_vm3, %v1882_v30, 0.0 }
 0x660   : > { %v2481_v46 = vpop.f32.mrb[228].mxu0 }
 0x661   : > { %v2482_v35 = vadd.f32 %v2481_v46, %v2307_v41  ;;  %v3796_v4 = vpop.f32.mrb[229].mxu0 }
 0x662   : > { %v2484_v52 = vpop.f32.mrb[230].mxu0 }
 0x663   : > { %v2583_v53 = vadd.f32 %v5135_v32, %v2482_v35  ;;  %v2485_v38 = vadd.f32 %v2484_v52, %v2308_v48  ;;  %v3797_v50 = vpop.f32.mrb[231].mxu0  ;;  %v2318_v35 = vsel %vm2288_vm3, %v1884_v40, 0.0 }
 0x665   : > { %2622 = vst.msk [vmem:[%s5140_s12 + $0x90] sm:$0xff] %vm2603_vm4, %v2583_v53  ;;  %v2584_v58 = vadd.f32 %v5135_v32, %v2485_v38  ;;  %v1886_v38 = vpop.xlane.xlu0 %1885 }
 0x667   : > { %2623 = vst.msk [vmem:[%s5140_s12 + $0x98] sm:$0xff] %vm2603_vm4, %v2584_v58  ;;  %v2319_v58 = vsel %vm2288_vm3, %v1886_v38, 0.0 }
 0x668   : > { %v2489_v8 = vpop.f32.mrb[232].mxu0 }
 0x669   : > { %v2490_v6 = vadd.f32 %v2489_v8, %v2309_v63  ;;  %v3800_v13 = vpop.f32.mrb[233].mxu0 }
 0x66a   : > { %v2492_v1 = vpop.f32.mrb[234].mxu0 }
 0x66b   : > { %v2585_v43 = vadd.f32 %v5135_v32, %v2490_v6  ;;  %v2493_v16 = vadd.f32 %v2492_v1, %v2310_v56  ;;  %v3801_v18 = vpop.f32.mrb[235].mxu0  ;;  %v2320_v6 = vsel %vm2288_vm3, %v1888_v51, 0.0 }
 0x66d   : > { %2624 = vst.msk [vmem:[%s5140_s12 + $0xa0] sm:$0xff] %vm2603_vm4, %v2585_v43  ;;  %v2586_v22 = vadd.f32 %v5135_v32, %v2493_v16  ;;  %v1890_v16 = vpop.xlane.xlu0 %1889 }
 0x66f   : > { %2625 = vst.msk [vmem:[%s5140_s12 + $0xa8] sm:$0xff] %vm2603_vm4, %v2586_v22  ;;  %v2321_v22 = vsel %vm2288_vm3, %v1890_v16, 0.0 }
 0x670   : > { %v2497_v25 = vpop.f32.mrb[236].mxu0 }
 0x671   : > { %v2498_v62 = vadd.f32 %v2497_v25, %v2311_v23  ;;  %v3804_v26 = vpop.f32.mrb[237].mxu0 }
 0x672   : > { %v2500_v39 = vpop.f32.mrb[238].mxu0 }
 0x673   : > { %v2587_v10 = vadd.f32 %v5135_v32, %v2498_v62  ;;  %v2501_v15 = vadd.f32 %v2500_v39, %v2312_v34  ;;  %v3805_v20 = vpop.f32.mrb[239].mxu0  ;;  %v2322_v62 = vsel %vm2288_vm3, %v1892_v21, 0.0 }
 0x675   : > { %2626 = vst.msk [vmem:[%s5140_s12 + $0xb0] sm:$0xff] %vm2603_vm4, %v2587_v10  ;;  %v2588_v49 = vadd.f32 %v5135_v32, %v2501_v15  ;;  %v1894_v15 = vpop.xlane.xlu0 %1893 }
 0x677   : > { %2627 = vst.msk [vmem:[%s5140_s12 + $0xb8] sm:$0xff] %vm2603_vm4, %v2588_v49  ;;  %v2323_v49 = vsel %vm2288_vm3, %v1894_v15, 0.0 }
 0x678   : > { %v2505_v33 = vpop.f32.mrb[240].mxu0 }
 0x679   : > { %v2506_v42 = vadd.f32 %v2505_v33, %v2313_v24  ;;  %v3808_v47 = vpop.f32.mrb[241].mxu0 }
 0x67a   : > { %v2508_v2 = vpop.f32.mrb[242].mxu0 }
 0x67b   : > { %v2589_v19 = vadd.f32 %v5135_v32, %v2506_v42  ;;  %v2509_v28 = vadd.f32 %v2508_v2, %v2314_v54  ;;  %v3809_v7 = vpop.f32.mrb[243].mxu0  ;;  %v2324_v42 = vsel %vm2288_vm3, %v1896_v5, 0.0 }
 0x67d   : > { %2628 = vst.msk [vmem:[%s5140_s12 + $0xc0] sm:$0xff] %vm2603_vm4, %v2589_v19  ;;  %v2590_v29 = vadd.f32 %v5135_v32, %v2509_v28  ;;  %v1898_v28 = vpop.xlane.xlu0 %1897 }
 0x67f   : > { %2629 = vst.msk [vmem:[%s5140_s12 + $0xc8] sm:$0xff] %vm2603_vm4, %v2590_v29  ;;  %v2325_v29 = vsel %vm2288_vm3, %v1898_v28, 0.0 }
 0x680   : > { %v2513_v45 = vpop.f32.mrb[244].mxu0 }
 0x681   : > { %v2514_v59 = vadd.f32 %v2513_v45, %v2315_v37  ;;  %v3812_v0 = vpop.f32.mrb[245].mxu0 }
 0x682   : > { %v2516_v17 = vpop.f32.mrb[246].mxu0 }
 0x683   : > { %v2591_v27 = vadd.f32 %v5135_v32, %v2514_v59  ;;  %v2517_v61 = vadd.f32 %v2516_v17, %v2316_v36  ;;  %v3813_v9 = vpop.f32.mrb[247].mxu0  ;;  %v2326_v59 = vsel %vm2288_vm3, %v1900_v55, 0.0 }
 0x685   : > { %2630 = vst.msk [vmem:[%s5140_s12 + $0xd0] sm:$0xff] %vm2603_vm4, %v2591_v27  ;;  %v2592_v11 = vadd.f32 %v5135_v32, %v2517_v61 }
 0x687   : > { %2631 = vst.msk [vmem:[%s5140_s12 + $0xd8] sm:$0xff] %vm2603_vm4, %v2592_v11 }
 0x688   : > { %v2521_v44 = vpop.f32.mrb[248].mxu0 }
 0x689   : > { %v2522_v41 = vadd.f32 %v2521_v44, %v2317_v14  ;;  %v3816_v46 = vpop.f32.mrb[249].mxu0 }
 0x68a   : > { %v2524_v4 = vpop.f32.mrb[250].mxu0 }
 0x68b   : > { %v2593_v48 = vadd.f32 %v5135_v32, %v2522_v41  ;;  %v2525_v52 = vadd.f32 %v2524_v4, %v2318_v35  ;;  %v3817_v53 = vpop.f32.mrb[251].mxu0 }
 0x68d   : > { %2632 = vst.msk [vmem:[%s5140_s12 + $0xe0] sm:$0xff] %vm2603_vm4, %v2593_v48  ;;  %v2594_v50 = vadd.f32 %v5135_v32, %v2525_v52 }
 0x68f   : > { %2633 = vst.msk [vmem:[%s5140_s12 + $0xe8] sm:$0xff] %vm2603_vm4, %v2594_v50 }
 0x690   : > { %v2529_v60 = vpop.f32.mrb[252].mxu0 }
 0x691   : > { %v2530_v63 = vadd.f32 %v2529_v60, %v2319_v58  ;;  %v3820_v8 = vpop.f32.mrb[253].mxu0 }
 0x692   : > { %v2532_v13 = vpop.f32.mrb[254].mxu0 }
 0x693   : > { %v2595_v56 = vadd.f32 %v5135_v32, %v2530_v63  ;;  %v2533_v1 = vadd.f32 %v2532_v13, %v2320_v6  ;;  %v3821_v43 = vpop.f32.mrb[255].mxu0 }
 0x695   : > { %2634 = vst.msk [vmem:[%s5140_s12 + $0xf0] sm:$0xff] %vm2603_vm4, %v2595_v56  ;;  %v2596_v18 = vadd.f32 %v5135_v32, %v2533_v1 }
 0x697   : > { %2635 = vst.msk [vmem:[%s5140_s12 + $0xf8] sm:$0xff] %vm2603_vm4, %v2596_v18 }
 0x698   : > { %v2537_v12 = vpop.f32.mrb[0].mxu0 }
 0x699   : > { %v2538_v23 = vadd.f32 %v2537_v12, %v2321_v22  ;;  %v3824_v25 = vpop.f32.mrb[1].mxu0 }
 0x69a   : > { %v2540_v26 = vpop.f32.mrb[2].mxu0 }
 0x69b   : > { %v2597_v34 = vadd.f32 %v5135_v32, %v2538_v23  ;;  %v2541_v39 = vadd.f32 %v2540_v26, %v2322_v62  ;;  %v3825_v10 = vpop.f32.mrb[3].mxu0 }
 0x69d   : > { %2636 = vst.msk [vmem:[%s5140_s12 + $0x100] sm:$0xff] %vm2603_vm4, %v2597_v34  ;;  %v2598_v20 = vadd.f32 %v5135_v32, %v2541_v39 }
 0x69f   : > { %2637 = vst.msk [vmem:[%s5140_s12 + $0x108] sm:$0xff] %vm2603_vm4, %v2598_v20 }
 0x6a0   : > { %v2545_v57 = vpop.f32.mrb[4].mxu0 }
 0x6a1   : > { %v2546_v24 = vadd.f32 %v2545_v57, %v2323_v49  ;;  %v3828_v33 = vpop.f32.mrb[5].mxu0 }
 0x6a2   : > { %v2548_v47 = vpop.f32.mrb[6].mxu0 }
 0x6a3   : > { %v2599_v54 = vadd.f32 %v5135_v32, %v2546_v24  ;;  %v2549_v2 = vadd.f32 %v2548_v47, %v2324_v42  ;;  %v3829_v19 = vpop.f32.mrb[7].mxu0 }
 0x6a5   : > { %2638 = vst.msk [vmem:[%s5140_s12 + $0x110] sm:$0xff] %vm2603_vm4, %v2599_v54  ;;  %v2600_v7 = vadd.f32 %v5135_v32, %v2549_v2 }
 0x6a7   : > { %2639 = vst.msk [vmem:[%s5140_s12 + $0x118] sm:$0xff] %vm2603_vm4, %v2600_v7 }
 0x6a8   : > { %v2553_v31 = vpop.f32.mrb[8].mxu0 }
 0x6a9   : > { %v2554_v37 = vadd.f32 %v2553_v31, %v2325_v29  ;;  %v3832_v45 = vpop.f32.mrb[9].mxu0  ;;  %2648 = sbr.rel (!%p4135_p4) target bundleno = 1783 (0x6f7), region = 36 }
 0x6aa   : > { %v2556_v0 = vpop.f32.mrb[10].mxu0 }
 0x6ab   : > { %v2601_v36 = vadd.f32 %v5135_v32, %v2554_v37  ;;  %v2557_v17 = vadd.f32 %v2556_v0, %v2326_v59  ;;  %v3833_v27 = vpop.f32.mrb[11].mxu0 }
 0x6ad   : > { %2640 = vst.msk [vmem:[%s5140_s12 + $0x120] sm:$0xff] %vm2603_vm4, %v2601_v36  ;;  %v2602_v61 = vadd.f32 %v5135_v32, %v2557_v17 }
 0x6af   : > { %2641 = vst.msk [vmem:[%s5140_s12 + $0x128] sm:$0xff] %vm2603_vm4, %v2602_v61 }
 0x6b0   : > { %s5490_s18 = smov (!%p2651_p8, %s2650_s18), 38 }
 0x6b1   : > { %s3116_s26 = sshll.u32 %s5490_s18, 7 }
 0x6b2   : > { %p3119_p9 = scmp.eq.s32.totalorder %s3116_s26, 0 }
 0x6b3   : > { %3995 = sdivrem.u32 (!%p3119_p9), %s5490_s18, 38 }
 0x6b4   : > { %2659 = sbr.rel (%p3119_p9) target bundleno = 1783 (0x6f7), region = 40 }
 0x6bc   : > { %s5340_s20 = spop.drf %3995 }
 0x6bd   : > { %p3120_p10 = scmp.le.s32.totalorder %s5340_s20, 0 }
 0x6be   : > { %s5481_s15 = smov (!%p3120_p10), %s5334_s24  ;;  %s5482_s25 = smov (!%p3120_p10), %s5140_s12 }
 0x6bf   : > { %2963 = sbr.rel (%p3120_p10) target bundleno = 1754 (0x6da), region = 116  ;;  %s5349_s27 = smov (!%p3120_p10), 0  }
 0x6c0   : > { %s5351_s28 = smov (!%p3120_p10), 0  }
 0x6c6 LB: >> { %v2797_v3 = vld [vmem:[%s4061_s25] sm:$0xff]  ;;  %v2799_v32 = vld [vmem:[%s4061_s25 + $0x8] sm:$0xff]  ;;  %v2801_v9 = vld [vmem:[%s4061_s25 + $0x10] sm:$0xff]  ;;  %s2873_s29 = sadd.s32 1, %s4065_s27  ;;  %s2791_s28 = sadd.s32 1, %s4069_s28   ;;  %s4069_s28 = sphi %s5351_s28, %s2791_s28   ;;  %s4065_s27 = sphi %s5349_s27, %s5485_s27   ;;  %s4061_s25 = sphi %s5482_s25, %s5484_s25   ;;  %s4057_s15 = sphi %s5481_s15, %s5483_s15  }
 0x6c7   : >> { %2798 = vst [vmem:[%s4057_s15] sm:$0xff] %v2797_v3  ;;  %2800 = vst [vmem:[%s4057_s15 + $0x8] sm:$0xff] %v2799_v32  ;;  %v2803_v30 = vld [vmem:[%s4061_s25 + $0x18] sm:$0xff]  ;;  %v2805_v11 = vld [vmem:[%s4061_s25 + $0x20] sm:$0xff]  ;;  %p2874_p11 = scmp.ge.s32.totalorder %s2873_s29, %s5340_s20  ;;  %p2790_p12 = scmp.ge.s32.totalorder %s2791_s28, %s5340_s20 }
 0x6c8   : >> { %2802 = vst [vmem:[%s4057_s15 + $0x10] sm:$0xff] %v2801_v9  ;;  %v2807_v40 = vld [vmem:[%s4061_s25 + $0x28] sm:$0xff]  ;;  %2804 = vst [vmem:[%s4057_s15 + $0x18] sm:$0xff] %v2803_v30  ;;  %v2809_v14 = vld [vmem:[%s4061_s25 + $0x30] sm:$0xff] }
 0x6c9   : >> { %2806 = vst [vmem:[%s4057_s15 + $0x20] sm:$0xff] %v2805_v11  ;;  %2808 = vst [vmem:[%s4057_s15 + $0x28] sm:$0xff] %v2807_v40  ;;  %v2811_v44 = vld [vmem:[%s4061_s25 + $0x38] sm:$0xff]  ;;  %v2813_v41 = vld [vmem:[%s4061_s25 + $0x40] sm:$0xff]  ;;  %s5492_s29 = smov (%p2874_p11, %s2873_s29), 0 }
 0x6ca   : >> { %2810 = vst [vmem:[%s4057_s15 + $0x30] sm:$0xff] %v2809_v14  ;;  %2812 = vst [vmem:[%s4057_s15 + $0x38] sm:$0xff] %v2811_v44  ;;  %v2815_v46 = vld [vmem:[%s4061_s25 + $0x48] sm:$0xff]  ;;  %v2817_v35 = vld [vmem:[%s4061_s25 + $0x50] sm:$0xff]  ;;  %s2876_s30 = smul.u32 304, %s5492_s29  ;;  %s5485_s27 = smov %s5492_s29 }
 0x6cb   : >> { %2814 = vst [vmem:[%s4057_s15 + $0x40] sm:$0xff] %v2813_v41  ;;  %v2819_v4 = vld [vmem:[%s4061_s25 + $0x58] sm:$0xff]  ;;  %2816 = vst [vmem:[%s4057_s15 + $0x48] sm:$0xff] %v2815_v46  ;;  %v2821_v48 = vld [vmem:[%s4061_s25 + $0x60] sm:$0xff] }
 0x6cc   : >> { %2818 = vst [vmem:[%s4057_s15 + $0x50] sm:$0xff] %v2817_v35  ;;  %2820 = vst [vmem:[%s4057_s15 + $0x58] sm:$0xff] %v2819_v4  ;;  %v2823_v52 = vld [vmem:[%s4061_s25 + $0x68] sm:$0xff]  ;;  %v2825_v53 = vld [vmem:[%s4061_s25 + $0x70] sm:$0xff]  ;;  %s5413_s4 = scalar_lea.vmem %s5140_s12, %s2876_s30 [#allocation2]   ;;  %s5416_s5 = scalar_lea.vmem %s5334_s24, %s2876_s30  }
 0x6cd   : >> { %2822 = vst [vmem:[%s4057_s15 + $0x60] sm:$0xff] %v2821_v48  ;;  %2824 = vst [vmem:[%s4057_s15 + $0x68] sm:$0xff] %v2823_v52  ;;  %v2827_v38 = vld [vmem:[%s4061_s25 + $0x78] sm:$0xff]  ;;  %v2829_v50 = vld [vmem:[%s4061_s25 + $0x80] sm:$0xff] }
 0x6ce   : >> { %2826 = vst [vmem:[%s4057_s15 + $0x70] sm:$0xff] %v2825_v53  ;;  %v2831_v51 = vld [vmem:[%s4061_s25 + $0x88] sm:$0xff]  ;;  %2828 = vst [vmem:[%s4057_s15 + $0x78] sm:$0xff] %v2827_v38  ;;  %v2833_v58 = vld [vmem:[%s4061_s25 + $0x90] sm:$0xff] }
 0x6cf   : >> { %2830 = vst [vmem:[%s4057_s15 + $0x80] sm:$0xff] %v2829_v50  ;;  %2832 = vst [vmem:[%s4057_s15 + $0x88] sm:$0xff] %v2831_v51  ;;  %v2835_v60 = vld [vmem:[%s4061_s25 + $0x98] sm:$0xff]  ;;  %v2837_v63 = vld [vmem:[%s4061_s25 + $0xa0] sm:$0xff] }
 0x6d0   : >> { %2834 = vst [vmem:[%s4057_s15 + $0x90] sm:$0xff] %v2833_v58  ;;  %2836 = vst [vmem:[%s4057_s15 + $0x98] sm:$0xff] %v2835_v60  ;;  %v2839_v8 = vld [vmem:[%s4061_s25 + $0xa8] sm:$0xff]  ;;  %v2841_v6 = vld [vmem:[%s4061_s25 + $0xb0] sm:$0xff] }
 0x6d1   : >> { %2838 = vst [vmem:[%s4057_s15 + $0xa0] sm:$0xff] %v2837_v63  ;;  %v2843_v13 = vld [vmem:[%s4061_s25 + $0xb8] sm:$0xff]  ;;  %2840 = vst [vmem:[%s4057_s15 + $0xa8] sm:$0xff] %v2839_v8  ;;  %v2845_v56 = vld [vmem:[%s4061_s25 + $0xc0] sm:$0xff] }
 0x6d2   : >> { %2842 = vst [vmem:[%s4057_s15 + $0xb0] sm:$0xff] %v2841_v6  ;;  %2844 = vst [vmem:[%s4057_s15 + $0xb8] sm:$0xff] %v2843_v13  ;;  %v2847_v1 = vld [vmem:[%s4061_s25 + $0xc8] sm:$0xff]  ;;  %v2849_v43 = vld [vmem:[%s4061_s25 + $0xd0] sm:$0xff] }
 0x6d3   : >> { %2846 = vst [vmem:[%s4057_s15 + $0xc0] sm:$0xff] %v2845_v56  ;;  %2848 = vst [vmem:[%s4057_s15 + $0xc8] sm:$0xff] %v2847_v1  ;;  %v2851_v16 = vld [vmem:[%s4061_s25 + $0xd8] sm:$0xff]  ;;  %v2853_v18 = vld [vmem:[%s4061_s25 + $0xe0] sm:$0xff]  ;;  %2793 = sbr.rel (!%p2790_p12) target bundleno = 1734 (0x6c6), region = 122 }
 0x6d4   : >> { %2850 = vst [vmem:[%s4057_s15 + $0xd0] sm:$0xff] %v2849_v43  ;;  %v2855_v21 = vld [vmem:[%s4061_s25 + $0xe8] sm:$0xff]  ;;  %2852 = vst [vmem:[%s4057_s15 + $0xd8] sm:$0xff] %v2851_v16  ;;  %v2857_v22 = vld [vmem:[%s4061_s25 + $0xf0] sm:$0xff] }
 0x6d5   : >> { %2854 = vst [vmem:[%s4057_s15 + $0xe0] sm:$0xff] %v2853_v18  ;;  %2856 = vst [vmem:[%s4057_s15 + $0xe8] sm:$0xff] %v2855_v21  ;;  %v2859_v12 = vld [vmem:[%s4061_s25 + $0xf8] sm:$0xff]  ;;  %v2861_v23 = vld [vmem:[%s4061_s25 + $0x100] sm:$0xff] }
 0x6d6   : >> { %2858 = vst [vmem:[%s4057_s15 + $0xf0] sm:$0xff] %v2857_v22  ;;  %2860 = vst [vmem:[%s4057_s15 + $0xf8] sm:$0xff] %v2859_v12  ;;  %v2863_v25 = vld [vmem:[%s4061_s25 + $0x108] sm:$0xff]  ;;  %v2865_v62 = vld [vmem:[%s4061_s25 + $0x110] sm:$0xff] }
 0x6d7   : >> { %2862 = vst [vmem:[%s4057_s15 + $0x100] sm:$0xff] %v2861_v23  ;;  %v2867_v26 = vld [vmem:[%s4061_s25 + $0x118] sm:$0xff]  ;;  %2864 = vst [vmem:[%s4057_s15 + $0x108] sm:$0xff] %v2863_v25  ;;  %v2869_v34 = vld [vmem:[%s4061_s25 + $0x120] sm:$0xff] }
 0x6d8   : >> { %2866 = vst [vmem:[%s4057_s15 + $0x110] sm:$0xff] %v2865_v62  ;;  %2868 = vst [vmem:[%s4057_s15 + $0x118] sm:$0xff] %v2867_v26  ;;  %v2871_v39 = vld [vmem:[%s4061_s25 + $0x128] sm:$0xff]  ;;  %s5484_s25 = smov %s5413_s4 }
 0x6d9   : >> { %2870 = vst [vmem:[%s4057_s15 + $0x120] sm:$0xff] %v2869_v34  ;;  %2872 = vst [vmem:[%s4057_s15 + $0x128] sm:$0xff] %v2871_v39  ;;  %s5483_s15 = smov %s5416_s5 }
 0x6da PF: > { %3997 = sdivrem.u32 %s5490_s18, 38 }
 0x6db   : > { %s3121_s6 = smul.u32 304, %s5340_s20 }
 0x6dd   : > { %s2884_s7 = scalar_lea.vmem %s5140_s12, %s3121_s6 [#allocation2]   ;;  %s2886_s8 = scalar_lea.vmem %s5334_s24, %s3121_s6  }
 0x6e3   : > { %s3998_s9 = spop.drf %3997 }
 0x6e4   : > { %p3123_p13 = scmp.le.s32.totalorder %s3998_s9, 0 }
 0x6e5   : > { %s4071_s10 = smov (!%p3123_p13), %s2886_s8   ;;  %s4075_s11 = smov (!%p3123_p13), %s2884_s7  }
 0x6e6   : > { %2977 = sbr.rel (%p3123_p13) target bundleno = 1783 (0x6f7), region = 127  ;;  %s4079_s14 = smov (!%p3123_p13), 0  }
 0x6e7   : > { %s4083_s17 = smov (!%p3123_p13), 0  }
 0x6ed LB: >> { %v2896_v10 = vld [vmem:[%s4077_s11] sm:$0xff]  ;;  %s2898_s21 = sadd.s32 1, %s4081_s14  ;;  %s2890_s17 = sadd.s32 1, %s4085_s17   ;;  %s4085_s17 = sphi %s4083_s17, %s2890_s17   ;;  %s4081_s14 = sphi %s4079_s14, %s4080_s14   ;;  %s4077_s11 = sphi %s4075_s11, %s2903_s11   ;;  %s4073_s10 = sphi %s4071_s10, %s2904_s10  }
 0x6ee   : >> { %2897 = vst [vmem:[%s4073_s10] sm:$0xff] %v2896_v10  ;;  %p2899_p0 = scmp.ge.s32.totalorder %s2898_s21, %s3998_s9  ;;  %p2889_p1 = scmp.ge.s32.totalorder %s2890_s17, %s3998_s9 }
 0x6f0   : >> { %s5494_s21 = smov (%p2899_p0, %s2898_s21), 0  ;;  %2892 = sbr.rel (!%p2889_p1) target bundleno = 1773 (0x6ed), region = 133 }
 0x6f1   : >> { %s3124_s12 = sshll.u32 %s5494_s21, 3  ;;  %s4080_s14 = smov %s5494_s21  }
 0x6f2   : >> { %s2903_s11 = scalar_lea.vmem %s2884_s7, %s3124_s12 [#allocation2]   ;;  %s2904_s10 = scalar_lea.vmem %s2886_s8, %s3124_s12  }
 0x6f7 PF: > { %p10_p2 = scmp.ge.s32.totalorder %s4125_s16, 4   ;;  %s5486_s12 = smov %s4049_s13 }
 0x6f8   : > { %s5487_s13 = smov %s4133_s19  ;;  %s5488_s14 = smov %s4125_s16 }
 0x6f9   :  { %12 = sbr.rel (!%p10_p2) target bundleno = 2 (0x2), region = 144 }

</bundles_post_ra>
